<compile_context>
chip_gen: v7x
topology: tpu7x:2x2x1
jax: 0.10.0
libtpu: 0.0.40
codegen_flags: <defaults>
</compile_context>

<pallas_src>
import functools

import jax
import jax.numpy as jnp
from jax import lax
from jax.experimental import pallas as pl
from jax.experimental.pallas import tpu as pltpu


def _round_up(x, m):
    return (x + m - 1) // m * m


def _conv1_kernel(x_ref, w_ref, scale_ref, bias_ref, out_ref, *, th, w_out):
    """3x3 / pad=1 / stride=1 conv on one row-block, fused BN + ReLU.

    x_ref:     (1, Hp+2, W+2, cmk) bf16  whole padded image, VMEM-resident
    w_ref:     (9, cmk, Cp)        bf16  per-tap weight matrices
    scale_ref: (1, Cp)             f32   folded inference BatchNorm scale
    bias_ref:  (1, Cp)             f32   folded inference BatchNorm bias
    out_ref:   (1, th*W, Cp)       bf16  this row-block's output pixels
    """
    cmk = x_ref.shape[-1]
    cp = out_ref.shape[-1]
    tm = th * w_out
    h0 = pl.program_id(1) * th                    # first output row of block

    acc = jnp.zeros((tm, cp), jnp.float32)
    for kh in range(3):
        for kw in range(3):
            # (th, W, cmk) shifted window of the padded image for this tap.
            patch = x_ref[0, pl.ds(h0 + kh, th), pl.ds(kw, w_out), :]
            acc += jnp.dot(patch.reshape(tm, cmk), w_ref[kh * 3 + kw],
                           preferred_element_type=jnp.float32)

    # Fused inference BatchNorm + ReLU.  Dropout == identity at inference.
    y = jnp.maximum(acc * scale_ref[...] + bias_ref[...], 0.0)
    out_ref[0] = y.astype(out_ref.dtype)


def conv1_forward(x_nchw, w_oihw, gamma, beta, run_mean, run_var,
                  eps=1e-5, tile_rows=512):
    """Conv1.forward.  x: (N, C, H, W) NCHW, C % 4 == 0.  Returns (N, C, H, W)."""
    N, C, H, W = x_nchw.shape
    assert C % 4 == 0, "channel_split requires num_channels % 4 == 0"
    cm = C // 2                                    # mid_channel

    # channel_split: x1 = even channels (conv branch), x2 = odd (passthrough).
    x1 = x_nchw[:, 0::2, :, :]
    x2 = x_nchw[:, 1::2, :, :]

    cmk = _round_up(cm, 8)        # contraction-dim pad (cheap MXU insurance)
    cp = _round_up(cm, 128)       # output-channel pad -> lane-dense stores

    # Row-block size: ~tile_rows output pixels per grid step, multiple of 8.
    th = _round_up(max(-(-tile_rows // W), 1), 8)
    th = min(th, _round_up(H, 8))
    hp = _round_up(H, th)
    r_blocks = hp // th

    # bf16 NHWC input with 1-px spatial halo (+ bottom pad to hp): one fused
    # XLA pass (slice + transpose + pad + cast), ~cm*2 bytes/pixel of HBM.
    x1h = jnp.transpose(x1, (0, 2, 3, 1))                       # (N, H, W, cm)
    xp = jnp.pad(x1h, ((0, 0), (1, 1 + hp - H), (1, 1), (0, cmk - cm))
                 ).astype(jnp.bfloat16)                         # (N, hp+2, W+2, cmk)

    # OIHW -> per-tap (ci, co) matrices, zero-padded.
    w_taps = jnp.transpose(w_oihw, (2, 3, 1, 0)).reshape(9, cm, cm)
    w_taps = jnp.pad(w_taps, ((0, 0), (0, cmk - cm), (0, cp - cm))
                     ).astype(jnp.bfloat16)                     # (9, cmk, cp)

    # Fold inference BatchNorm into scale/bias (padded channels stay exactly 0).
    scale = (gamma / jnp.sqrt(run_var + eps)).astype(jnp.float32)
    bias = (beta - run_mean * scale).astype(jnp.float32)
    scale = jnp.pad(scale, (0, cp - cm)).reshape(1, cp)
    bias = jnp.pad(bias, (0, cp - cm)).reshape(1, cp)

    # VMEM budget: image + output tile double-buffered, constants resident,
    # plus in-kernel accumulator / live patch scratch.
    img_bytes = (hp + 2) * (W + 2) * cmk * 2
    out_bytes = th * W * cp * 2
    const_bytes = 9 * cmk * cp * 2 + 2 * cp * 4
    scratch_bytes = th * W * cp * 4 + th * (W + 2) * cmk * 2
    needed = 2 * (img_bytes + out_bytes + const_bytes) + scratch_bytes + (2 << 20)
    try:
        cap = int(pltpu.get_tpu_info().vmem_capacity_bytes * 7 // 8)
    except Exception:
        cap = 56 * 1024 * 1024            # conservative: fits v7x's 64 MiB VMEM
    vmem_limit = int(min(max(needed, 32 * 1024 * 1024), cap))

    grid = (N, r_blocks)
    out_flat = pl.pallas_call(
        functools.partial(_conv1_kernel, th=th, w_out=W),
        out_shape=jax.ShapeDtypeStruct((N, hp * W, cp), jnp.bfloat16),
        grid=grid,
        in_specs=[
            # Whole padded image per batch index: constant along the row axis,
            # so it is fetched from HBM exactly once per image.
            pl.BlockSpec((1, hp + 2, W + 2, cmk), lambda n, r: (n, 0, 0, 0)),
            pl.BlockSpec((9, cmk, cp), lambda n, r: (0, 0, 0)),   # weights
            pl.BlockSpec((1, cp), lambda n, r: (0, 0)),           # BN scale
            pl.BlockSpec((1, cp), lambda n, r: (0, 0)),           # BN bias
        ],
        out_specs=pl.BlockSpec((1, th * W, cp), lambda n, r: (n, r, 0)),
        compiler_params=pltpu.CompilerParams(
            dimension_semantics=("parallel", "parallel"),
            vmem_limit_bytes=vmem_limit),
    )(xp, w_taps, scale, bias)

    # Strip padding, restore NCHW, concat with the untouched x2 branch.
    y1 = out_flat.reshape(N, hp, W, cp)[:, :H, :, :cm]
    y1 = jnp.transpose(y1, (0, 3, 1, 2)).astype(x_nchw.dtype)
    # TODO(synk): ph.dropout_p is undefined in the provided source; Dropout is
    # treated as identity (inference mode).
    return jnp.concatenate([y1, x2], axis=1)


def _reference(x, w, gamma, beta, run_mean, run_var, eps=1e-5):
    """Pure-JAX (f32) reference of Conv1.forward for correctness checking."""
    x1 = x[:, 0::2, :, :]
    x2 = x[:, 1::2, :, :]
    conv = lax.conv_general_dilated(
        x1, w, window_strides=(1, 1), padding=((1, 1), (1, 1)),
        dimension_numbers=("NCHW", "OIHW", "NCHW"))
    s = (gamma / jnp.sqrt(run_var + eps)).reshape(1, -1, 1, 1)
    b = (beta - run_mean * gamma / jnp.sqrt(run_var + eps)).reshape(1, -1, 1, 1)
    y1 = jnp.maximum(conv * s + b, 0.0)
    return jnp.concatenate([y1, x2], axis=1)


if __name__ == "__main__":
    key = jax.random.PRNGKey(0)
    k_x, k_w, k_g, k_b, k_m, k_v = jax.random.split(key, 6)

    N, C, H, W = 2, 4, 16, 16          # in_channel = 4 -> mid_channel = 2
    cm = C // 2
    x = jax.random.normal(k_x, (N, C, H, W), dtype=jnp.float32)
    w = jax.random.normal(k_w, (cm, cm, 3, 3), dtype=jnp.float32) * 0.1   # OIHW
    gamma = jax.random.uniform(k_g, (cm,), minval=0.5, maxval=1.5)
    beta = jax.random.normal(k_b, (cm,)) * 0.1
    run_mean = jax.random.normal(k_m, (cm,)) * 0.1
    run_var = jax.random.uniform(k_v, (cm,), minval=0.5, maxval=1.5)

    out = conv1_forward(x, w, gamma, beta, run_mean, run_var)
    out = jax.block_until_ready(out)

    ref = _reference(x, w, gamma, beta, run_mean, run_var)
    assert out.shape == (N, C, H, W), out.shape
    # bf16 MXU operands and bf16 conv-branch output (f32 accumulation) ->
    # small tolerance vs. the f32 reference.
    max_err = float(jnp.max(jnp.abs(out - ref)))
    assert max_err < 5e-2, f"mismatch vs reference, max abs err = {max_err}"

    print("KERNEL_OK")
</pallas_src>

<mosaic_0001>
module attributes {stable_mosaic.version = 11 : i64} {
  func.func @_conv1_kernel(%arg0: i32, %arg1: i32, %arg2: memref<1x18x18x8xbf16, #tpu.memory_space<vmem>>, %arg3: memref<9x8x128xbf16, #tpu.memory_space<vmem>>, %arg4: memref<1x128xf32, #tpu.memory_space<vmem>>, %arg5: memref<1x128xf32, #tpu.memory_space<vmem>>, %arg6: memref<1x256x128xbf16, #tpu.memory_space<vmem>>) attributes {dimension_semantics = [#tpu.dimension_semantics<parallel>, #tpu.dimension_semantics<parallel>], iteration_bounds = array<i64: 2, 1>, scalar_prefetch = 0 : i64, scratch_operands = 0 : i64, tpu.core_type = #tpu.core_type<tc>, window_params = [{transform_indices = @transform_0, window_bounds = array<i64: 1, 18, 18, 8>}, {pipeline_mode = #tpu.pipeline_mode<synchronous>, transform_indices = @transform_1, window_bounds = array<i64: 9, 8, 128>}, {pipeline_mode = #tpu.pipeline_mode<synchronous>, transform_indices = @transform_2, window_bounds = array<i64: 1, 128>}, {pipeline_mode = #tpu.pipeline_mode<synchronous>, transform_indices = @transform_3, window_bounds = array<i64: 1, 128>}, {transform_indices = @transform_4, window_bounds = array<i64: 1, 256, 128>}]} {
    %c16_i32 = arith.constant 16 : i32
    %0 = arith.muli %arg1, %c16_i32 : i32
    %cst = arith.constant 0.000000e+00 : f32
    %1 = vector.broadcast %cst : f32 to vector<256x128xf32>
    %c0_i32 = arith.constant 0 : i32
    %2 = arith.addi %0, %c0_i32 : i32
    %c0 = arith.constant 0 : index
    %3 = arith.index_cast %2 : i32 to index
    %c0_0 = arith.constant 0 : index
    %c0_1 = arith.constant 0 : index
    %4 = vector.load %arg2[%c0, %3, %c0_0, %c0_1] : memref<1x18x18x8xbf16, #tpu.memory_space<vmem>>, vector<1x16x16x8xbf16>
    %5 = vector.shape_cast %4 : vector<1x16x16x8xbf16> to vector<16x16x8xbf16>
    %6 = vector.shape_cast %5 : vector<16x16x8xbf16> to vector<256x8xbf16>
    %c0_2 = arith.constant 0 : index
    %c0_3 = arith.constant 0 : index
    %c0_4 = arith.constant 0 : index
    %7 = vector.load %arg3[%c0_2, %c0_3, %c0_4] : memref<9x8x128xbf16, #tpu.memory_space<vmem>>, vector<1x8x128xbf16>
    %8 = vector.shape_cast %7 : vector<1x8x128xbf16> to vector<8x128xbf16>
    %cst_5 = arith.constant dense<0.000000e+00> : vector<256x128xf32>
    %9 = tpu.matmul %6, %8, %cst_5 {dimension_numbers = #tpu.dot_dimension_numbers<[1], [0], [0], [1], [0, 0, 1, 1], [], []>} : vector<256x8xbf16>, vector<8x128xbf16>, vector<256x128xf32> -> vector<256x128xf32>
    %10 = arith.addf %1, %9 : vector<256x128xf32>
    %c0_i32_6 = arith.constant 0 : i32
    %11 = arith.addi %0, %c0_i32_6 : i32
    %c0_7 = arith.constant 0 : index
    %12 = arith.index_cast %11 : i32 to index
    %c1 = arith.constant 1 : index
    %c0_8 = arith.constant 0 : index
    %13 = vector.load %arg2[%c0_7, %12, %c1, %c0_8] : memref<1x18x18x8xbf16, #tpu.memory_space<vmem>>, vector<1x16x16x8xbf16>
    %14 = vector.shape_cast %13 : vector<1x16x16x8xbf16> to vector<16x16x8xbf16>
    %15 = vector.shape_cast %14 : vector<16x16x8xbf16> to vector<256x8xbf16>
    %c1_9 = arith.constant 1 : index
    %c0_10 = arith.constant 0 : index
    %c0_11 = arith.constant 0 : index
    %16 = vector.load %arg3[%c1_9, %c0_10, %c0_11] : memref<9x8x128xbf16, #tpu.memory_space<vmem>>, vector<1x8x128xbf16>
    %17 = vector.shape_cast %16 : vector<1x8x128xbf16> to vector<8x128xbf16>
    %cst_12 = arith.constant dense<0.000000e+00> : vector<256x128xf32>
    %18 = tpu.matmul %15, %17, %cst_12 {dimension_numbers = #tpu.dot_dimension_numbers<[1], [0], [0], [1], [0, 0, 1, 1], [], []>} : vector<256x8xbf16>, vector<8x128xbf16>, vector<256x128xf32> -> vector<256x128xf32>
    %19 = arith.addf %10, %18 : vector<256x128xf32>
    %c0_i32_13 = arith.constant 0 : i32
    %20 = arith.addi %0, %c0_i32_13 : i32
    %c0_14 = arith.constant 0 : index
    %21 = arith.index_cast %20 : i32 to index
    %c2 = arith.constant 2 : index
    %c0_15 = arith.constant 0 : index
    %22 = vector.load %arg2[%c0_14, %21, %c2, %c0_15] : memref<1x18x18x8xbf16, #tpu.memory_space<vmem>>, vector<1x16x16x8xbf16>
    %23 = vector.shape_cast %22 : vector<1x16x16x8xbf16> to vector<16x16x8xbf16>
    %24 = vector.shape_cast %23 : vector<16x16x8xbf16> to vector<256x8xbf16>
    %c2_16 = arith.constant 2 : index
    %c0_17 = arith.constant 0 : index
    %c0_18 = arith.constant 0 : index
    %25 = vector.load %arg3[%c2_16, %c0_17, %c0_18] : memref<9x8x128xbf16, #tpu.memory_space<vmem>>, vector<1x8x128xbf16>
    %26 = vector.shape_cast %25 : vector<1x8x128xbf16> to vector<8x128xbf16>
    %cst_19 = arith.constant dense<0.000000e+00> : vector<256x128xf32>
    %27 = tpu.matmul %24, %26, %cst_19 {dimension_numbers = #tpu.dot_dimension_numbers<[1], [0], [0], [1], [0, 0, 1, 1], [], []>} : vector<256x8xbf16>, vector<8x128xbf16>, vector<256x128xf32> -> vector<256x128xf32>
    %28 = arith.addf %19, %27 : vector<256x128xf32>
    %c1_i32 = arith.constant 1 : i32
    %29 = arith.addi %0, %c1_i32 : i32
    %c0_20 = arith.constant 0 : index
    %30 = arith.index_cast %29 : i32 to index
    %c0_21 = arith.constant 0 : index
    %c0_22 = arith.constant 0 : index
    %31 = vector.load %arg2[%c0_20, %30, %c0_21, %c0_22] : memref<1x18x18x8xbf16, #tpu.memory_space<vmem>>, vector<1x16x16x8xbf16>
    %32 = vector.shape_cast %31 : vector<1x16x16x8xbf16> to vector<16x16x8xbf16>
    %33 = vector.shape_cast %32 : vector<16x16x8xbf16> to vector<256x8xbf16>
    %c3 = arith.constant 3 : index
    %c0_23 = arith.constant 0 : index
    %c0_24 = arith.constant 0 : index
    %34 = vector.load %arg3[%c3, %c0_23, %c0_24] : memref<9x8x128xbf16, #tpu.memory_space<vmem>>, vector<1x8x128xbf16>
    %35 = vector.shape_cast %34 : vector<1x8x128xbf16> to vector<8x128xbf16>
    %cst_25 = arith.constant dense<0.000000e+00> : vector<256x128xf32>
    %36 = tpu.matmul %33, %35, %cst_25 {dimension_numbers = #tpu.dot_dimension_numbers<[1], [0], [0], [1], [0, 0, 1, 1], [], []>} : vector<256x8xbf16>, vector<8x128xbf16>, vector<256x128xf32> -> vector<256x128xf32>
    %37 = arith.addf %28, %36 : vector<256x128xf32>
    %c1_i32_26 = arith.constant 1 : i32
    %38 = arith.addi %0, %c1_i32_26 : i32
    %c0_27 = arith.constant 0 : index
    %39 = arith.index_cast %38 : i32 to index
    %c1_28 = arith.constant 1 : index
    %c0_29 = arith.constant 0 : index
    %40 = vector.load %arg2[%c0_27, %39, %c1_28, %c0_29] : memref<1x18x18x8xbf16, #tpu.memory_space<vmem>>, vector<1x16x16x8xbf16>
    %41 = vector.shape_cast %40 : vector<1x16x16x8xbf16> to vector<16x16x8xbf16>
    %42 = vector.shape_cast %41 : vector<16x16x8xbf16> to vector<256x8xbf16>
    %c4 = arith.constant 4 : index
    %c0_30 = arith.constant 0 : index
    %c0_31 = arith.constant 0 : index
    %43 = vector.load %arg3[%c4, %c0_30, %c0_31] : memref<9x8x128xbf16, #tpu.memory_space<vmem>>, vector<1x8x128xbf16>
    %44 = vector.shape_cast %43 : vector<1x8x128xbf16> to vector<8x128xbf16>
    %cst_32 = arith.constant dense<0.000000e+00> : vector<256x128xf32>
    %45 = tpu.matmul %42, %44, %cst_32 {dimension_numbers = #tpu.dot_dimension_numbers<[1], [0], [0], [1], [0, 0, 1, 1], [], []>} : vector<256x8xbf16>, vector<8x128xbf16>, vector<256x128xf32> -> vector<256x128xf32>
    %46 = arith.addf %37, %45 : vector<256x128xf32>
    %c1_i32_33 = arith.constant 1 : i32
    %47 = arith.addi %0, %c1_i32_33 : i32
    %c0_34 = arith.constant 0 : index
    %48 = arith.index_cast %47 : i32 to index
    %c2_35 = arith.constant 2 : index
    %c0_36 = arith.constant 0 : index
    %49 = vector.load %arg2[%c0_34, %48, %c2_35, %c0_36] : memref<1x18x18x8xbf16, #tpu.memory_space<vmem>>, vector<1x16x16x8xbf16>
    %50 = vector.shape_cast %49 : vector<1x16x16x8xbf16> to vector<16x16x8xbf16>
    %51 = vector.shape_cast %50 : vector<16x16x8xbf16> to vector<256x8xbf16>
    %c5 = arith.constant 5 : index
    %c0_37 = arith.constant 0 : index
    %c0_38 = arith.constant 0 : index
    %52 = vector.load %arg3[%c5, %c0_37, %c0_38] : memref<9x8x128xbf16, #tpu.memory_space<vmem>>, vector<1x8x128xbf16>
    %53 = vector.shape_cast %52 : vector<1x8x128xbf16> to vector<8x128xbf16>
    %cst_39 = arith.constant dense<0.000000e+00> : vector<256x128xf32>
    %54 = tpu.matmul %51, %53, %cst_39 {dimension_numbers = #tpu.dot_dimension_numbers<[1], [0], [0], [1], [0, 0, 1, 1], [], []>} : vector<256x8xbf16>, vector<8x128xbf16>, vector<256x128xf32> -> vector<256x128xf32>
    %55 = arith.addf %46, %54 : vector<256x128xf32>
    %c2_i32 = arith.constant 2 : i32
    %56 = arith.addi %0, %c2_i32 : i32
    %c0_40 = arith.constant 0 : index
    %57 = arith.index_cast %56 : i32 to index
    %c0_41 = arith.constant 0 : index
    %c0_42 = arith.constant 0 : index
    %58 = vector.load %arg2[%c0_40, %57, %c0_41, %c0_42] : memref<1x18x18x8xbf16, #tpu.memory_space<vmem>>, vector<1x16x16x8xbf16>
    %59 = vector.shape_cast %58 : vector<1x16x16x8xbf16> to vector<16x16x8xbf16>
    %60 = vector.shape_cast %59 : vector<16x16x8xbf16> to vector<256x8xbf16>
    %c6 = arith.constant 6 : index
    %c0_43 = arith.constant 0 : index
    %c0_44 = arith.constant 0 : index
    %61 = vector.load %arg3[%c6, %c0_43, %c0_44] : memref<9x8x128xbf16, #tpu.memory_space<vmem>>, vector<1x8x128xbf16>
    %62 = vector.shape_cast %61 : vector<1x8x128xbf16> to vector<8x128xbf16>
    %cst_45 = arith.constant dense<0.000000e+00> : vector<256x128xf32>
    %63 = tpu.matmul %60, %62, %cst_45 {dimension_numbers = #tpu.dot_dimension_numbers<[1], [0], [0], [1], [0, 0, 1, 1], [], []>} : vector<256x8xbf16>, vector<8x128xbf16>, vector<256x128xf32> -> vector<256x128xf32>
    %64 = arith.addf %55, %63 : vector<256x128xf32>
    %c2_i32_46 = arith.constant 2 : i32
    %65 = arith.addi %0, %c2_i32_46 : i32
    %c0_47 = arith.constant 0 : index
    %66 = arith.index_cast %65 : i32 to index
    %c1_48 = arith.constant 1 : index
    %c0_49 = arith.constant 0 : index
    %67 = vector.load %arg2[%c0_47, %66, %c1_48, %c0_49] : memref<1x18x18x8xbf16, #tpu.memory_space<vmem>>, vector<1x16x16x8xbf16>
    %68 = vector.shape_cast %67 : vector<1x16x16x8xbf16> to vector<16x16x8xbf16>
    %69 = vector.shape_cast %68 : vector<16x16x8xbf16> to vector<256x8xbf16>
    %c7 = arith.constant 7 : index
    %c0_50 = arith.constant 0 : index
    %c0_51 = arith.constant 0 : index
    %70 = vector.load %arg3[%c7, %c0_50, %c0_51] : memref<9x8x128xbf16, #tpu.memory_space<vmem>>, vector<1x8x128xbf16>
    %71 = vector.shape_cast %70 : vector<1x8x128xbf16> to vector<8x128xbf16>
    %cst_52 = arith.constant dense<0.000000e+00> : vector<256x128xf32>
    %72 = tpu.matmul %69, %71, %cst_52 {dimension_numbers = #tpu.dot_dimension_numbers<[1], [0], [0], [1], [0, 0, 1, 1], [], []>} : vector<256x8xbf16>, vector<8x128xbf16>, vector<256x128xf32> -> vector<256x128xf32>
    %73 = arith.addf %64, %72 : vector<256x128xf32>
    %c2_i32_53 = arith.constant 2 : i32
    %74 = arith.addi %0, %c2_i32_53 : i32
    %c0_54 = arith.constant 0 : index
    %75 = arith.index_cast %74 : i32 to index
    %c2_55 = arith.constant 2 : index
    %c0_56 = arith.constant 0 : index
    %76 = vector.load %arg2[%c0_54, %75, %c2_55, %c0_56] : memref<1x18x18x8xbf16, #tpu.memory_space<vmem>>, vector<1x16x16x8xbf16>
    %77 = vector.shape_cast %76 : vector<1x16x16x8xbf16> to vector<16x16x8xbf16>
    %78 = vector.shape_cast %77 : vector<16x16x8xbf16> to vector<256x8xbf16>
    %c8 = arith.constant 8 : index
    %c0_57 = arith.constant 0 : index
    %c0_58 = arith.constant 0 : index
    %79 = vector.load %arg3[%c8, %c0_57, %c0_58] : memref<9x8x128xbf16, #tpu.memory_space<vmem>>, vector<1x8x128xbf16>
    %80 = vector.shape_cast %79 : vector<1x8x128xbf16> to vector<8x128xbf16>
    %cst_59 = arith.constant dense<0.000000e+00> : vector<256x128xf32>
    %81 = tpu.matmul %78, %80, %cst_59 {dimension_numbers = #tpu.dot_dimension_numbers<[1], [0], [0], [1], [0, 0, 1, 1], [], []>} : vector<256x8xbf16>, vector<8x128xbf16>, vector<256x128xf32> -> vector<256x128xf32>
    %82 = arith.addf %73, %81 : vector<256x128xf32>
    %c0_60 = arith.constant 0 : index
    %c0_61 = arith.constant 0 : index
    %83 = vector.load %arg4[%c0_60, %c0_61] : memref<1x128xf32, #tpu.memory_space<vmem>>, vector<1x128xf32>
    %84 = vector.broadcast %83 : vector<1x128xf32> to vector<256x128xf32>
    %85 = arith.mulf %82, %84 : vector<256x128xf32>
    %c0_62 = arith.constant 0 : index
    %c0_63 = arith.constant 0 : index
    %86 = vector.load %arg5[%c0_62, %c0_63] : memref<1x128xf32, #tpu.memory_space<vmem>>, vector<1x128xf32>
    %87 = vector.broadcast %86 : vector<1x128xf32> to vector<256x128xf32>
    %88 = arith.addf %85, %87 : vector<256x128xf32>
    %cst_64 = arith.constant 0.000000e+00 : f32
    %89 = vector.broadcast %cst_64 : f32 to vector<256x128xf32>
    %90 = arith.maximumf %88, %89 : vector<256x128xf32>
    %91 = arith.truncf %90 : vector<256x128xf32> to vector<256x128xbf16>
    %c0_65 = arith.constant 0 : index
    %c0_66 = arith.constant 0 : index
    %c0_67 = arith.constant 0 : index
    %92 = vector.load %arg6[%c0_65, %c0_66, %c0_67] : memref<1x256x128xbf16, #tpu.memory_space<vmem>>, vector<1x256x128xbf16>
    %93 = vector.shape_cast %92 : vector<1x256x128xbf16> to vector<256x128xbf16>
    %94 = vector.shape_cast %91 : vector<256x128xbf16> to vector<1x256x128xbf16>
    tpu.vector_store %arg6[%c0_65, %c0_66, %c0_67], %94 {strides = array<i32>} : memref<1x256x128xbf16, #tpu.memory_space<vmem>>, vector<1x256x128xbf16>,
    return
  }
  func.func @transform_0(%arg0: i32, %arg1: i32) -> (i32, i32, i32, i32) {
    %c0_i32 = arith.constant 0 : i32
    %c0_i32_0 = arith.constant 0 : i32
    %c0_i32_1 = arith.constant 0 : i32
    %c0_i32_2 = arith.constant 0 : i32
    return %arg0, %c0_i32, %c0_i32_0, %c0_i32_1 : i32, i32, i32, i32
  }
  func.func @transform_1(%arg0: i32, %arg1: i32) -> (i32, i32, i32) {
    %c0_i32 = arith.constant 0 : i32
    %c0_i32_0 = arith.constant 0 : i32
    %c0_i32_1 = arith.constant 0 : i32
    %c0_i32_2 = arith.constant 0 : i32
    return %c0_i32, %c0_i32_0, %c0_i32_1 : i32, i32, i32
  }
  func.func @transform_2(%arg0: i32, %arg1: i32) -> (i32, i32) {
    %c0_i32 = arith.constant 0 : i32
    %c0_i32_0 = arith.constant 0 : i32
    %c0_i32_1 = arith.constant 0 : i32
    return %c0_i32, %c0_i32_0 : i32, i32
  }
  func.func @transform_3(%arg0: i32, %arg1: i32) -> (i32, i32) {
    %c0_i32 = arith.constant 0 : i32
    %c0_i32_0 = arith.constant 0 : i32
    %c0_i32_1 = arith.constant 0 : i32
    return %c0_i32, %c0_i32_0 : i32, i32
  }
  func.func @transform_4(%arg0: i32, %arg1: i32) -> (i32, i32, i32) {
    %c0_i32 = arith.constant 0 : i32
    %c0_i32_0 = arith.constant 0 : i32
    return %arg0, %arg1, %c0_i32 : i32, i32, i32
  }
}

</mosaic_0001>

<bundles_post_ra>
// kernel: tpu_custom_call.1
= control target key start
LH: loop header
LB: loop body
LE: loop exit
PB: predicated region body
PF: predicated region fallthrough
CT: control target
= control target key end

     0   :  { %9 = vsyncpa [#allocation3], 0  ;;  %s8782_s0 = inlined_call_operand.vmem [shape: bf16[2,18,18,8], index: 0, kind: input, shape index: {}]   ;;  %s8783_s1 = inlined_call_operand.vmem [shape: bf16[9,8,128], index: 1, kind: input, shape index: {}]   ;;  %s8784_s2 = inlined_call_operand.vmem [shape: f32[1,128], index: 2, kind: input, shape index: {}]   ;;  %s8785_s3 = inlined_call_operand.vmem [shape: f32[1,128], index: 3, kind: input, shape index: {}]   ;;  %s8786_s4 = inlined_call_operand.hbm [shape: bf16[2,256,128], index: 4, kind: output, shape index: {}]  }
   0x1   :  { %11 = vsyncpa [#allocation3 + $0x1], 0  ;;  %s6858_s15 = smov 0   ;;  %s6860_s16 = smov 0  }
   0x2   :  { %s6862_s17 = smov 0   ;;  %s6864_s18 = smov 0  }
   0x3   :  { %s6866_s19 = smov 0   ;;  %s6868_s20 = smov 0  }
   0x4 LB: > { %s5150_s21 = sadd.s32 4294967295, %s6828_s20   ;;  %s5151_s22 = sadd.s32 4294967294, %s6828_s20   ;;  %s6828_s20 = sphi %s6868_s20, %s17_s20   ;;  %s6824_s19 = sphi %s6866_s19, %s8860_s19   ;;  %s6820_s18 = sphi %s6864_s18, %s8859_s18   ;;  %s6816_s17 = sphi %s6862_s17, %s8858_s17   ;;  %s6812_s16 = sphi %s6860_s16, %s8857_s16   ;;  %s6808_s15 = sphi %s6858_s15, %s8856_s15  }
   0x5   : > { %s29_s23 = sadd.s32 1, %s6824_s19  ;;  %s127_s24 = sadd.s32 1, %s6816_s17 }
   0x6   : > { %p31_p0 = scmp.ge.s32.totalorder %s29_s23, 2  ;;  %p137_p1 = scmp.ne.s32.totalorder %s6816_s17, %s6812_s16 }
   0x7   : > { %p138_p2 = scmp.eq.s32.totalorder %s5150_s21, 1  ;;  %p143_p3 = scmp.ne.s32.totalorder %s6812_s16, %s6808_s15 }
   0x8   : > { %s8862_s23 = smov (%p31_p0, %s29_s23), 0  ;;  %p144_p5 = scmp.eq.s32.totalorder %s5151_s22, 1 }
   0x9   : > { %p6898_p4 = por %p138_p2, %p137_p1  ;;  %s122_s26 = ssub.s32 %s6824_s19, %s8862_s23 }
   0xa   : > { %p5154_p6 = scmp.ge.s32.totalorder %s6828_s20, 1  ;;  %p125_p7 = scmp.eq.s32.totalorder %s122_s26, 0 }
   0xb   : > { %p6905_p8 = por %p144_p5, %p143_p3  ;;  %p179_p9 = scmp.lt.s32.totalorder %s6828_s20, 3 }
   0xc   : > { %s6911_s28 = scalar_select %p125_p7, %s6816_s17, %s127_s24  }
   0xd   : > { %p180_p10 = pnand %p5154_p6, %p179_p9 }
   0xf   : > { %183 = sbr.rel (%p180_p10) target bundleno = 615 (0x267), region = 36 }
  0x16   : > { %v5157_v0 = vld [vmem:[%s8783_s1 + $0x4] sm:$0xf]  ;;  %vm751_vm0 = vcmask 1043456   ;;  %v5384_v1 = vld [vmem:[%s8783_s1 + $0x10] sm:$0xf]  ;;  %p205_p11 = scmp.lt.s32.totalorder %s6820_s18, 1 }
  0x17   : > { %6577 = vmatprep.subr.msk.bf16.mxu1 %vm751_vm0, %v5157_v0  ;;  %6581 = vmatprep.subr.msk.bf16.mxu0 %vm751_vm0, %v5384_v1  ;;  %v753_v2 = vsel %vm751_vm0, %v5157_v0, 0  ;;  %v6924_v3 = vsel %vm751_vm0, %v5384_v1, 0  ;;  %v248_v4 = vld [vmem:[%s8783_s1] sm:$0xf]  ;;  %v5449_v5 = vld [vmem:[%s8783_s1 + $0x14] sm:$0xf] }
  0x18   : > { %8802 = vst [vmem:[#allocation5_spill] sm:$0xff] %v6924_v3  ;;  %6014 = vmatpush3.bf16.msra.mxu1 %v753_v2  ;;  %6150 = vmatpush3.bf16.msra.mxu0 %v6924_v3  ;;  %s206_s7 = scalar_select %p205_p11, %s6820_s18, 1  ;;  %vm265_vm1 = vsmask.f32 3328  ;;  %vm266_vm2 = vsmask.f32 7440 }
  0x19   : > { %6578 = vmatprep.subr.msk.bf16.mxu1 %vm751_vm0, %v248_v4  ;;  %6583 = vmatprep.subr.msk.bf16.mxu0 %vm751_vm0, %v5449_v5  ;;  %vm702_vm3 = vcmask 64512   ;;  %v6952_v17 = vsel %vm751_vm0, %v248_v4, 0  ;;  %v6958_v26 = vld [vmem:[%s8783_s1 + $0x18] sm:$0xf]  ;;  %vm6965_vm4 = vmor %vm265_vm1, %vm266_vm2  ;;  %v6971_v37 = vsel %vm751_vm0, %v5449_v5, 0  ;;  %vm1256_vm5 = vcmask 1042432  }
  0x1a   : > { %s6587_s12 = smul.u32 216, %s206_s7  ;;  %v6975_v41 = vsel %vm751_vm0, %v6958_v26, 0  ;;  %vm1257_vm6 = vcmask 1046532   ;;  %s202_s26 = sand.u32 1, %s6812_s16  }
  0x1b   : > { %vm7191_vm7 = vmor %vm1256_vm5, %vm1257_vm6  ;;  %s5155_s29 = sshll.u32 %s202_s26, 7  ;;  %s5764_s5 = sshll.u32 %s6820_s18, 11 }
  0x1c   : > { %s6939_s21 = scalar_lea.vmem %s8782_s0, %s6587_s12  ;;  %s8648_s30 = scalar_lea.vmem [#allocation2], %s5155_s29 }
  0x1d   : > { %v216_v6 = vld [vmem:[%s6939_s21] sm:$0xf]  ;;  %v217_v7 = vld [vmem:[%s6939_s21 + $0x4] sm:$0xf]  ;;  %v249_v8 = vld [vmem:[%s6939_s21 + $0x8] sm:$0x1]  ;;  %s8728_s9 = scalar_lea.hbm %s8786_s4, %s5764_s5 }
  0x1e   : > { %v269_v9 = vshrl.u32 %v216_v6, 16  ;;  %v272_v10 = vshll.u32 %v216_v6, 16  ;;  %v278_v11 = vshll.u32 %v217_v7, 16  ;;  %v282_v12 = vshrl.u32 %v217_v7, 16  ;;  %v5336_v13 = vld [vmem:[%s6939_s21 + $0xc] sm:$0xf] }
  0x1f   : > { %v288_v14 = vshll.u32 %v249_v8, 16  ;;  %v6946_v15 = vld [vmem:[%s6939_s21 + $0x10] sm:$0xf]  ;;  %v6949_v16 = vld [vmem:[%s6939_s21 + $0x14] sm:$0x1]  ;;  %v2076_v23 = vshrl.u32 %v5336_v13, 16 }
  0x20   : > { %v271_v18 = vrot.slane %v269_v9, 4  ;;  %v274_v19 = vrot.slane %v272_v10, 5  ;;  %v280_v20 = vrot.slane %v278_v11, 5  ;;  %v284_v21 = vrot.slane %v282_v12, 4  ;;  %v218_v31 = vld [vmem:[%s6939_s21 + $0xc] sm:$0xf] }
  0x21   : > { %v290_v22 = vrot.slane %v288_v14, 5  ;;  %v2079_v24 = vshll.u32 %v5336_v13, 16  ;;  %v2085_v25 = vshll.u32 %v6946_v15, 16  ;;  %v2089_v29 = vshrl.u32 %v6946_v15, 16  ;;  %v219_v36 = vld [vmem:[%s6939_s21 + $0x10] sm:$0xf] }
  0x22   : > { %v275_v27 = vor.u32 %v274_v19, %v271_v18  ;;  %v285_v28 = vor.u32 %v284_v21, %v280_v20  ;;  %v2095_v30 = vshll.u32 %v6949_v16, 16  ;;  %v2078_v33 = vrot.slane %v2076_v23, 4  ;;  %v250_v44 = vld [vmem:[%s6939_s21 + $0x14] sm:$0x1]  ;;  %v5339_v55 = vld [vmem:[%s6939_s21 + $0x18] sm:$0xf] }
  0x23   : > { %v2081_v34 = vrot.slane %v2079_v24, 5  ;;  %v2087_v35 = vrot.slane %v2085_v25, 5  ;;  %v2091_v40 = vrot.slane %v2089_v29, 4  ;;  %v293_v45 = vshrl.u32 %v218_v31, 16  ;;  %v6984_v60 = vld [vmem:[%s6939_s21 + $0x1c] sm:$0xf] }
  0x24   : > { %v276_v38 = vrot.slane %v275_v27, 4  ;;  %v286_v39 = vrot.slane %v285_v28, 4  ;;  %v2097_v43 = vrot.slane %v2095_v30, 5  ;;  %v296_v46 = vshll.u32 %v218_v31, 16  ;;  %v6992_v1 = vld [vmem:[%s6939_s21 + $0x20] sm:$0x1] }
  0x25   : > { %v2082_v42 = vor.u32 %v2081_v34, %v2078_v33  ;;  %v2092_v49 = vor.u32 %v2091_v40, %v2087_v35  ;;  %v302_v50 = vshll.u32 %v219_v36, 16  ;;  %v295_v53 = vrot.slane %v293_v45, 4  ;;  %v220_v18 = vld [vmem:[%s6939_s21 + $0x18] sm:$0xf]  ;;  %v221_v23 = vld [vmem:[%s6939_s21 + $0x1c] sm:$0xf] }
  0x26   : > { %v281_v47 = vsel %vm6965_vm4, %v276_v38, %v280_v20  ;;  %v291_v48 = vsel %vm6965_vm4, %v286_v39, %v290_v22  ;;  %v298_v54 = vrot.slane %v296_v46, 5  ;;  %v306_v58 = vshrl.u32 %v219_v36, 16  ;;  %v251_v31 = vld [vmem:[%s6939_s21 + $0x20] sm:$0x1]  ;;  %v5342_v40 = vld [vmem:[%s6939_s21 + $0x24] sm:$0xf] }
  0x27   : > { %v5158_v51 = vcombine.low %v281_v47, %v291_v48  ;;  %v2083_v52 = vrot.slane %v2082_v42, 4  ;;  %v2093_v56 = vrot.slane %v2092_v49, 4  ;;  %v304_v57 = vrot.slane %v302_v50, 5  ;;  %v7015_v46 = vld [vmem:[%s6939_s21 + $0x28] sm:$0xf]  ;;  %s5067_s6 = sshll.u32 %s8648_s30, 4  ;;  %s8730_s6 = int_to_ptr.vmem [resolvable:$true] %s5067_s6 }
  0x28   : > { %v312_v59 = vshll.u32 %v250_v44, 16  ;;  %v2819_v62 = vrot.slane %v6946_v15, 5  ;;  %v2822_v63 = vrot.slane %v6949_v16, 5  ;;  %v299_v0 = vor.u32 %v298_v54, %v295_v53  ;;  %v7024_v54 = vld [vmem:[%s6939_s21 + $0x2c] sm:$0x1]  ;;  %s8736_s18 = scalar_lea.sflag [#allocation3], %s202_s26 }
  0x29   : > { %6015 = vmatprep.mubr.msk.bf16.mxu1 %vm702_vm3, %v5158_v51  ;;  %v2088_v61 = vsel %vm6965_vm4, %v2083_v52, %v2087_v35  ;;  %v2098_v2 = vsel %vm6965_vm4, %v2093_v56, %v2097_v43  ;;  %v308_v4 = vrot.slane %v306_v58, 4  ;;  %v2100_v6 = vshrl.u32 %v5339_v55, 16  ;;  %v5238_v51 = vld [vmem:[%s8783_s1 + $0x8] sm:$0xf]  ;;  %v7224_v16 = vld [vmem:[%s6939_s21 + $0x7c] sm:$0xf] }
  0x2a   : > { %v314_v5 = vrot.slane %v312_v59, 5  ;;  %v5385_v7 = vcombine.low %v2088_v61, %v2098_v2  ;;  %v300_v8 = vrot.slane %v299_v0, 4  ;;  %v2103_v9 = vshll.u32 %v5339_v55, 16  ;;  %v222_v0 = vld [vmem:[%s6939_s21 + $0x24] sm:$0xf]  ;;  %s6750_s10 = scalar_lea.vmem %s8730_s6, 2048 }
  0x2b   : > { %v2109_v10 = vshll.u32 %v6984_v60, 16  ;;  %v309_v11 = vor.u32 %v308_v4, %v304_v57  ;;  %v2102_v12 = vrot.slane %v2100_v6, 4  ;;  %v2113_v13 = vshrl.u32 %v6984_v60, 16  ;;  %p6751_p12 = scmp.ne.s32.totalorder %s8730_s6, %s6750_s10  ;;  %s6830_s11 = smov [#allocation2]  }
  0x2c   : > { %v2119_v14 = vshll.u32 %v6992_v1, 16  ;;  %6151 = vmatprep.mubr.msk.bf16.mxu0 %vm702_vm3, %v5385_v7  ;;  %v305_v19 = vsel %vm6965_vm4, %v300_v8, %v304_v57  ;;  %v2105_v20 = vrot.slane %v2103_v9, 5  ;;  %v2826_v22 = vrot.slane %v6984_v60, 5  ;;  %v223_v7 = vld [vmem:[%s6939_s21 + $0x28] sm:$0xf]  ;;  %s6754_s12 = sshll.u32 %s6830_s11, 4  ;;  %s6755_s12 = int_to_ptr.vmem [resolvable:$false] %s6754_s12 }
  0x2d   : > { %v2111_v21 = vrot.slane %v2109_v10, 5  ;;  %v310_v24 = vrot.slane %v309_v11, 4  ;;  %v2115_v25 = vrot.slane %v2113_v13, 4  ;;  %v2829_v28 = vrot.slane %v6992_v1, 5  ;;  %v252_v13 = vld [vmem:[%s6939_s21 + $0x2c] sm:$0x1]  ;;  %p6752_p13 = pnand %p6751_p12, %p6898_p4  ;;  %p6757_p1 = scmp.lt.s32.totalorder %s8730_s6, %s6755_s12 }
  0x2e   : > { %v2121_v27 = vrot.slane %v2119_v14, 5  ;;  %v2106_v29 = vor.u32 %v2105_v20, %v2102_v12  ;;  %v7008_v30 = vrot.slane %v2826_v22, 4  ;;  %v317_v33 = vshrl.u32 %v220_v18, 16  ;;  %s6756_s13 = scalar_lea.vmem %s6755_s12, 4096 }
  0x2f   : > { %v320_v34 = vshll.u32 %v220_v18, 16  ;;  %v315_v35 = vsel %vm6965_vm4, %v310_v24, %v314_v5  ;;  %v2116_v36 = vor.u32 %v2115_v25, %v2111_v21  ;;  %v326_v38 = vshll.u32 %v221_v23, 16  ;;  %v5345_v24 = vld [vmem:[%s6939_s21 + $0x30] sm:$0xf]  ;;  %p6753_p0 = pneg %p6752_p13  ;;  %p6758_p2 = scmp.lt.s32.totalorder %s6756_s13, %s6750_s10 }
  0x30   : > { %v330_v39 = vshrl.u32 %v221_v23, 16  ;;  %v5159_v42 = vcombine.low %v305_v19, %v315_v35  ;;  %v2107_v43 = vrot.slane %v2106_v29, 4  ;;  %v319_v44 = vrot.slane %v317_v33, 4  ;;  %v7044_v33 = vld [vmem:[%s6939_s21 + $0x34] sm:$0xf] }
  0x31   : > { %v322_v45 = vrot.slane %v320_v34, 5  ;;  %v2117_v47 = vrot.slane %v2116_v36, 4  ;;  %v328_v48 = vrot.slane %v326_v38, 5  ;;  %v336_v50 = vshll.u32 %v251_v31, 16  ;;  %p6759_p3 = por %p6758_p2, %p6757_p1 }
  0x32   : > { %v332_v49 = vrot.slane %v330_v39, 4  ;;  %6016 = vmatmul.mubr.msk.bf16.vlgmr.msra.gmra.mrb[0].mxu1 %vm702_vm3, %v5159_v42  ;;  %v2112_v52 = vsel %vm6965_vm4, %v2107_v43, %v2111_v21  ;;  %v2124_v55 = vshrl.u32 %v5342_v40, 16  ;;  %v2127_v56 = vshll.u32 %v5342_v40, 16  ;;  %v7052_v40 = vld [vmem:[%s6939_s21 + $0x38] sm:$0x1] }
  0x33   : > { %v323_v53 = vor.u32 %v322_v45, %v319_v44  ;;  %6048 = vmatpush3.bf16.msra.mxu1 %v6952_v17  ;;  %v2122_v57 = vsel %vm6965_vm4, %v2117_v47, %v2121_v27  ;;  %v338_v59 = vrot.slane %v336_v50, 5  ;;  %v2133_v61 = vshll.u32 %v7015_v46, 16  ;;  %p6760_p5 = pnand %p6759_p3, %p6753_p0 }
  0x34   : > { %v333_v58 = vor.u32 %v332_v49, %v328_v48  ;;  %v5386_v2 = vcombine.low %v2112_v52, %v2122_v57  ;;  %v2126_v5 = vrot.slane %v2124_v55, 4  ;;  %v2129_v6 = vrot.slane %v2127_v56, 5  ;;  %6579 = vmatprep.subr.msk.bf16.mxu1 %vm751_vm0, %v5238_v51  ;;  %v224_v52 = vld [vmem:[%s6939_s21 + $0x30] sm:$0xf] }
  0x35   : > { %v324_v4 = vrot.slane %v323_v53, 4  ;;  %v2135_v9 = vrot.slane %v2133_v61, 5  ;;  %v2137_v17 = vshrl.u32 %v7015_v46, 16  ;;  %v2143_v10 = vshll.u32 %v7024_v54, 16 }
  0x36   : > { %v334_v8 = vrot.slane %v333_v58, 4  ;;  %6152 = vmatmul.mubr.msk.bf16.vlgmr.msra.gmra.mrb[0].mxu0 %vm702_vm3, %v5386_v2  ;;  %v2130_v12 = vor.u32 %v2129_v6, %v2126_v5  ;;  %v341_v14 = vshrl.u32 %v222_v0, 16  ;;  %v344_v18 = vshll.u32 %v222_v0, 16  ;;  %v225_v58 = vld [vmem:[%s6939_s21 + $0x34] sm:$0xf] }
  0x37   : > { %v329_v11 = vsel %vm6965_vm4, %v324_v4, %v328_v48  ;;  %6184 = vmatpush3.bf16.msra.mxu0 %v6971_v37  ;;  %v2139_v20 = vrot.slane %v2137_v17, 4  ;;  %v2145_v21 = vrot.slane %v2143_v10, 5  ;;  %v350_v23 = vshll.u32 %v223_v7, 16  ;;  %v253_v4 = vld [vmem:[%s6939_s21 + $0x38] sm:$0x1] }
  0x38   : > { %v339_v19 = vsel %vm6965_vm4, %v334_v8, %v338_v59  ;;  %v2131_v27 = vrot.slane %v2130_v12, 4  ;;  %v343_v29 = vrot.slane %v341_v14, 4  ;;  %v346_v31 = vrot.slane %v344_v18, 5  ;;  %6584 = vmatprep.subr.msk.bf16.mxu0 %vm751_vm0, %v6958_v26  ;;  %v5348_v12 = vld [vmem:[%s6939_s21 + $0x3c] sm:$0xf] }
  0x39   : > { %v5160_v25 = vcombine.low %v329_v11, %v339_v19  ;;  %v2140_v34 = vor.u32 %v2139_v20, %v2135_v9  ;;  %v352_v35 = vrot.slane %v350_v23, 5  ;;  %v354_v37 = vshrl.u32 %v223_v7, 16  ;;  %v7069_v20 = vld [vmem:[%s6939_s21 + $0x40] sm:$0xf] }
  0x3a   : > { %v360_v36 = vshll.u32 %v252_v13, 16  ;;  %v2136_v38 = vsel %vm6965_vm4, %v2131_v27, %v2135_v9  ;;  %v347_v39 = vor.u32 %v346_v31, %v343_v29  ;;  %v2148_v42 = vshrl.u32 %v5345_v24, 16 }
  0x3b   : > { %6019 = vmatprep.mubr.msk.bf16.mxu1 %vm702_vm3, %v5160_v25  ;;  %v2151_v43 = vshll.u32 %v5345_v24, 16  ;;  %v2141_v44 = vrot.slane %v2140_v34, 4  ;;  %v356_v45 = vrot.slane %v354_v37, 4  ;;  %v2157_v26 = vshll.u32 %v7044_v33, 16  ;;  %v7074_v34 = vld [vmem:[%s6939_s21 + $0x44] sm:$0x1] }
  0x3c   : > { %v362_v47 = vrot.slane %v360_v36, 5  ;;  %v348_v48 = vrot.slane %v347_v39, 4  ;;  %v2150_v49 = vrot.slane %v2148_v42, 4  ;;  %v2161_v51 = vshrl.u32 %v7044_v33, 16  ;;  %v226_v42 = vld [vmem:[%s6939_s21 + $0x3c] sm:$0xf] }
  0x3d   : > { %v2153_v50 = vrot.slane %v2151_v43, 5  ;;  %v2146_v53 = vsel %vm6965_vm4, %v2141_v44, %v2145_v21  ;;  %v357_v55 = vor.u32 %v356_v45, %v352_v35  ;;  %v2159_v56 = vrot.slane %v2157_v26, 5  ;;  %v227_v26 = vld [vmem:[%s6939_s21 + $0x40] sm:$0xf] }
  0x3e   : > { %v2167_v57 = vshll.u32 %v7052_v40, 16  ;;  %v5387_v59 = vcombine.low %v2136_v38, %v2146_v53  ;;  %v353_v61 = vsel %vm6965_vm4, %v348_v48, %v352_v35  ;;  %v2163_v2 = vrot.slane %v2161_v51, 4 }
  0x3f   : > { %v2154_v0 = vor.u32 %v2153_v50, %v2150_v49  ;;  %v358_v5 = vrot.slane %v357_v55, 4  ;;  %v365_v7 = vshrl.u32 %v224_v52, 16  ;;  %v368_v8 = vshll.u32 %v224_v52, 16 }
  0x40   : > { %v2169_v6 = vrot.slane %v2167_v57, 5  ;;  %6155 = vmatprep.mubr.msk.bf16.mxu0 %vm702_vm3, %v5387_v59  ;;  %v2164_v17 = vor.u32 %v2163_v2, %v2159_v56  ;;  %v374_v10 = vshll.u32 %v225_v58, 16  ;;  %v378_v11 = vshrl.u32 %v225_v58, 16  ;;  %v5351_v2 = vld [vmem:[%s6939_s21 + $0x48] sm:$0xf] }
  0x41   : > { %v2155_v9 = vrot.slane %v2154_v0, 4  ;;  %v363_v13 = vsel %vm6965_vm4, %v358_v5, %v362_v47  ;;  %v367_v14 = vrot.slane %v365_v7, 4  ;;  %v370_v18 = vrot.slane %v368_v8, 5  ;;  %v7092_v8 = vld [vmem:[%s6939_s21 + $0x4c] sm:$0xf] }
  0x42   : > { %v384_v19 = vshll.u32 %v253_v4, 16  ;;  %v5161_v21 = vcombine.low %v353_v61, %v363_v13  ;;  %v2165_v24 = vrot.slane %v2164_v17, 4  ;;  %v376_v25 = vrot.slane %v374_v10, 5  ;;  %v254_v61 = vld [vmem:[%s6939_s21 + $0x44] sm:$0x1] }
  0x43   : > { %v2160_v23 = vsel %vm6965_vm4, %v2155_v9, %v2159_v56  ;;  %v371_v27 = vor.u32 %v370_v18, %v367_v14  ;;  %v380_v29 = vrot.slane %v378_v11, 4  ;;  %v2172_v35 = vshrl.u32 %v5348_v12, 16 }
  0x44   : > { %v386_v31 = vrot.slane %v384_v19, 5  ;;  %6020 = vmatmul.mubr.msk.bf16.gmra.mrb[4].mxu1 %vm702_vm3, %v5161_v21  ;;  %v2170_v37 = vsel %vm6965_vm4, %v2165_v24, %v2169_v6  ;;  %v2175_v36 = vshll.u32 %v5348_v12, 16  ;;  %v2181_v38 = vshll.u32 %v7069_v20, 16 }
  0x45   : > { %v2185_v39 = vshrl.u32 %v7069_v20, 16  ;;  %v5388_v43 = vcombine.low %v2160_v23, %v2170_v37  ;;  %v372_v44 = vrot.slane %v371_v27, 4  ;;  %v381_v45 = vor.u32 %v380_v29, %v376_v25  ;;  %v7100_v23 = vld [vmem:[%s6939_s21 + $0x50] sm:$0x1]  ;;  %v7104_v27 = vld [vmem:[%s6939_s21 + $0x48] sm:$0xf] }
  0x46   : > { %v2174_v47 = vrot.slane %v2172_v35, 4  ;;  %v2177_v48 = vrot.slane %v2175_v36, 5  ;;  %v2183_v49 = vrot.slane %v2181_v38, 5  ;;  %v2191_v51 = vshll.u32 %v7074_v34, 16  ;;  %v7107_v36 = vld [vmem:[%s6939_s21 + $0x4c] sm:$0xf] }
  0x47   : > { %v2187_v50 = vrot.slane %v2185_v39, 4  ;;  %6156 = vmatmul.mubr.msk.bf16.gmra.mrb[4].mxu0 %vm702_vm3, %v5388_v43  ;;  %v377_v52 = vsel %vm6965_vm4, %v372_v44, %v376_v25  ;;  %v382_v53 = vrot.slane %v381_v45, 4  ;;  %v389_v55 = vshrl.u32 %v226_v42, 16 }
  0x48   : > { %v392_v56 = vshll.u32 %v226_v42, 16  ;;  %v2178_v57 = vor.u32 %v2177_v48, %v2174_v47  ;;  %v2193_v59 = vrot.slane %v2191_v51, 5  ;;  %v398_v0 = vshll.u32 %v227_v26, 16 }
  0x49   : > { %v2188_v58 = vor.u32 %v2187_v50, %v2183_v49  ;;  %v387_v4 = vsel %vm6965_vm4, %v382_v53, %v386_v31  ;;  %v391_v5 = vrot.slane %v389_v55, 4  ;;  %v402_v7 = vshrl.u32 %v227_v26, 16  ;;  %v255_v26 = vld [vmem:[%s6939_s21 + $0x50] sm:$0x1]  ;;  %v5354_v53 = vld [vmem:[%s6939_s21 + $0x54] sm:$0xf] }
  0x4a   : > { %v394_v6 = vrot.slane %v392_v56, 5  ;;  %v5162_v9 = vcombine.low %v377_v52, %v387_v4  ;;  %v2179_v17 = vrot.slane %v2178_v57, 4  ;;  %v400_v11 = vrot.slane %v398_v0, 5  ;;  %v7123_v4 = vld [vmem:[%s6939_s21 + $0x58] sm:$0xf] }
  0x4b   : > { %v2189_v10 = vrot.slane %v2188_v58, 4  ;;  %v404_v13 = vrot.slane %v402_v7, 4  ;;  %v408_v14 = vshll.u32 %v254_v61, 16  ;;  %v2196_v18 = vshrl.u32 %v5351_v2, 16 }
  0x4c   : > { %v395_v12 = vor.u32 %v394_v6, %v391_v5  ;;  %6023 = vmatprep.mubr.msk.bf16.mxu1 %vm702_vm3, %v5162_v9  ;;  %v2184_v19 = vsel %vm6965_vm4, %v2179_v17, %v2183_v49  ;;  %v2199_v24 = vshll.u32 %v5351_v2, 16  ;;  %v2205_v25 = vshll.u32 %v7092_v8, 16 }
  0x4d   : > { %v2194_v21 = vsel %vm6965_vm4, %v2189_v10, %v2193_v59  ;;  %v405_v35 = vor.u32 %v404_v13, %v400_v11  ;;  %v410_v37 = vrot.slane %v408_v14, 5  ;;  %v2198_v38 = vrot.slane %v2196_v18, 4 }
  0x4e   : > { %v5389_v29 = vcombine.low %v2184_v19, %v2194_v21  ;;  %v396_v31 = vrot.slane %v395_v12, 4  ;;  %v2201_v39 = vrot.slane %v2199_v24, 5  ;;  %v2207_v42 = vrot.slane %v2205_v25, 5  ;;  %v7129_v12 = vld [vmem:[%s6939_s21 + $0x5c] sm:$0x1] }
  0x4f   : > { %v2209_v43 = vshrl.u32 %v7092_v8, 16  ;;  %v406_v45 = vrot.slane %v405_v35, 4  ;;  %v2215_v47 = vshll.u32 %v7100_v23, 16  ;;  %v413_v48 = vshrl.u32 %v7104_v27, 16  ;;  %v7133_v24 = vld [vmem:[%s6939_s21 + $0x54] sm:$0xf] }
  0x50   : > { %6159 = vmatprep.mubr.msk.bf16.mxu0 %vm702_vm3, %v5389_v29  ;;  %v401_v44 = vsel %vm6965_vm4, %v396_v31, %v400_v11  ;;  %v2202_v49 = vor.u32 %v2201_v39, %v2198_v38  ;;  %v416_v51 = vshll.u32 %v7104_v27, 16  ;;  %v422_v52 = vshll.u32 %v7107_v36, 16 }
  0x51   : > { %v2211_v50 = vrot.slane %v2209_v43, 4  ;;  %v411_v55 = vsel %vm6965_vm4, %v406_v45, %v410_v37  ;;  %v2217_v56 = vrot.slane %v2215_v47, 5  ;;  %v415_v57 = vrot.slane %v413_v48, 4  ;;  %v7139_v37 = vld [vmem:[%s6939_s21 + $0x58] sm:$0xf] }
  0x52   : > { %v426_v58 = vshrl.u32 %v7107_v36, 16  ;;  %v5163_v59 = vcombine.low %v401_v44, %v411_v55  ;;  %v2203_v61 = vrot.slane %v2202_v49, 4  ;;  %v418_v2 = vrot.slane %v416_v51, 5 }
  0x53   : > { %v2212_v0 = vor.u32 %v2211_v50, %v2207_v42  ;;  %v424_v5 = vrot.slane %v422_v52, 5  ;;  %v432_v7 = vshll.u32 %v255_v26, 16  ;;  %v2220_v9 = vshrl.u32 %v5354_v53, 16  ;;  %v256_v26 = vld [vmem:[%s6939_s21 + $0x5c] sm:$0x1] }
  0x54   : > { %v428_v6 = vrot.slane %v426_v58, 4  ;;  %6024 = vmatmul.mubr.msk.bf16.gmra.mrb[8].mxu1 %vm702_vm3, %v5163_v59  ;;  %v2208_v17 = vsel %vm6965_vm4, %v2203_v61, %v2207_v42  ;;  %v419_v11 = vor.u32 %v418_v2, %v415_v57  ;;  %v2223_v13 = vshll.u32 %v5354_v53, 16  ;;  %v5357_v53 = vld [vmem:[%s6939_s21 + $0x60] sm:$0xf]  ;;  %v7153_v59 = vld [vmem:[%s6939_s21 + $0x64] sm:$0xf] }
  0x55   : > { %v2213_v10 = vrot.slane %v2212_v0, 4  ;;  %v434_v18 = vrot.slane %v432_v7, 5  ;;  %v2222_v19 = vrot.slane %v2220_v9, 4  ;;  %v2229_v21 = vshll.u32 %v7123_v4, 16  ;;  %v7160_v9 = vld [vmem:[%s6939_s21 + $0x68] sm:$0x1] }
  0x56   : > { %v429_v14 = vor.u32 %v428_v6, %v424_v5  ;;  %v420_v29 = vrot.slane %v419_v11, 4  ;;  %v2225_v31 = vrot.slane %v2223_v13, 5  ;;  %v2233_v35 = vshrl.u32 %v7123_v4, 16 }
  0x57   : > { %v2218_v25 = vsel %vm6965_vm4, %v2213_v10, %v2217_v56  ;;  %v2231_v42 = vrot.slane %v2229_v21, 5  ;;  %v2239_v43 = vshll.u32 %v7129_v12, 16  ;;  %v437_v48 = vshrl.u32 %v7133_v24, 16 }
  0x58   : > { %v5390_v38 = vcombine.low %v2208_v17, %v2218_v25  ;;  %v430_v39 = vrot.slane %v429_v14, 4  ;;  %v425_v44 = vsel %vm6965_vm4, %v420_v29, %v424_v5  ;;  %v2226_v45 = vor.u32 %v2225_v31, %v2222_v19  ;;  %v7164_v19 = vld [vmem:[%s6939_s21 + $0x60] sm:$0xf] }
  0x59   : > { %v2235_v47 = vrot.slane %v2233_v35, 4  ;;  %v2241_v50 = vrot.slane %v2239_v43, 5  ;;  %v440_v51 = vshll.u32 %v7133_v24, 16  ;;  %v446_v52 = vshll.u32 %v7139_v37, 16  ;;  %v7170_v35 = vld [vmem:[%s6939_s21 + $0x64] sm:$0xf] }
  0x5a   : > { %6160 = vmatmul.mubr.msk.bf16.gmra.mrb[8].mxu0 %vm702_vm3, %v5390_v38  ;;  %v435_v49 = vsel %vm6965_vm4, %v430_v39, %v434_v18  ;;  %v2227_v56 = vrot.slane %v2226_v45, 4  ;;  %v439_v58 = vrot.slane %v437_v48, 4  ;;  %v450_v2 = vshrl.u32 %v7139_v37, 16 }
  0x5b   : > { %v5164_v55 = vcombine.low %v425_v44, %v435_v49  ;;  %v2236_v57 = vor.u32 %v2235_v47, %v2231_v42  ;;  %v442_v61 = vrot.slane %v440_v51, 5  ;;  %v448_v0 = vrot.slane %v446_v52, 5 }
  0x5c   : > { %v456_v5 = vshll.u32 %v256_v26, 16  ;;  %v2232_v6 = vsel %vm6965_vm4, %v2227_v56, %v2231_v42  ;;  %v2244_v17 = vshrl.u32 %v5357_v53, 16  ;;  %v2247_v10 = vshll.u32 %v5357_v53, 16 }
  0x5d   : > { %6027 = vmatprep.mubr.msk.bf16.mxu1 %vm702_vm3, %v5164_v55  ;;  %v2237_v7 = vrot.slane %v2236_v57, 4  ;;  %v443_v11 = vor.u32 %v442_v61, %v439_v58  ;;  %v452_v13 = vrot.slane %v450_v2, 4  ;;  %v2253_v18 = vshll.u32 %v7153_v59, 16  ;;  %v5417_v58 = vld [vmem:[%s6939_s21 + $0xc] sm:$0xe] }
  0x5e   : > { %v458_v14 = vrot.slane %v456_v5, 5  ;;  %v2246_v25 = vrot.slane %v2244_v17, 4  ;;  %v2249_v29 = vrot.slane %v2247_v10, 5  ;;  %v2257_v31 = vshrl.u32 %v7153_v59, 16 }
  0x5f   : > { %v2242_v21 = vsel %vm6965_vm4, %v2237_v7, %v2241_v50  ;;  %v444_v39 = vrot.slane %v443_v11, 4  ;;  %v453_v42 = vor.u32 %v452_v13, %v448_v0  ;;  %v2255_v43 = vrot.slane %v2253_v18, 5  ;;  %v257_v50 = vld [vmem:[%s6939_s21 + $0x68] sm:$0x1] }
  0x60   : > { %v5391_v38 = vcombine.low %v2232_v6, %v2242_v21  ;;  %v2250_v44 = vor.u32 %v2249_v29, %v2246_v25  ;;  %v2259_v45 = vrot.slane %v2257_v31, 4  ;;  %v2263_v47 = vshll.u32 %v7160_v9, 16  ;;  %v7198_v29 = vld [vmem:[%s6939_s21 + $0x70] sm:$0xf] }
  0x61   : > { %v461_v26 = vshrl.u32 %v7164_v19, 16  ;;  %v449_v48 = vsel %vm6965_vm4, %v444_v39, %v448_v0  ;;  %v454_v49 = vrot.slane %v453_v42, 4  ;;  %v464_v51 = vshll.u32 %v7164_v19, 16  ;;  %v7185_v0 = vld [vmem:[%s6939_s21 + $0x6c] sm:$0xf] }
  0x62   : > { %6163 = vmatprep.mubr.msk.bf16.mxu0 %vm702_vm3, %v5391_v38  ;;  %v470_v52 = vshll.u32 %v7170_v35, 16  ;;  %v2251_v53 = vrot.slane %v2250_v44, 4  ;;  %v2260_v55 = vor.u32 %v2259_v45, %v2255_v43  ;;  %v2265_v56 = vrot.slane %v2263_v47, 5 }
  0x63   : > { %v463_v57 = vrot.slane %v461_v26, 4  ;;  %v459_v61 = vsel %vm6965_vm4, %v454_v49, %v458_v14  ;;  %v466_v2 = vrot.slane %v464_v51, 5  ;;  %v474_v6 = vshrl.u32 %v7170_v35, 16  ;;  %v258_v26 = vld [vmem:[%s6939_s21 + $0x74] sm:$0x1] }
  0x64   : > { %v472_v5 = vrot.slane %v470_v52, 5  ;;  %v5165_v7 = vcombine.low %v449_v48, %v459_v61  ;;  %v2256_v17 = vsel %vm6965_vm4, %v2251_v53, %v2255_v43  ;;  %v2261_v10 = vrot.slane %v2260_v55, 4  ;;  %v5418_v48 = vld [vmem:[%s6939_s21 + $0x18] sm:$0xe] }
  0x65   : > { %v480_v11 = vshll.u32 %v257_v50, 16  ;;  %v467_v14 = vor.u32 %v466_v2, %v463_v57  ;;  %v476_v18 = vrot.slane %v474_v6, 4  ;;  %v5433_v21 = vrot.slane %v5417_v58, 9  ;;  %v7217_v53 = vld [vmem:[%s6939_s21 + $0x78] sm:$0xf] }
  0x66   : > { %v2821_v25 = vrot.slane %v2819_v62, 4  ;;  %6028 = vmatmul.mubr.msk.bf16.gmra.mrb[12].mxu1 %vm702_vm3, %v5165_v7  ;;  %v2266_v31 = vsel %vm6965_vm4, %v2261_v10, %v2265_v56  ;;  %v485_v39 = vshrl.u32 %v7185_v0, 16  ;;  %v488_v42 = vshll.u32 %v7185_v0, 16  ;;  %v259_v57 = vld [vmem:[%s6939_s21 + $0x80] sm:$0x1] }
  0x67   : > { %v482_v38 = vrot.slane %v480_v11, 5  ;;  %v5392_v43 = vcombine.low %v2256_v17, %v2266_v31  ;;  %v468_v44 = vrot.slane %v467_v14, 4  ;;  %v477_v45 = vor.u32 %v476_v18, %v472_v5  ;;  %v5419_v10 = vld [vmem:[%s6939_s21 + $0x24] sm:$0xe] }
  0x68   : > { %v2820_v47 = vsel %vm7191_vm7, %v5433_v21, %v2819_v62  ;;  %v2823_v49 = vsel %vm7191_vm7, %v2821_v25, %v2822_v63  ;;  %v487_v50 = vrot.slane %v485_v39, 4  ;;  %v490_v51 = vrot.slane %v488_v42, 5  ;;  %v7243_v39 = vld [vmem:[%s6939_s21 + $0x84] sm:$0xf] }
  0x69   : > { %v494_v52 = vshll.u32 %v7198_v29, 16  ;;  %6164 = vmatmul.mubr.msk.bf16.gmra.mrb[12].mxu0 %vm702_vm3, %v5392_v43  ;;  %v473_v15 = vsel %vm6965_vm4, %v468_v44, %v472_v5  ;;  %v478_v62 = vrot.slane %v477_v45, 4  ;;  %v5450_v55 = vcombine.low %v2820_v47, %v2823_v49  ;;  %v7251_v43 = vld [vmem:[%s6939_s21 + $0x88] sm:$0xf] }
  0x6a   : > { %v498_v56 = vshrl.u32 %v7198_v29, 16  ;;  %v491_v63 = vor.u32 %v490_v51, %v487_v50  ;;  %v504_v61 = vshll.u32 %v258_v26, 16  ;;  %v5434_v2 = vrot.slane %v5418_v48, 9 }
  0x6b   : > { %v496_v58 = vrot.slane %v494_v52, 5  ;;  %v483_v6 = vsel %vm6965_vm4, %v478_v62, %v482_v38  ;;  %6185 = vmatprep.mubr.msk.bf16.mxu0 %vm702_vm3, %v5450_v55  ;;  %v2830_v5 = vsel %vm7191_vm7, %v7008_v30, %v2829_v28  ;;  %v509_v17 = vshrl.u32 %v7217_v53, 16  ;;  %v260_v52 = vld [vmem:[%s6939_s21 + $0x8c] sm:$0x1] }
  0x6c   : > { %v500_v7 = vrot.slane %v498_v56, 4  ;;  %v5166_v11 = vcombine.low %v473_v15, %v483_v6  ;;  %v492_v14 = vrot.slane %v491_v63, 4  ;;  %v506_v18 = vrot.slane %v504_v61, 5 }
  0x6d   : > { %v2827_v21 = vsel %vm7191_vm7, %v5434_v2, %v2826_v22  ;;  %v511_v38 = vrot.slane %v509_v17, 4  ;;  %v512_v1 = vshll.u32 %v7217_v53, 16  ;;  %v518_v30 = vshll.u32 %v7224_v16, 16  ;;  %v7256_v22 = vld [vmem:[%s8783_s1 + $0x1c] sm:$0xf] }
  0x6e   : > { %v501_v25 = vor.u32 %v500_v7, %v496_v58  ;;  %v5451_v31 = vcombine.low %v2827_v21, %v2830_v5  ;;  %6031 = vmatprep.mubr.msk.bf16.mxu1 %vm702_vm3, %v5166_v11  ;;  %v497_v28 = vsel %vm6965_vm4, %v492_v14, %v496_v58  ;;  %v522_v60 = vshrl.u32 %v7224_v16, 16  ;;  %v7275_v5 = vld [vmem:[%s6939_s21 + $0x90] sm:$0xf] }
  0x6f   : > { %v528_v42 = vshll.u32 %v259_v57, 16  ;;  %v514_v45 = vrot.slane %v512_v1, 5  ;;  %v5435_v47 = vrot.slane %v5419_v10, 9  ;;  %v2833_v26 = vrot.slane %v7015_v46, 5  ;;  %v5420_v57 = vld [vmem:[%s6939_s21 + $0x30] sm:$0xe] }
  0x70   : > { %v502_v44 = vrot.slane %v501_v25, 4  ;;  %v520_v48 = vrot.slane %v518_v30, 5  ;;  %v524_v49 = vrot.slane %v522_v60, 4  ;;  %v2836_v51 = vrot.slane %v7024_v54, 5  ;;  %v7287_v30 = vld [vmem:[%s6939_s21 + $0x94] sm:$0xf] }
  0x71   : > { %v530_v50 = vrot.slane %v528_v42, 5  ;;  %6186 = vmatmul.mubr.msk.bf16.vlgmr.msra.gmra.mrb[0].mxu0 %vm702_vm3, %v5451_v31  ;;  %v515_v62 = vor.u32 %v514_v45, %v511_v38  ;;  %v2834_v55 = vsel %vm7191_vm7, %v5435_v47, %v2833_v26  ;;  %v2835_v56 = vrot.slane %v2833_v26, 4  ;;  %v261_v60 = vld [vmem:[%s6939_s21 + $0x98] sm:$0x1]  ;;  %v5421_v26 = vld [vmem:[%s6939_s21 + $0x3c] sm:$0xe] }
  0x72   : > { %v507_v15 = vsel %vm6965_vm4, %v502_v44, %v506_v18  ;;  %6218 = vmatpush3.bf16.msra.mxu0 %v6975_v41  ;;  %v525_v46 = vor.u32 %v524_v49, %v520_v48  ;;  %v533_v58 = vshrl.u32 %v7243_v39, 16  ;;  %v536_v54 = vshll.u32 %v7243_v39, 16 }
  0x73   : > { %v5167_v63 = vcombine.low %v497_v28, %v507_v15  ;;  %v516_v61 = vrot.slane %v515_v62, 4  ;;  %v2837_v2 = vsel %vm7191_vm7, %v2835_v56, %v2836_v51  ;;  %v542_v6 = vshll.u32 %v7251_v43, 16  ;;  %6585 = vmatprep.subr.msk.bf16.mxu0 %vm751_vm0, %v7256_v22 }
  0x74   : > { %v546_v7 = vshrl.u32 %v7251_v43, 16  ;;  %v526_v41 = vrot.slane %v525_v46, 4  ;;  %v5452_v17 = vcombine.low %v2834_v55, %v2837_v2  ;;  %v535_v10 = vrot.slane %v533_v58, 4  ;;  %v7307_v46 = vld [vmem:[%s6939_s21 + $0xa0] sm:$0xf] }
  0x75   : > { %6032 = vmatmul.mubr.msk.bf16.gmra.mrb[16].mxu1 %vm702_vm3, %v5167_v63  ;;  %v538_v11 = vrot.slane %v536_v54, 5  ;;  %v521_v14 = vsel %vm6965_vm4, %v516_v61, %v520_v48  ;;  %v544_v18 = vrot.slane %v542_v6, 5  ;;  %v552_v25 = vshll.u32 %v260_v52, 16  ;;  %v7296_v52 = vld [vmem:[%s6939_s21 + $0x9c] sm:$0xf] }
  0x76   : > { %v548_v21 = vrot.slane %v546_v7, 4  ;;  %v531_v31 = vsel %vm6965_vm4, %v526_v41, %v530_v50  ;;  %6189 = vmatprep.mubr.msk.bf16.mxu0 %vm702_vm3, %v5452_v17  ;;  %v5436_v1 = vrot.slane %v5420_v57, 9  ;;  %v2840_v28 = vrot.slane %v7044_v33, 5 }
  0x77   : > { %v539_v38 = vor.u32 %v538_v11, %v535_v10  ;;  %v5168_v42 = vcombine.low %v521_v14, %v531_v31  ;;  %v554_v45 = vrot.slane %v552_v25, 5  ;;  %v2843_v47 = vrot.slane %v7052_v40, 5  ;;  %v262_v10 = vld [vmem:[%s6939_s21 + $0xa4] sm:$0x1]  ;;  %v5422_v11 = vld [vmem:[%s6939_s21 + $0x48] sm:$0xe] }
  0x78   : > { %v549_v44 = vor.u32 %v548_v21, %v544_v18  ;;  %v2841_v49 = vsel %vm7191_vm7, %v5436_v1, %v2840_v28  ;;  %v2842_v50 = vrot.slane %v2840_v28, 4  ;;  %v557_v51 = vshrl.u32 %v7275_v5, 16 }
  0x79   : > { %v540_v48 = vrot.slane %v539_v38, 4  ;;  %6035 = vmatprep.mubr.msk.bf16.mxu1 %vm702_vm3, %v5168_v42  ;;  %v560_v15 = vshll.u32 %v7275_v5, 16  ;;  %v566_v62 = vshll.u32 %v7287_v30, 16  ;;  %v570_v40 = vshrl.u32 %v7287_v30, 16 }
  0x7a   : > { %v550_v33 = vrot.slane %v549_v44, 4  ;;  %v2844_v56 = vsel %vm7191_vm7, %v2842_v50, %v2843_v47  ;;  %v559_v57 = vrot.slane %v557_v51, 4  ;;  %v576_v63 = vshll.u32 %v261_v60, 16 }
  0x7b   : > { %v545_v55 = vsel %vm6965_vm4, %v540_v48, %v544_v18  ;;  %v5453_v54 = vcombine.low %v2841_v49, %v2844_v56  ;;  %v562_v61 = vrot.slane %v560_v15, 5  ;;  %v568_v2 = vrot.slane %v566_v62, 5  ;;  %v7333_v56 = vld [vmem:[%s6939_s21 + $0xac] sm:$0xf] }
  0x7c   : > { %v555_v58 = vsel %vm6965_vm4, %v550_v33, %v554_v45  ;;  %v572_v7 = vrot.slane %v570_v40, 4  ;;  %v578_v41 = vrot.slane %v576_v63, 5  ;;  %v5437_v17 = vrot.slane %v5421_v26, 9  ;;  %v7328_v33 = vld [vmem:[%s6939_s21 + $0xa8] sm:$0xf] }
  0x7d   : > { %v5169_v6 = vcombine.low %v545_v55, %v555_v58  ;;  %6190 = vmatmul.mubr.msk.bf16.gmra.mrb[4].mxu0 %vm702_vm3, %v5453_v54  ;;  %v563_v14 = vor.u32 %v562_v61, %v559_v57  ;;  %v2847_v18 = vrot.slane %v7069_v20, 5  ;;  %v2850_v21 = vrot.slane %v7074_v34, 5  ;;  %v263_v61 = vld [vmem:[%s6939_s21 + $0xb0] sm:$0x1] }
  0x7e   : > { %v581_v25 = vshrl.u32 %v7296_v52, 16  ;;  %v573_v31 = vor.u32 %v572_v7, %v568_v2  ;;  %v584_v38 = vshll.u32 %v7296_v52, 16  ;;  %v590_v1 = vshll.u32 %v7307_v46, 16 }
  0x7f   : > { %6036 = vmatmul.mubr.msk.bf16.gmra.mrb[20].mxu1 %vm702_vm3, %v5169_v6  ;;  %v594_v28 = vshrl.u32 %v7307_v46, 16  ;;  %v564_v60 = vrot.slane %v563_v14, 4  ;;  %v2848_v42 = vsel %vm7191_vm7, %v5437_v17, %v2847_v18  ;;  %v2849_v20 = vrot.slane %v2847_v18, 4  ;;  %v7348_v14 = vld [vmem:[%s6939_s21 + $0xb4] sm:$0xf] }
  0x80   : > { %v583_v44 = vrot.slane %v581_v25, 4  ;;  %v574_v34 = vrot.slane %v573_v31, 4  ;;  %v586_v45 = vrot.slane %v584_v38, 5  ;;  %v592_v47 = vrot.slane %v590_v1, 5 }
  0x81   : > { %v596_v26 = vrot.slane %v594_v28, 4  ;;  %v569_v48 = vsel %vm6965_vm4, %v564_v60, %v568_v2  ;;  %v2851_v49 = vsel %vm7191_vm7, %v2849_v20, %v2850_v21  ;;  %v600_v50 = vshll.u32 %v262_v10, 16  ;;  %v5423_v2 = vld [vmem:[%s6939_s21 + $0x54] sm:$0xe] }
  0x82   : > { %v5438_v51 = vrot.slane %v5422_v11, 9  ;;  %v579_v15 = vsel %vm6965_vm4, %v574_v34, %v578_v41  ;;  %v5454_v62 = vcombine.low %v2848_v42, %v2851_v49  ;;  %v587_v40 = vor.u32 %v586_v45, %v583_v44  ;;  %v7357_v42 = vld [vmem:[%s6939_s21 + $0xb8] sm:$0xf]  ;;  %v264_v49 = vld [vmem:[%s6939_s21 + $0xbc] sm:$0x1] }
  0x83   : > { %v597_v55 = vor.u32 %v596_v26, %v592_v47  ;;  %v5170_v57 = vcombine.low %v569_v48, %v579_v15  ;;  %v602_v63 = vrot.slane %v600_v50, 5  ;;  %v2854_v58 = vrot.slane %v7092_v8, 5 }
  0x84   : > { %v2857_v54 = vrot.slane %v7100_v23, 5  ;;  %6193 = vmatprep.mubr.msk.bf16.mxu0 %vm702_vm3, %v5454_v62  ;;  %v588_v6 = vrot.slane %v587_v40, 4  ;;  %v605_v41 = vshrl.u32 %v7328_v33, 16  ;;  %v608_v17 = vshll.u32 %v7328_v33, 16 }
  0x85   : > { %v598_v7 = vrot.slane %v597_v55, 4  ;;  %6039 = vmatprep.mubr.msk.bf16.mxu1 %vm702_vm3, %v5170_v57  ;;  %v2855_v10 = vsel %vm7191_vm7, %v5438_v51, %v2854_v58  ;;  %v2856_v11 = vrot.slane %v2854_v58, 4  ;;  %v614_v8 = vshll.u32 %v7333_v56, 16  ;;  %v5424_v55 = vld [vmem:[%s6939_s21 + $0x60] sm:$0xe] }
  0x86   : > { %v618_v23 = vshrl.u32 %v7333_v56, 16  ;;  %v593_v18 = vsel %vm6965_vm4, %v588_v6, %v592_v47  ;;  %v607_v25 = vrot.slane %v605_v41, 4  ;;  %v610_v31 = vrot.slane %v608_v17, 5  ;;  %v5425_v6 = vld [vmem:[%s6939_s21 + $0x6c] sm:$0xe] }
  0x87   : > { %v603_v21 = vsel %vm6965_vm4, %v598_v7, %v602_v63  ;;  %v2858_v1 = vsel %vm7191_vm7, %v2856_v11, %v2857_v54  ;;  %v616_v28 = vrot.slane %v614_v8, 5  ;;  %v624_v34 = vshll.u32 %v263_v61, 16  ;;  %v5361_v11 = vld [vmem:[%s6939_s21 + $0x70] sm:$0xf]  ;;  %v5362_v8 = vld [vmem:[%s6939_s21 + $0x74] sm:$0x1] }
  0x88   : > { %v5171_v38 = vcombine.low %v593_v18, %v603_v21  ;;  %v620_v60 = vrot.slane %v618_v23, 4  ;;  %v5455_v20 = vcombine.low %v2855_v10, %v2858_v1  ;;  %v611_v44 = vor.u32 %v610_v31, %v607_v25 }
  0x89   : > { %v5439_v45 = vrot.slane %v5423_v2, 9  ;;  %v2861_v26 = vrot.slane %v7123_v4, 5  ;;  %v2864_v48 = vrot.slane %v7129_v12, 5  ;;  %v629_v50 = vshrl.u32 %v7348_v14, 16 }
  0x8a   : > { %6040 = vmatmul.mubr.msk.bf16.gmra.mrb[24].mxu1 %vm702_vm3, %v5171_v38  ;;  %v621_v47 = vor.u32 %v620_v60, %v616_v28  ;;  %6194 = vmatmul.mubr.msk.bf16.gmra.mrb[8].mxu0 %vm702_vm3, %v5455_v20  ;;  %v612_v51 = vrot.slane %v611_v44, 4  ;;  %v626_v15 = vrot.slane %v624_v34, 5  ;;  %v632_v62 = vshll.u32 %v7348_v14, 16 }
  0x8b   : > { %v638_v40 = vshll.u32 %v7357_v42, 16  ;;  %v2862_v4 = vsel %vm7191_vm7, %v5439_v45, %v2861_v26  ;;  %v2863_v12 = vrot.slane %v2861_v26, 4  ;;  %v631_v63 = vrot.slane %v629_v50, 4 }
  0x8c   : > { %v622_v57 = vrot.slane %v621_v47, 4  ;;  %v617_v58 = vsel %vm6965_vm4, %v612_v51, %v616_v28  ;;  %v634_v54 = vrot.slane %v632_v62, 5  ;;  %v642_v2 = vshrl.u32 %v7357_v42, 16  ;;  %v5426_v47 = vld [vmem:[%s6939_s21 + $0x78] sm:$0xe] }
  0x8d   : > { %v640_v61 = vrot.slane %v638_v40, 5  ;;  %v2865_v41 = vsel %vm7191_vm7, %v2863_v12, %v2864_v48  ;;  %v648_v17 = vshll.u32 %v264_v49, 16  ;;  %v5440_v10 = vrot.slane %v5424_v55, 9  ;;  %v6693_v51 = vld [vmem:[%s6939_s21] sm:$0xf] }
  0x8e   : > { %v627_v7 = vsel %vm6965_vm4, %v622_v57, %v626_v15  ;;  %v5456_v18 = vcombine.low %v2862_v4, %v2865_v41  ;;  %v635_v21 = vor.u32 %v634_v54, %v631_v63  ;;  %v644_v25 = vrot.slane %v642_v2, 4  ;;  %v7395_v15 = vld [vmem:[%s6939_s21 + $0x4] sm:$0xf]  ;;  %v7399_v40 = vld [vmem:[%s6939_s21 + $0x7c] sm:$0xf] }
  0x8f   : > { %v5172_v23 = vcombine.low %v617_v58, %v627_v7  ;;  %v650_v31 = vrot.slane %v648_v17, 5  ;;  %v2868_v38 = vrot.slane %v7153_v59, 5  ;;  %v2871_v1 = vrot.slane %v7160_v9, 5  ;;  %v7402_v55 = vld [vmem:[%s6939_s21 + $0x80] sm:$0x1] }
  0x90   : > { %v5441_v28 = vrot.slane %v5425_v6, 9  ;;  %6197 = vmatprep.mubr.msk.bf16.mxu0 %vm702_vm3, %v5456_v18  ;;  %v636_v60 = vrot.slane %v635_v21, 4  ;;  %v645_v20 = vor.u32 %v644_v25, %v640_v61  ;;  %v2875_v44 = vrot.slane %v5361_v11, 5  ;;  %v5367_v57 = vld [vmem:[%s6939_s21 + $0x88] sm:$0xf] }
  0x91   : > { %6043 = vmatprep.mubr.msk.bf16.mxu1 %vm702_vm3, %v5172_v23  ;;  %v2878_v34 = vrot.slane %v5362_v8, 5  ;;  %v2869_v45 = vsel %vm7191_vm7, %v5440_v10, %v2868_v38  ;;  %v2870_v59 = vrot.slane %v2868_v38, 4  ;;  %v5190_v62 = vcombine.low %v6693_v51, %v7395_v15  ;;  %v5368_v54 = vld [vmem:[%s6939_s21 + $0x8c] sm:$0x1]  ;;  %v5370_v17 = vld [vmem:[%s6939_s21 + $0x94] sm:$0xf] }
  0x92   : > { %v641_v9 = vsel %vm6965_vm4, %v636_v60, %v640_v61  ;;  %v646_v26 = vrot.slane %v645_v20, 4  ;;  %v2876_v48 = vsel %vm7191_vm7, %v5441_v28, %v2875_v44  ;;  %v2877_v49 = vrot.slane %v2875_v44, 4  ;;  %v5427_v61 = vld [vmem:[%s6939_s21 + $0x84] sm:$0xe]  ;;  %v5428_v23 = vld [vmem:[%s6939_s21 + $0x90] sm:$0xe] }
  0x93   : > { %v2872_v50 = vsel %vm7191_vm7, %v2870_v59, %v2871_v1  ;;  %v5442_v58 = vrot.slane %v5426_v47, 9  ;;  %v2882_v7 = vrot.slane %v7399_v40, 5  ;;  %v2885_v41 = vrot.slane %v7402_v55, 5  ;;  %v5371_v25 = vld [vmem:[%s6939_s21 + $0x98] sm:$0x1] }
  0x94   : > { %v651_v4 = vsel %vm6965_vm4, %v646_v26, %v650_v31  ;;  %v5457_v12 = vcombine.low %v2869_v45, %v2872_v50  ;;  %v2879_v63 = vsel %vm7191_vm7, %v2877_v49, %v2878_v34  ;;  %v5443_v10 = vrot.slane %v5427_v61, 9  ;;  %v5373_v31 = vld [vmem:[%s6939_s21 + $0xa0] sm:$0xf]  ;;  %v5374_v60 = vld [vmem:[%s6939_s21 + $0xa4] sm:$0x1] }
  0x95   : > { %v5173_v2 = vcombine.low %v641_v9, %v651_v4  ;;  %v5458_v6 = vcombine.low %v2876_v48, %v2879_v63  ;;  %v2889_v11 = vrot.slane %v5367_v57, 5  ;;  %v2892_v8 = vrot.slane %v5368_v54, 5  ;;  %v5429_v20 = vld [vmem:[%s6939_s21 + $0x9c] sm:$0xe]  ;;  %v6695_v44 = vld [vmem:[%s6939_s21 + $0xc] sm:$0xf] }
  0x96   : > { %6198 = vmatmul.mubr.msk.bf16.gmra.mrb[12].mxu0 %vm702_vm3, %v5457_v12  ;;  %v2883_v18 = vsel %vm7191_vm7, %v5442_v58, %v2882_v7  ;;  %v2884_v21 = vrot.slane %v2882_v7, 4  ;;  %v2896_v28 = vrot.slane %v5370_v17, 5  ;;  %v7429_v34 = vld [vmem:[%s6939_s21 + $0x10] sm:$0xf]  ;;  %v6697_v47 = vld [vmem:[%s6939_s21 + $0x18] sm:$0xf] }
  0x97   : > { %6044 = vmatmul.mubr.msk.bf16.gmra.mrb[28].mxu1 %vm702_vm3, %v5173_v2  ;;  %6201 = vmatprep.mubr.msk.bf16.mxu0 %vm702_vm3, %v5458_v6  ;;  %v2890_v38 = vsel %vm7191_vm7, %v5443_v10, %v2889_v11  ;;  %v2891_v1 = vrot.slane %v2889_v11, 4  ;;  %v5191_v45 = vcombine.low %v6695_v44, %v7429_v34  ;;  %v7436_v9 = vld [vmem:[%s6939_s21 + $0x1c] sm:$0xf]  ;;  %v5444_v48 = vrot.slane %v5428_v23, 9  ;;  %v5376_v57 = vld [vmem:[%s6939_s21 + $0xac] sm:$0xf] }
  0x98   : > { %6049 = vmatprep.mubr.msk.bf16.mxu1 %vm702_vm3, %v5190_v62  ;;  %v2886_v59 = vsel %vm7191_vm7, %v2884_v21, %v2885_v41  ;;  %v5192_v26 = vcombine.low %v6697_v47, %v7436_v9  ;;  %v2898_v51 = vrot.slane %v2896_v28, 4  ;;  %v2899_v62 = vrot.slane %v5371_v25, 5  ;;  %v6699_v54 = vld [vmem:[%s8783_s1 + $0x8] sm:$0xf]  ;;  %v5379_v2 = vld [vmem:[%s6939_s21 + $0xb8] sm:$0xf] }
  0x99   : > { %v5459_v49 = vcombine.low %v2883_v18, %v2886_v59  ;;  %v2893_v50 = vsel %vm7191_vm7, %v2891_v1, %v2892_v8  ;;  %v5445_v12 = vrot.slane %v5429_v20, 9  ;;  %v2903_v63 = vrot.slane %v5373_v31, 5  ;;  %v7451_v7 = vld [vmem:[%s8783_s1 + $0xc] sm:$0xf]  ;;  %v5377_v10 = vld [vmem:[%s6939_s21 + $0xb0] sm:$0x1] }
  0x9a   : > { %v5460_v4 = vcombine.low %v2890_v38, %v2893_v50  ;;  %v2906_v58 = vrot.slane %v5374_v60, 5  ;;  %v1470_v61 = vsel %vm751_vm0, %v6699_v54, 0  ;;  %v2897_v41 = vsel %vm7191_vm7, %v5444_v48, %v2896_v28  ;;  %v5430_v11 = vld [vmem:[%s6939_s21 + $0xa8] sm:$0xe]  ;;  %v5380_v25 = vld [vmem:[%s6939_s21 + $0xbc] sm:$0x1] }
  0x9b   : > { %v2905_v6 = vrot.slane %v2903_v63, 4  ;;  %v2900_v17 = vsel %vm7191_vm7, %v2898_v51, %v2899_v62  ;;  %v2910_v8 = vrot.slane %v5376_v57, 5  ;;  %v2904_v23 = vsel %vm7191_vm7, %v5445_v12, %v2903_v63  ;;  %v5431_v31 = vld [vmem:[%s6939_s21 + $0xb4] sm:$0xe]  ;;  %v6700_v38 = vld [vmem:[%s6939_s21 + $0x24] sm:$0xf] }
  0x9c   : > { %v2917_v21 = vrot.slane %v5379_v2, 5  ;;  %v7472_v1 = vld [vmem:[%s6939_s21 + $0x28] sm:$0xf]  ;;  %v5461_v60 = vcombine.low %v2897_v41, %v2900_v17  ;;  %v5446_v44 = vrot.slane %v5430_v11, 9  ;;  %v2913_v59 = vrot.slane %v5377_v10, 5 }
  0x9d   : > { %v2907_v18 = vsel %vm7191_vm7, %v2905_v6, %v2906_v58  ;;  %v5193_v28 = vcombine.low %v6700_v38, %v7472_v1  ;;  %v6702_v47 = vld [vmem:[%s6939_s21 + $0x30] sm:$0xf]  ;;  %v2920_v51 = vrot.slane %v5380_v25, 5  ;;  %v5382_v62 = vld [vmem:[%s6939_s21 + $0xc4] sm:$0xf]  ;;  %v2305_v25 = vshrl.u32 %v7399_v40, 16 }
  0x9e   : > { %6202 = vmatmul.mubr.msk.bf16.gmra.mrb[16].mxu0 %vm702_vm3, %v5459_v49  ;;  %v5462_v20 = vcombine.low %v2904_v23, %v2907_v18  ;;  %v5447_v49 = vrot.slane %v5431_v31, 9  ;;  %v2919_v50 = vrot.slane %v2917_v21, 4  ;;  %v2911_v57 = vsel %vm7191_vm7, %v5446_v44, %v2910_v8  ;;  %v5432_v12 = vld [vmem:[%s6939_s21 + $0xc0] sm:$0xe]  ;;  %v6704_v41 = vld [vmem:[%s6939_s21 + $0x3c] sm:$0xf] }
  0x9f   : > { %6050 = vmatmul.mubr.msk.bf16.vlgmr.msra.gmra.mrb[0].mxu1 %vm702_vm3, %v5191_v45  ;;  %6205 = vmatprep.mubr.msk.bf16.mxu0 %vm702_vm3, %v5460_v4  ;;  %v2912_v45 = vrot.slane %v2910_v8, 4  ;;  %v2924_v63 = vrot.slane %v5382_v62, 5  ;;  %v5448_v6 = vrot.slane %v5432_v12, 9  ;;  %v7497_v17 = vld [vmem:[%s6939_s21 + $0x40] sm:$0xf]  ;;  %v5196_v18 = vcombine.low %v7104_v27, %v7107_v36  ;;  %v6656_v62 = vld [vmem:[%s6939_s21 + $0x24] sm:$0xff]  }
  0xa0   : > { %6082 = vmatpush3.bf16.msra.mxu1 %v1470_v61  ;;  %6053 = vmatprep.mubr.msk.bf16.mxu1 %vm702_vm3, %v5192_v26  ;;  %v7477_v26 = vld [vmem:[%s6939_s21 + $0x34] sm:$0xf]  ;;  %v2918_v58 = vsel %vm7191_vm7, %v5447_v49, %v2917_v21  ;;  %v2921_v54 = vsel %vm7191_vm7, %v2919_v50, %v2920_v51  ;;  %v5383_v61 = vld [vmem:[%s6939_s21 + $0xc8] sm:$0x1]  ;;  %v5195_v10 = vcombine.low %v6704_v41, %v7497_v17  ;;  %v2301_v21 = vshll.u32 %v7399_v40, 16 }
  0xa1   : > { %6580 = vmatprep.subr.msk.bf16.mxu1 %vm751_vm0, %v7451_v7  ;;  %v5194_v48 = vcombine.low %v6702_v47, %v7477_v26  ;;  %v2914_v4 = vsel %vm7191_vm7, %v2912_v45, %v2913_v59  ;;  %v5464_v11 = vcombine.low %v2918_v58, %v2921_v54  ;;  %v2926_v8 = vrot.slane %v2924_v63, 4  ;;  %v1208_v45 = vld [vmem:[%s6939_s21] sm:$0xe]  ;;  %v1209_v59 = vld [vmem:[%s6939_s21 + $0xc] sm:$0xe] }
  0xa2   : > { %v5463_v2 = vcombine.low %v2911_v57, %v2914_v4  ;;  %v2927_v23 = vrot.slane %v5383_v61, 5  ;;  %v2925_v31 = vsel %vm7191_vm7, %v5448_v6, %v2924_v63  ;;  %v7512_v27 = vrot.slane %v2301_v21, 5  ;;  %v1212_v41 = vld [vmem:[%s6939_s21 + $0x30] sm:$0xe] }
  0xa3   : > { %v2307_v36 = vrot.slane %v2305_v25, 4  ;;  %v5198_v44 = vcombine.low %v7164_v19, %v7170_v35  ;;  %v2311_v47 = vshll.u32 %v7402_v55, 16  ;;  %v5222_v19 = vrot.slane %v1208_v45, 9 }
  0xa4   : > { %v2928_v38 = vsel %vm7191_vm7, %v2926_v8, %v2927_v23  ;;  %8807 = vst [vmem:[#allocation6_spill] sm:$0xff] %v7512_v27  ;;  %v5223_v35 = vrot.slane %v1209_v59, 9  ;;  %v1275_v4 = vrot.slane %v7436_v9, 5  ;;  %v1282_v12 = vrot.slane %v7472_v1, 5  ;;  %v1213_v8 = vld [vmem:[%s6939_s21 + $0x3c] sm:$0xe] }
  0xa5   : > { %v5465_v40 = vcombine.low %v2925_v31, %v2928_v38  ;;  %v2308_v49 = vor.u32 %v2307_v36, %v7512_v27  ;;  %v7532_v51 = vrot.slane %v2311_v47, 5  ;;  %v5199_v58 = vcombine.low %v7185_v0, %v7198_v29  ;;  %v1214_v31 = vld [vmem:[%s6939_s21 + $0x48] sm:$0xe]  ;;  %v6710_v59 = vld [vmem:[%s6939_s21 + $0x38] sm:$0x1] }
  0xa6   : > { %6206 = vmatmul.mubr.msk.bf16.gmra.mrb[20].mxu0 %vm702_vm3, %v5461_v60  ;;  %v5197_v60 = vcombine.low %v7133_v24, %v7139_v37  ;;  %v6707_v24 = vld [vmem:[%s6939_s21 + $0x14] sm:$0x1]  ;;  %v4116_v54 = vsel %vm751_vm0, %v7256_v22, 0  ;;  %v5200_v61 = vcombine.low %v7217_v53, %v7224_v16  ;;  %v5201_v6 = vcombine.low %v7243_v39, %v7251_v43  ;;  %v6708_v16 = vld [vmem:[%s6939_s21 + $0x20] sm:$0x1] }
  0xa7   : > { %6054 = vmatmul.mubr.msk.bf16.gmra.mrb[4].mxu1 %vm702_vm3, %v5193_v28  ;;  %6209 = vmatprep.mubr.msk.bf16.mxu0 %vm702_vm3, %v5462_v20  ;;  %v1268_v28 = vrot.slane %v7429_v34, 5  ;;  %v6654_v20 = vld [vmem:[%s6939_s21 + $0x18] sm:$0xff]   ;;  %v6706_v34 = vld [vmem:[%s6939_s21 + $0x8] sm:$0x1]  ;;  %v1271_v37 = vrot.slane %v6707_v24, 5  ;;  %8808 = vst [vmem:[#allocation7_spill] sm:$0xff] %v7532_v51  ;;  %v5202_v9 = vcombine.low %v7275_v5, %v7287_v30 }
  0xa8   : > { %6057 = vmatprep.mubr.msk.bf16.mxu1 %vm702_vm3, %v5194_v48  ;;  %v1261_v48 = vrot.slane %v7395_v15, 5  ;;  %v1264_v50 = vrot.slane %v6706_v34, 5  ;;  %v1210_v15 = vld [vmem:[%s6939_s21 + $0x18] sm:$0xe]  ;;  %v7537_v63 = vrot.slane %v2308_v49, 4  ;;  %v1278_v22 = vrot.slane %v6708_v16, 5 }
  0xa9   : > { %v1270_v55 = vrot.slane %v1268_v28, 4  ;;  %v5224_v1 = vrot.slane %v1210_v15, 9  ;;  %v7559_v29 = vsel %vm7191_vm7, %v5223_v35, %v1268_v28  ;;  %v1284_v25 = vrot.slane %v1282_v12, 4  ;;  %v5547_v24 = vld [vmem:[%s6939_s21 + $0x18] sm:$0xf] }
  0xaa   : > { %v1263_v57 = vrot.slane %v1261_v48, 4  ;;  %8809 = vst [vmem:[#allocation8_spill] sm:$0xff] %v7537_v63  ;;  %v7555_v0 = vsel %vm7191_vm7, %v5222_v19, %v1261_v48  ;;  %v1292_v47 = vrot.slane %v6710_v59, 5  ;;  %v7596_v49 = vsel %vm751_vm0, %v7451_v7, 0  ;;  %v5548_v7 = vld [vmem:[%s6939_s21 + $0x1c] sm:$0xf] }
  0xab   : > { %v7563_v53 = vsel %vm7191_vm7, %v1270_v55, %v1271_v37  ;;  %v7600_v34 = vsel %vm7191_vm7, %v5224_v1, %v1275_v4  ;;  %v6660_v37 = vld [vmem:[%s6939_s21 + $0x3c] sm:$0xff]   ;;  %v5227_v35 = vrot.slane %v1213_v8, 9  ;;  %v6711_v55 = vld [vmem:[%s6939_s21 + $0x44] sm:$0x1]  ;;  %v3637_v8 = vshll.u32 %v5547_v24, 16 }
  0xac   : > { %v7574_v23 = vsel %vm7191_vm7, %v1263_v57, %v1264_v50  ;;  %v1215_v50 = vld [vmem:[%s6939_s21 + $0x54] sm:$0xe]  ;;  %v1299_v15 = vrot.slane %v6711_v55, 5  ;;  %v5551_v39 = vld [vmem:[%s6939_s21 + $0x28] sm:$0xf] }
  0xad   : > { %v6718_v5 = vld [vmem:[%s6939_s21 + $0x70] sm:$0xf] }
  0xae   : > { %6210 = vmatmul.mubr.msk.bf16.gmra.mrb[24].mxu0 %vm702_vm3, %v5463_v2  ;;  %v1211_v2 = vld [vmem:[%s6939_s21 + $0x24] sm:$0xe]  ;;  %v1324_v30 = vrot.slane %v6718_v5, 5 }
  0xaf   : > { %6058 = vmatmul.mubr.msk.bf16.gmra.mrb[8].mxu1 %vm702_vm3, %v5195_v10  ;;  %6213 = vmatprep.mubr.msk.bf16.mxu0 %vm702_vm3, %v5464_v11  ;;  %v1289_v10 = vrot.slane %v7477_v26, 5  ;;  %v6658_v11 = vld [vmem:[%s6939_s21 + $0x30] sm:$0xff]   ;;  %v7570_v26 = vld [vmem:[%s8783_s1 + $0x20] sm:$0xf]  ;;  %v5225_v21 = vrot.slane %v1211_v2, 9 }
  0xb0   : > { %6061 = vmatprep.mubr.msk.bf16.mxu1 %vm702_vm3, %v5196_v18  ;;  %v1277_v18 = vrot.slane %v1275_v4, 4  ;;  %v1326_v48 = vrot.slane %v1324_v30, 4 }
  0xb1   : > { %v1291_v45 = vrot.slane %v1289_v10, 4  ;;  %v7607_v19 = vsel %vm7191_vm7, %v5225_v21, %v1282_v12  ;;  %v3647_v21 = vshrl.u32 %v5548_v7, 16 }
  0xb2   : > { %v7616_v4 = vsel %vm7191_vm7, %v1277_v18, %v1278_v22  ;;  %v3634_v22 = vshrl.u32 %v5547_v24, 16  ;;  %v3643_v18 = vshll.u32 %v5548_v7, 16  ;;  %v5550_v24 = vld [vmem:[%s6939_s21 + $0x24] sm:$0xf] }
  0xb3   : > { %v7629_v1 = vsel %vm7191_vm7, %v1291_v45, %v1292_v47 }
  0xb4   : > { %v3636_v43 = vrot.slane %v3634_v22, 4  ;;  %v7671_v7 = vrot.slane %v3643_v18, 5  ;;  %v3661_v22 = vshll.u32 %v5550_v24, 16  ;;  %v3671_v18 = vshrl.u32 %v5551_v39, 16 }
  0xb6   : > { %6214 = vmatmul.mubr.msk.bf16.gmra.mrb[28].mxu0 %vm702_vm3, %v5465_v40  ;;  %v6709_v40 = vld [vmem:[%s6939_s21 + $0x2c] sm:$0x1]  ;;  %v3663_v27 = vrot.slane %v3661_v22, 5 }
  0xb7   : > { %6062 = vmatmul.mubr.msk.bf16.gmra.mrb[12].mxu1 %vm702_vm3, %v5197_v60  ;;  %6219 = vmatprep.mubr.msk.bf16.mxu0 %vm702_vm3, %v6654_v20  ;;  %v1285_v28 = vrot.slane %v6709_v40, 5  ;;  %v1296_v60 = vrot.slane %v7497_v17, 5  ;;  %v6714_v40 = vld [vmem:[%s6939_s21 + $0x50] sm:$0x1]  ;;  %v6719_v17 = vld [vmem:[%s6939_s21 + $0x74] sm:$0x1] }
  0xb8   : > { %6065 = vmatprep.mubr.msk.bf16.mxu1 %vm702_vm3, %v5198_v44  ;;  %v5226_v44 = vrot.slane %v1212_v41, 9  ;;  %v5229_v41 = vrot.slane %v1215_v50, 9  ;;  %v1216_v50 = vld [vmem:[%s6939_s21 + $0x60] sm:$0xe]  ;;  %v5552_v20 = vld [vmem:[%s6939_s21 + $0x2c] sm:$0x1] }
  0xb9   : > { %v1298_v12 = vrot.slane %v1296_v60, 4  ;;  %v7642_v45 = vsel %vm7191_vm7, %v5227_v35, %v1296_v60  ;;  %v6715_v35 = vld [vmem:[%s6939_s21 + $0x5c] sm:$0x1] }
  0xba   : > { %v7625_v2 = vsel %vm7191_vm7, %v5226_v44, %v1289_v10  ;;  %v1313_v55 = vrot.slane %v6715_v35, 5  ;;  %v1217_v35 = vld [vmem:[%s6939_s21 + $0x6c] sm:$0xe] }
  0xbb   : > { %v7646_v59 = vsel %vm7191_vm7, %v1298_v12, %v1299_v15  ;;  %v6716_v15 = vld [vmem:[%s6939_s21 + $0x64] sm:$0xf]  ;;  %v3649_v12 = vrot.slane %v3647_v21, 4  ;;  %v5231_v5 = vrot.slane %v1217_v35, 9 }
  0xbc   : > { %v6666_v21 = vld [vmem:[%s6939_s21 + $0x60] sm:$0xff]  }
  0xbe   : > { %6220 = vmatmul.mubr.msk.bf16.vlgmr.msra.gmra.mrb[0].mxu0 %vm702_vm3, %v6656_v62  ;;  %v6712_v62 = vld [vmem:[%s6939_s21 + $0x4c] sm:$0xf] }
  0xbf   : > { %6066 = vmatmul.mubr.msk.bf16.gmra.mrb[16].mxu1 %vm702_vm3, %v5199_v58  ;;  %6252 = vmatpush3.bf16.msra.mxu0 %v4116_v54  ;;  %v1303_v57 = vrot.slane %v6712_v62, 5  ;;  %v7620_v58 = vsel %vm7191_vm7, %v1284_v25, %v1285_v28  ;;  %v5228_v54 = vrot.slane %v1214_v31, 9  ;;  %v1306_v28 = vrot.slane %v6714_v40, 5 }
  0xc0   : > { %6069 = vmatprep.mubr.msk.bf16.mxu1 %vm702_vm3, %v5200_v61  ;;  %6223 = vmatprep.mubr.msk.bf16.mxu0 %vm702_vm3, %v6658_v11  ;;  %v6662_v61 = vld [vmem:[%s6939_s21 + $0x48] sm:$0xff]   ;;  %v6713_v11 = vld [vmem:[%s6939_s21 + $0x58] sm:$0xf]  ;;  %v1317_v62 = vrot.slane %v6716_v15, 5  ;;  %v5554_v15 = vld [vmem:[%s6939_s21 + $0x34] sm:$0xf] }
  0xc1   : > { %6586 = vmatprep.subr.msk.bf16.mxu0 %vm751_vm0, %v7570_v26  ;;  %v1310_v16 = vrot.slane %v6713_v11, 5  ;;  %v1305_v31 = vrot.slane %v1303_v57, 4  ;;  %v7650_v47 = vsel %vm7191_vm7, %v5228_v54, %v1303_v57  ;;  %v5549_v57 = vld [vmem:[%s6939_s21 + $0x20] sm:$0x1]  ;;  %v5553_v54 = vld [vmem:[%s6939_s21 + $0x30] sm:$0xf] }
  0xc2   : > { %v5230_v11 = vrot.slane %v1216_v50, 9  ;;  %v3685_v50 = vshll.u32 %v5553_v54, 16  ;;  %v3653_v25 = vshll.u32 %v5549_v57, 16  ;;  %v3691_v36 = vshll.u32 %v5554_v15, 16 }
  0xc3   : > { %v7661_v60 = vsel %vm7191_vm7, %v5229_v41, %v1310_v16  ;;  %v7677_v41 = vsel %vm7191_vm7, %v1305_v31, %v1306_v28  ;;  %v1319_v31 = vrot.slane %v1317_v62, 4  ;;  %v3682_v28 = vshrl.u32 %v5553_v54, 16 }
  0xc4   : > { %v7719_v35 = vrot.slane %v3691_v36, 5 }
  0xc6   : > { %6224 = vmatmul.mubr.msk.bf16.gmra.mrb[4].mxu0 %vm702_vm3, %v6660_v37  ;;  %v1312_v37 = vrot.slane %v1310_v16, 4  ;;  %v6717_v16 = vld [vmem:[%s6939_s21 + $0x68] sm:$0x1] }
  0xc7   : > { %6070 = vmatmul.mubr.msk.bf16.gmra.mrb[20].mxu1 %vm702_vm3, %v5201_v6  ;;  %6227 = vmatprep.mubr.msk.bf16.mxu0 %vm702_vm3, %v6662_v61  ;;  %v3639_v6 = vrot.slane %v3637_v8, 5  ;;  %v6664_v61 = vld [vmem:[%s6939_s21 + $0x54] sm:$0xff]   ;;  %v1320_v40 = vrot.slane %v6717_v16, 5  ;;  %v3667_v8 = vshll.u32 %v5551_v39, 16  ;;  %v3650_v16 = vor.u32 %v3649_v12, %v7671_v7 }
  0xc8   : > { %6073 = vmatprep.mubr.msk.bf16.mxu1 %vm702_vm3, %v5202_v9  ;;  %v3658_v9 = vshrl.u32 %v5550_v24, 16  ;;  %v7686_v44 = vsel %vm7191_vm7, %v1312_v37, %v1313_v55  ;;  %v1327_v24 = vrot.slane %v6719_v17, 5  ;;  %v3695_v39 = vshrl.u32 %v5554_v15, 16 }
  0xc9   : > { %v3640_v10 = vor.u32 %v3639_v6, %v3636_v43  ;;  %v7692_v37 = vrot.slane %v3667_v8, 5  ;;  %v3673_v55 = vrot.slane %v3671_v18, 4  ;;  %v8810_v43 = vcombine.low %v7296_v52, %v7307_v46  ;;  %v6720_v8 = vld [vmem:[%s6939_s21 + $0x7c] sm:$0xf]  ;;  %v7728_v18 = vld [vmem:[%s6939_s21 + $0x38] sm:$0x1] }
  0xca   : > { %v3660_v38 = vrot.slane %v3658_v9, 4  ;;  %v7701_v17 = vsel %vm7191_vm7, %v5230_v11, %v1317_v62  ;;  %v7705_v57 = vsel %vm7191_vm7, %v1319_v31, %v1320_v40  ;;  %v3684_v6 = vrot.slane %v3682_v28, 4  ;;  %8812 = vst [vmem:[#allocation9_spill] sm:$0xff] %v7728_v18 }
  0xcb   : > { %v3687_v12 = vrot.slane %v3685_v50, 5  ;;  %v8811_v52 = vcombine.low %v7328_v33, %v7333_v56  ;;  %v3641_v46 = vrot.slane %v3640_v10, 4  ;;  %v3651_v54 = vrot.slane %v3650_v16, 4  ;;  %v6668_v33 = vld [vmem:[%s6939_s21 + $0x6c] sm:$0xff]   ;;  %v1219_v16 = vld [vmem:[%s6939_s21 + $0x84] sm:$0xe] }
  0xcc   : > { %v3677_v62 = vshll.u32 %v5552_v20, 16  ;;  %v7713_v11 = vsel %vm7191_vm7, %v5231_v5, %v1324_v30  ;;  %v7717_v40 = vsel %vm7191_vm7, %v1326_v48, %v1327_v24  ;;  %v3697_v9 = vrot.slane %v3695_v39, 4  ;;  %v6669_v48 = vld [vmem:[%s6939_s21 + $0x78] sm:$0xff]  }
  0xcd   : > { %v3664_v10 = vor.u32 %v3663_v27, %v3660_v38  ;;  %v3674_v20 = vor.u32 %v3673_v55, %v7692_v37  ;;  %v1331_v30 = vrot.slane %v6720_v8, 5  ;;  %v3688_v38 = vor.u32 %v3687_v12, %v3684_v6  ;;  %v5556_v5 = vld [vmem:[%s6939_s21 + $0x3c] sm:$0xf] }
  0xce   : > { %6228 = vmatmul.mubr.msk.bf16.gmra.mrb[8].mxu0 %vm702_vm3, %v6664_v61  ;;  %v3655_v61 = vrot.slane %v3653_v25, 5  ;;  %v1218_v25 = vld [vmem:[%s6939_s21 + $0x78] sm:$0xe]  ;;  %v7744_v50 = vrot.slane %v3677_v62, 5  ;;  %v3698_v39 = vor.u32 %v3697_v9, %v7719_v35  ;;  %v3701_v55 = vshll.u32 %v7728_v18, 16 }
  0xcf   : > { %6074 = vmatmul.mubr.msk.bf16.gmra.mrb[24].mxu1 %vm702_vm3, %v8810_v43  ;;  %6231 = vmatprep.mubr.msk.bf16.mxu0 %vm702_vm3, %v6666_v21  ;;  %v3646_v21 = vsel %vm6965_vm4, %v3641_v46, %v7671_v7  ;;  %v5232_v24 = vrot.slane %v1218_v25, 9  ;;  %v6721_v43 = vld [vmem:[%s6939_s21 + $0x88] sm:$0xf]  ;;  %v7752_v7 = vld [vmem:[%s6939_s21 + $0x40] sm:$0xf]  ;;  %v3665_v12 = vrot.slane %v3664_v10, 4  ;;  %v8814_v62 = vcombine.low %v7348_v14, %v7357_v42 }
  0xd0   : > { %6077 = vmatprep.mubr.msk.bf16.mxu1 %vm702_vm3, %v8811_v52  ;;  %v3656_v31 = vsel %vm6965_vm4, %v3651_v54, %v3655_v61  ;;  %v1338_v6 = vrot.slane %v6721_v43, 5  ;;  %8813 = vst [vmem:[#allocation10_spill] sm:$0xff] %v7752_v7  ;;  %v3675_v52 = vrot.slane %v3674_v20, 4  ;;  %v1333_v46 = vrot.slane %v1331_v30, 4  ;;  %v6722_v54 = vld [vmem:[%s6939_s21 + $0x80] sm:$0x1] }
  0xd1   : > { %v1334_v61 = vrot.slane %v6722_v54, 5  ;;  %v3689_v9 = vrot.slane %v3688_v38, 4  ;;  %v5233_v25 = vrot.slane %v1219_v16, 9  ;;  %v3706_v8 = vshrl.u32 %v5556_v5, 16  ;;  %v6670_v10 = vld [vmem:[%s6939_s21 + $0x84] sm:$0xff]  }
  0xd2   : > { %v3709_v43 = vshll.u32 %v5556_v5, 16  ;;  %v7766_v20 = vcombine.low %v3646_v21, %v3656_v31  ;;  %v7770_v14 = vsel %vm751_vm0, %v7570_v26, 0  ;;  %v3719_v38 = vshrl.u32 %v7752_v7, 16  ;;  %v6671_v21 = vld [vmem:[%s6939_s21 + $0x90] sm:$0xff]   ;;  %v6727_v18 = vld [vmem:[%s6939_s21 + $0xa0] sm:$0xf] }
  0xd3   : > { %v3699_v16 = vrot.slane %v3698_v39, 4  ;;  %v3703_v5 = vrot.slane %v3701_v55, 5  ;;  %v1340_v54 = vrot.slane %v1338_v6, 4  ;;  %v3670_v31 = vsel %vm6965_vm4, %v3665_v12, %v7692_v37 }
  0xd4   : > { %v3680_v26 = vsel %vm6965_vm4, %v3675_v52, %v7744_v50  ;;  %v7785_v39 = vsel %vm7191_vm7, %v5232_v24, %v1331_v30  ;;  %v7789_v55 = vsel %vm7191_vm7, %v1333_v46, %v1334_v61  ;;  %v3694_v37 = vsel %vm6965_vm4, %v3689_v9, %v7719_v35  ;;  %v5562_v30 = vld [vmem:[%s6939_s21 + $0x54] sm:$0xf]  ;;  %v7806_v24 = vld [vmem:[%s6939_s21 + $0x58] sm:$0xf]  ;;  %v7811_v61 = vld [vmem:[%s6939_s21 + $0x90] sm:$0xe] }
  0xd5   : > { %v7802_v12 = vsel %vm7191_vm7, %v5233_v25, %v1338_v6  ;;  %v3708_v50 = vrot.slane %v3706_v8, 4  ;;  %v3711_v52 = vrot.slane %v3709_v43, 5  ;;  %v3721_v46 = vrot.slane %v3719_v38, 4 }
  0xd6   : > { %6232 = vmatmul.mubr.msk.bf16.gmra.mrb[12].mxu0 %vm702_vm3, %v6668_v33  ;;  %v8815_v33 = vcombine.low %v7555_v0, %v7574_v23  ;;  %v6723_v0 = vld [vmem:[%s6939_s21 + $0x8c] sm:$0x1]  ;;  %v3704_v36 = vsel %vm6965_vm4, %v3699_v16, %v3703_v5  ;;  %v3754_v25 = vshrl.u32 %v5562_v30, 16  ;;  %v3757_v8 = vshll.u32 %v5562_v30, 16 }
  0xd7   : > { %6078 = vmatmul.mubr.msk.bf16.gmra.mrb[28].mxu1 %vm702_vm3, %v8814_v62  ;;  %6235 = vmatprep.mubr.msk.bf16.mxu0 %vm702_vm3, %v6669_v48  ;;  %v3715_v48 = vshll.u32 %v7752_v7, 16  ;;  %v1341_v23 = vrot.slane %v6723_v0, 5  ;;  %v5559_v62 = vld [vmem:[%s6939_s21 + $0x48] sm:$0xf]  ;;  %v7795_v0 = vld [vmem:[%s6939_s21 + $0x4c] sm:$0xf]  ;;  %v8817_v38 = vcombine.low %v7559_v29, %v7563_v53  ;;  %v7829_v16 = vcombine.low %v3670_v31, %v3680_v26 }
  0xd8   : > { %6083 = vmatprep.mubr.msk.bf16.mxu1 %vm702_vm3, %v8815_v33  ;;  %v7792_v33 = vld [vmem:[%s6939_s21 + $0x44] sm:$0x1]  ;;  %v3730_v27 = vshrl.u32 %v5559_v62, 16  ;;  %v3733_v15 = vshll.u32 %v5559_v62, 16  ;;  %v3739_v6 = vshll.u32 %v7795_v0, 16  ;;  %v3743_v9 = vshrl.u32 %v7795_v0, 16 }
  0xd9   : > { %8816 = vst [vmem:[#allocation11_spill] sm:$0xff] %v7792_v33  ;;  %v7808_v28 = vrot.slane %v3715_v48, 5  ;;  %v7817_v35 = vsel %vm7191_vm7, %v1340_v54, %v1341_v23  ;;  %v3763_v43 = vshll.u32 %v7806_v24, 16  ;;  %v3767_v48 = vshrl.u32 %v7806_v24, 16  ;;  %v5565_v31 = vld [vmem:[%s6939_s21 + $0x60] sm:$0xf] }
  0xda   : > { %v3725_v5 = vshll.u32 %v7792_v33, 16  ;;  %v5234_v54 = vrot.slane %v7811_v61, 9  ;;  %v8818_v23 = vcombine.low %v7600_v34, %v7616_v4  ;;  %v7840_v29 = vcombine.low %v3694_v37, %v3704_v36  ;;  %v6672_v26 = vld [vmem:[%s6939_s21 + $0x9c] sm:$0xff]   ;;  %v6673_v30 = vld [vmem:[%s6939_s21 + $0xa8] sm:$0xff]   ;;  %v6724_v36 = vld [vmem:[%s8783_s1 + $0x10] sm:$0xf] }
  0xdb   : > { %v3712_v53 = vor.u32 %v3711_v52, %v3708_v50  ;;  %v3732_v62 = vrot.slane %v3730_v27, 4  ;;  %v7851_v34 = vrot.slane %v3739_v6, 5  ;;  %v3745_v4 = vrot.slane %v3743_v9, 4  ;;  %v6725_v6 = vld [vmem:[%s6939_s21 + $0x94] sm:$0xf] }
  0xdc   : > { %v3756_v27 = vrot.slane %v3754_v25, 4  ;;  %v3759_v37 = vrot.slane %v3757_v8, 5  ;;  %v7860_v50 = vrot.slane %v3763_v43, 5  ;;  %v3769_v52 = vrot.slane %v3767_v48, 4  ;;  %v7866_v9 = vld [vmem:[%s6939_s21 + $0x64] sm:$0xf] }
  0xdd   : > { %8819 = vst [vmem:[#allocation12_spill] sm:$0xff] %v7866_v9  ;;  %v3778_v61 = vshrl.u32 %v5565_v31, 16  ;;  %v7868_v22 = vrot.slane %v3712_v53, 4  ;;  %v1352_v25 = vrot.slane %v6727_v18, 5  ;;  %v3746_v43 = vor.u32 %v3745_v4, %v7851_v34 }
  0xde   : > { %6236 = vmatmul.mubr.msk.bf16.gmra.mrb[16].mxu0 %vm702_vm3, %v6670_v10  ;;  %v3781_v10 = vshll.u32 %v5565_v31, 16  ;;  %v3760_v31 = vor.u32 %v3759_v37, %v3756_v27  ;;  %v3770_v53 = vor.u32 %v3769_v52, %v7860_v50  ;;  %v8820_v18 = vcombine.low %v7607_v19, %v7620_v58  ;;  %v6674_v37 = vld [vmem:[%s6939_s21 + $0xb4] sm:$0xff]  }
  0xdf   : > { %6084 = vmatmul.mubr.msk.bf16.vlgmr.msra.gmra.mrb[0].mxu1 %vm702_vm3, %v8817_v38  ;;  %6239 = vmatprep.mubr.msk.bf16.mxu0 %vm702_vm3, %v6671_v21  ;;  %v3735_v21 = vrot.slane %v3733_v15, 5  ;;  %v7849_v38 = vld [vmem:[%s6939_s21 + $0x50] sm:$0x1]  ;;  %v7858_v15 = vld [vmem:[%s6939_s21 + $0x5c] sm:$0x1]  ;;  %v8821_v27 = vcombine.low %v7625_v2, %v7629_v1  ;;  %v1354_v52 = vrot.slane %v1352_v25, 4 }
  0xe0   : > { %6116 = vmatpush3.bf16.msra.mxu1 %v7596_v49  ;;  %6087 = vmatprep.mubr.msk.bf16.mxu1 %vm702_vm3, %v8818_v23  ;;  %v3722_v49 = vor.u32 %v3721_v46, %v7808_v28  ;;  %v7862_v46 = vrot.slane %v3725_v5, 5  ;;  %v1345_v23 = vrot.slane %v6725_v6, 5  ;;  %v3749_v48 = vshll.u32 %v7849_v38, 16  ;;  %v1221_v5 = vld [vmem:[%s6939_s21 + $0x9c] sm:$0xe] }
  0xe1   : > { %6582 = vmatprep.subr.msk.bf16.mxu1 %vm751_vm0, %v6724_v36  ;;  %v6726_v36 = vld [vmem:[%s6939_s21 + $0x98] sm:$0x1]  ;;  %v3736_v7 = vor.u32 %v3735_v21, %v3732_v62  ;;  %v3773_v6 = vshll.u32 %v7858_v15, 16  ;;  %v3791_v62 = vshrl.u32 %v7866_v9, 16  ;;  %v3783_v4 = vrot.slane %v3781_v10, 5 }
  0xe2   : > { %v1348_v33 = vrot.slane %v6726_v36, 5  ;;  %v3723_v8 = vrot.slane %v3722_v49, 4  ;;  %v3787_v36 = vshll.u32 %v7866_v9, 16  ;;  %v7887_v21 = vsel %vm7191_vm7, %v5234_v54, %v1345_v23  ;;  %v7898_v2 = vld [vmem:[%s6939_s21 + $0x68] sm:$0x1] }
  0xe3   : > { %v3780_v49 = vrot.slane %v3778_v61, 4  ;;  %v3737_v19 = vrot.slane %v3736_v7, 4  ;;  %v5235_v58 = vrot.slane %v1221_v5, 9  ;;  %v3747_v3 = vrot.slane %v3746_v43, 4  ;;  %8822 = vst [vmem:[#allocation13_spill] sm:$0xff] %v7898_v2  ;;  %v6675_v5 = vld [vmem:[%s6939_s21 + $0xc0] sm:$0xff]  }
  0xe4   : > { %v3751_v54 = vrot.slane %v3749_v48, 5  ;;  %v3775_v63 = vrot.slane %v3773_v6, 5  ;;  %v1359_v61 = vrot.slane %v7333_v56, 5  ;;  %v3761_v10 = vrot.slane %v3760_v31, 4  ;;  %v1223_v31 = vld [vmem:[%s6939_s21 + $0xb4] sm:$0xe] }
  0xe5   : > { %v3771_v51 = vrot.slane %v3770_v53, 4  ;;  %v7900_v1 = vrot.slane %v3787_v36, 5  ;;  %v3793_v7 = vrot.slane %v3791_v62, 4  ;;  %v3718_v43 = vsel %vm6965_vm4, %v7868_v22, %v7808_v28  ;;  %v6729_v62 = vld [vmem:[%s6939_s21 + $0xb0] sm:$0x1] }
  0xe6   : > { %6240 = vmatmul.mubr.msk.bf16.gmra.mrb[20].mxu0 %vm702_vm3, %v6672_v26  ;;  %v1347_v26 = vrot.slane %v1345_v23, 4  ;;  %v1222_v23 = vld [vmem:[%s6939_s21 + $0xa8] sm:$0xe]  ;;  %v3728_v48 = vsel %vm6965_vm4, %v3723_v8, %v7862_v46  ;;  %v3784_v6 = vor.u32 %v3783_v4, %v3780_v49  ;;  %v3742_v53 = vsel %vm6965_vm4, %v3737_v19, %v7851_v34  ;;  %v5568_v46 = vld [vmem:[%s6939_s21 + $0x6c] sm:$0xf] }
  0xe7   : > { %6088 = vmatmul.mubr.msk.bf16.gmra.mrb[4].mxu1 %vm702_vm3, %v8820_v18  ;;  %6243 = vmatprep.mubr.msk.bf16.mxu0 %vm702_vm3, %v6673_v30  ;;  %v6728_v18 = vld [vmem:[%s6939_s21 + $0xa4] sm:$0x1]  ;;  %v7920_v36 = vsel %vm7191_vm7, %v5235_v58, %v1352_v25  ;;  %v5236_v28 = vrot.slane %v1222_v23, 9  ;;  %v1361_v8 = vrot.slane %v1359_v61, 4  ;;  %v3797_v49 = vshll.u32 %v7898_v2, 16 }
  0xe8   : > { %6091 = vmatprep.mubr.msk.bf16.mxu1 %vm702_vm3, %v8821_v27  ;;  %v1355_v30 = vrot.slane %v6728_v18, 5  ;;  %v7912_v56 = vsel %vm7191_vm7, %v1347_v26, %v1348_v33  ;;  %v3752_v33 = vsel %vm6965_vm4, %v3747_v3, %v3751_v54  ;;  %v1362_v26 = vrot.slane %v6729_v62, 5  ;;  %v5571_v18 = vld [vmem:[%s6939_s21 + $0x78] sm:$0xf]  ;;  %v7975_v54 = vld [vmem:[%s6939_s21 + $0xbc] sm:$0x1] }
  0xe9   : > { %v3766_v34 = vsel %vm6965_vm4, %v3761_v10, %v7860_v50  ;;  %v3776_v25 = vsel %vm6965_vm4, %v3771_v51, %v3775_v63  ;;  %v3794_v4 = vor.u32 %v3793_v7, %v7900_v1  ;;  %v5237_v27 = vrot.slane %v1223_v31, 9  ;;  %v7949_v51 = vld [vmem:[%s6939_s21 + $0x70] sm:$0xf]  ;;  %v7979_v10 = vld [vmem:[%s6939_s21 + $0x7c] sm:$0xf] }
  0xea   : > { %v7924_v22 = vsel %vm7191_vm7, %v1354_v52, %v1355_v30  ;;  %v8824_v3 = vcombine.low %v7642_v45, %v7646_v59  ;;  %v7945_v19 = vrot.slane %v3784_v6, 4  ;;  %v1366_v50 = vrot.slane %v7357_v42, 5  ;;  %8825 = vst [vmem:[#allocation15_spill] sm:$0xff] %v7949_v51  ;;  %8827 = vst [vmem:[#allocation16_spill] sm:$0xff] %v7979_v10  ;;  %v5574_v7 = vld [vmem:[%s6939_s21 + $0x84] sm:$0xf] }
  0xeb   : > { %8823 = vst [vmem:[#allocation14_spill] sm:$0xff] %v7924_v22  ;;  %v3802_v63 = vshrl.u32 %v5568_v46, 16  ;;  %v8826_v45 = vcombine.low %v7650_v47, %v7677_v41  ;;  %v7957_v58 = vcombine.low %v3742_v53, %v3752_v33  ;;  %v7963_v42 = vsel %vm7191_vm7, %v5236_v28, %v1359_v61  ;;  %v6676_v61 = vld [vmem:[%s6939_s21 + $0xcc] sm:$0xff]   ;;  %v7991_v31 = vld [vmem:[%s6939_s21 + $0x88] sm:$0xf] }
  0xec   : > { %v7966_v30 = vcombine.low %v3766_v34, %v3776_v25  ;;  %v7970_v47 = vsel %vm7191_vm7, %v1361_v8, %v1362_v26  ;;  %v7972_v41 = vrot.slane %v3797_v49, 5  ;;  %v3811_v6 = vshll.u32 %v7949_v51, 16  ;;  %8828 = vst [vmem:[#allocation17_spill] sm:$0xff] %v7991_v31  ;;  %v5577_v62 = vld [vmem:[%s6939_s21 + $0x90] sm:$0xf] }
  0xed   : > { %v7997_v28 = vrot.slane %v1366_v50, 4  ;;  %v7999_v33 = vrot.slane %v3802_v63, 4  ;;  %v3815_v8 = vshrl.u32 %v7949_v51, 16  ;;  %v3826_v26 = vshrl.u32 %v5571_v18, 16  ;;  %v8006_v25 = vld [vmem:[%s6939_s21 + $0x94] sm:$0xf] }
  0xee   : > { %6244 = vmatmul.mubr.msk.bf16.gmra.mrb[24].mxu0 %vm702_vm3, %v6674_v37  ;;  %v7943_v37 = vcombine.low %v3718_v43, %v3728_v48  ;;  %v7987_v43 = vsel %vm7191_vm7, %v5237_v27, %v1366_v50  ;;  %v3805_v48 = vshll.u32 %v5568_v46, 16  ;;  %v3829_v49 = vshll.u32 %v5571_v18, 16  ;;  %8829 = vst [vmem:[#allocation18_spill] sm:$0xff] %v8006_v25  ;;  %v8044_v2 = vld [vmem:[%s6939_s21 + $0x8c] sm:$0x1] }
  0xef   : > { %6092 = vmatmul.mubr.msk.bf16.gmra.mrb[8].mxu1 %vm702_vm3, %v8824_v3  ;;  %6247 = vmatprep.mubr.msk.bf16.mxu0 %vm702_vm3, %v6675_v5  ;;  %v7983_v5 = vrot.slane %v3794_v4, 4  ;;  %v3835_v46 = vshll.u32 %v7979_v10, 16  ;;  %v3839_v34 = vshrl.u32 %v7979_v10, 16  ;;  %v3850_v4 = vshrl.u32 %v5574_v7, 16 }
  0xf0   : > { %6095 = vmatprep.mubr.msk.bf16.mxu1 %vm702_vm3, %v8826_v45  ;;  %v3853_v27 = vshll.u32 %v5574_v7, 16  ;;  %v3859_v3 = vshll.u32 %v7991_v31, 16  ;;  %v3863_v50 = vshrl.u32 %v7991_v31, 16  ;;  %v8016_v45 = vld [vmem:[%s6939_s21 + $0x74] sm:$0x1]  ;;  %v3807_v18 = vrot.slane %v3805_v48, 5 }
  0xf1   : > { %v3874_v52 = vshrl.u32 %v5577_v62, 16  ;;  %v3877_v53 = vshll.u32 %v5577_v62, 16  ;;  %v8830_v7 = vcombine.low %v7661_v60, %v7686_v44  ;;  %v3817_v59 = vrot.slane %v3815_v8, 4  ;;  %v5580_v48 = vld [vmem:[%s6939_s21 + $0x9c] sm:$0xf] }
  0xf2   : > { %v3883_v63 = vshll.u32 %v8006_v25, 16  ;;  %v3887_v23 = vshrl.u32 %v8006_v25, 16  ;;  %v8831_v62 = vcombine.low %v7701_v17, %v7705_v57  ;;  %v8034_v44 = vld [vmem:[%s6939_s21 + $0x80] sm:$0x1]  ;;  %v3828_v60 = vrot.slane %v3826_v26, 4 }
  0xf3   : > { %8832 = vst [vmem:[#allocation19_spill] sm:$0xff] %v8034_v44  ;;  %v3852_v31 = vrot.slane %v3850_v4, 4  ;;  %v3855_v8 = vrot.slane %v3853_v27, 5  ;;  %v8038_v10 = vrot.slane %v3859_v3, 5  ;;  %v3865_v51 = vrot.slane %v3863_v50, 4 }
  0xf4   : > { %v8041_v25 = vld [vmem:[%s6939_s21 + $0xa0] sm:$0xf]  ;;  %v3876_v17 = vrot.slane %v3874_v52, 4  ;;  %v3879_v57 = vrot.slane %v3877_v53, 5  ;;  %v3901_v9 = vshll.u32 %v5580_v48, 16  ;;  %v3808_v26 = vor.u32 %v3807_v18, %v7999_v33 }
  0xf5   : > { %v3845_v27 = vshll.u32 %v8034_v44, 16  ;;  %v8053_v3 = vld [vmem:[%s6939_s21 + $0x98] sm:$0x1]  ;;  %v3907_v50 = vshll.u32 %v8041_v25, 16  ;;  %v3911_v52 = vshrl.u32 %v8041_v25, 16  ;;  %v3856_v22 = vor.u32 %v3855_v8, %v3852_v31 }
  0xf6   : > { %6248 = vmatmul.mubr.msk.bf16.gmra.mrb[28].mxu0 %vm702_vm3, %v6676_v61  ;;  %v8024_v61 = vrot.slane %v3811_v6, 5  ;;  %v3841_v6 = vrot.slane %v3839_v34, 4  ;;  %v3889_v34 = vrot.slane %v3887_v23, 4  ;;  %v3869_v33 = vshll.u32 %v8044_v2, 16 }
  0xf7   : > { %6096 = vmatmul.mubr.msk.bf16.gmra.mrb[12].mxu1 %vm702_vm3, %v8830_v7  ;;  %6253 = vmatprep.mubr.msk.bf16.mxu0 %vm702_vm3, %v7766_v20  ;;  %v3831_v7 = vrot.slane %v3829_v49, 5  ;;  %v8036_v20 = vrot.slane %v3835_v46, 5  ;;  %v3821_v49 = vshll.u32 %v8016_v45, 16  ;;  %v8048_v46 = vrot.slane %v3883_v63, 5 }
  0xf8   : > { %6099 = vmatprep.mubr.msk.bf16.mxu1 %vm702_vm3, %v8831_v62  ;;  %v3898_v62 = vshrl.u32 %v5580_v48, 16  ;;  %v3818_v4 = vor.u32 %v3817_v59, %v8024_v61  ;;  %v3866_v23 = vor.u32 %v3865_v51, %v8038_v10  ;;  %v3880_v59 = vor.u32 %v3879_v57, %v3876_v17  ;;  %v8086_v57 = vld [vmem:[%s6939_s21 + $0xa4] sm:$0x1] }
  0xf9   : > { %v3832_v53 = vor.u32 %v3831_v7, %v3828_v60  ;;  %v3842_v48 = vor.u32 %v3841_v6, %v8036_v20  ;;  %v3903_v18 = vrot.slane %v3901_v9, 5  ;;  %v8833_v44 = vcombine.low %v7713_v11, %v7717_v40 }
  0xfa   : > { %v3900_v63 = vrot.slane %v3898_v62, 4  ;;  %v8834_v31 = vrot.slane %v7975_v54, 5  ;;  %v3823_v51 = vrot.slane %v3821_v49, 5  ;;  %v3890_v60 = vor.u32 %v3889_v34, %v8048_v46  ;;  %v8089_v34 = vld [vmem:[%s6939_s21 + $0xac] sm:$0xf] }
  0xfb   : > { %v3893_v9 = vshll.u32 %v8053_v3, 16  ;;  %v8835_v11 = vcombine.low %v7785_v39, %v7789_v55  ;;  %v3809_v40 = vrot.slane %v3808_v26, 4  ;;  %v8082_v54 = vrot.slane %v3907_v50, 5 }
  0xfc   : > { %v3833_v7 = vrot.slane %v3832_v53, 4  ;;  %v3843_v6 = vrot.slane %v3842_v48, 4  ;;  %v3847_v8 = vrot.slane %v3845_v27, 5  ;;  %v3871_v17 = vrot.slane %v3869_v33, 5  ;;  %v8099_v48 = vld [vmem:[%s6939_s21 + $0xb0] sm:$0x1] }
  0xfd   : > { %v3857_v39 = vrot.slane %v3856_v22, 4  ;;  %v3867_v55 = vrot.slane %v3866_v23, 4  ;;  %v3881_v62 = vrot.slane %v3880_v59, 4  ;;  %v3904_v49 = vor.u32 %v3903_v18, %v3900_v63 }
  0xfe   : > { %6254 = vmatmul.mubr.msk.bf16.vlgmr.msra.gmra.mrb[0].mxu0 %vm702_vm3, %v7829_v16  ;;  %v8072_v16 = vsel %vm7191_vm7, %v7997_v28, %v8834_v31  ;;  %v3913_v28 = vrot.slane %v3911_v52, 4  ;;  %v3895_v26 = vrot.slane %v3893_v9, 5  ;;  %v3814_v52 = vsel %vm6965_vm4, %v3809_v40, %v8024_v61 }
  0xff   : > { %6100 = vmatmul.mubr.msk.bf16.gmra.mrb[16].mxu1 %vm702_vm3, %v8833_v44  ;;  %6286 = vmatpush3.bf16.msra.mxu0 %v7770_v14  ;;  %v3819_v14 = vrot.slane %v3818_v4, 4  ;;  %v5583_v44 = vld [vmem:[%s6939_s21 + $0xa8] sm:$0xf]  ;;  %v3917_v22 = vshll.u32 %v8086_v57, 16  ;;  %v3838_v33 = vsel %vm6965_vm4, %v3833_v7, %v8036_v20  ;;  %v3848_v23 = vsel %vm6965_vm4, %v3843_v6, %v3847_v8 }
 0x100   : > { %6103 = vmatprep.mubr.msk.bf16.mxu1 %vm702_vm3, %v8835_v11  ;;  %6257 = vmatprep.mubr.msk.bf16.mxu0 %vm702_vm3, %v7840_v29  ;;  %v3891_v29 = vrot.slane %v3890_v60, 4  ;;  %v3922_v4 = vshrl.u32 %v5583_v44, 16  ;;  %v3925_v50 = vshll.u32 %v5583_v44, 16  ;;  %v3914_v53 = vor.u32 %v3913_v28, %v8082_v54  ;;  %v5632_v11 = vld [vmem:[%s6939_s21 + $0x48] sm:$0xe] }
 0x101   : > { %v3824_v27 = vsel %vm6965_vm4, %v3819_v14, %v3823_v51  ;;  %v3931_v59 = vshll.u32 %v8089_v34, 16  ;;  %v3935_v61 = vshrl.u32 %v8089_v34, 16  ;;  %v3862_v63 = vsel %vm6965_vm4, %v3857_v39, %v8038_v10  ;;  %v8164_v39 = vld [vmem:[%s6939_s21 + $0xb8] sm:$0xf] }
 0x102   : > { %v3872_v18 = vsel %vm6965_vm4, %v3867_v55, %v3871_v17  ;;  %v3886_v20 = vsel %vm6965_vm4, %v3881_v62, %v8048_v46  ;;  %v3905_v31 = vrot.slane %v3904_v49, 4  ;;  %v8836_v51 = vcombine.low %v7802_v12, %v7817_v35 }
 0x103   : > { %v3924_v10 = vrot.slane %v3922_v4, 4  ;;  %v3927_v60 = vrot.slane %v3925_v50, 5  ;;  %v3941_v9 = vshll.u32 %v8099_v48, 16  ;;  %v8837_v46 = vcombine.low %v7887_v21, %v7912_v56  ;;  %v5586_v21 = vld [vmem:[%s6939_s21 + $0xb4] sm:$0xf] }
 0x104   : > { %v5253_v12 = vcombine.low %v7963_v42, %v7970_v47  ;;  %v8838_v35 = vsel %vm6965_vm4, %v7983_v5, %v7972_v41  ;;  %v3915_v14 = vrot.slane %v3914_v53, 4  ;;  %v3919_v28 = vrot.slane %v3917_v22, 5  ;;  %v5634_v4 = vld [vmem:[%s6939_s21 + $0x60] sm:$0xe]  ;;  %v5635_v53 = vld [vmem:[%s6939_s21 + $0x6c] sm:$0xe] }
 0x105   : > { %v5254_v56 = vcombine.low %v7987_v43, %v8072_v16  ;;  %v8147_v44 = vcombine.low %v3814_v52, %v3824_v27  ;;  %v8149_v42 = vrot.slane %v3931_v59, 5  ;;  %v3937_v47 = vrot.slane %v3935_v61, 4  ;;  %v8847_v16 = vld [vmem:[#allocation7_spill] sm:$0xff] }
 0x106   : > { %6258 = vmatmul.mubr.msk.bf16.gmra.mrb[4].mxu0 %vm702_vm3, %v7943_v37  ;;  %v3896_v37 = vsel %vm6965_vm4, %v3891_v29, %v3895_v26  ;;  %v8151_v41 = vcombine.low %v3838_v33, %v3848_v23  ;;  %v8153_v5 = vcombine.low %v3862_v63, %v3872_v18  ;;  %v3910_v6 = vsel %vm6965_vm4, %v3905_v31, %v8082_v54  ;;  %v8840_v23 = vld [vmem:[#allocation14_spill] sm:$0xff]  ;;  %v5589_v63 = vld [vmem:[%s6939_s21 + $0xc0] sm:$0xf]  ;;  %v8842_v18 = vld [vmem:[#allocation12_spill] sm:$0xff] }
 0x107   : > { %6104 = vmatmul.mubr.msk.bf16.gmra.mrb[20].mxu1 %vm702_vm3, %v8836_v51  ;;  %6261 = vmatprep.mubr.msk.bf16.mxu0 %vm702_vm3, %v7957_v58  ;;  %v8839_v58 = vsel %vm6965_vm4, %v7945_v19, %v7900_v1  ;;  %v8155_v7 = vcombine.low %v3886_v20, %v3896_v37  ;;  %v5648_v1 = vrot.slane %v5632_v11, 9  ;;  %v5633_v19 = vld [vmem:[%s6939_s21 + $0x54] sm:$0xe]  ;;  %v3928_v8 = vor.u32 %v3927_v60, %v3924_v10 }
 0x108   : > { %6107 = vmatprep.mubr.msk.bf16.mxu1 %vm702_vm3, %v8837_v46  ;;  %v5602_v40 = vcombine.low %v8839_v58, %v8838_v35  ;;  %v8161_v17 = vrot.slane %v3941_v9, 5  ;;  %v3946_v55 = vshrl.u32 %v5586_v21, 16  ;;  %v3920_v62 = vsel %vm6965_vm4, %v3915_v14, %v3919_v28  ;;  %v8843_v31 = vld [vmem:[#allocation13_spill] sm:$0xff]  ;;  %v8844_v9 = vld [vmem:[#allocation15_spill] sm:$0xff]  ;;  %v8213_v35 = vld [vmem:[%s6939_s21 + $0xbc] sm:$0x1] }
 0x109   : > { %v3949_v49 = vshll.u32 %v5586_v21, 16  ;;  %v4405_v29 = vrot.slane %v7795_v0, 5  ;;  %v4408_v26 = vrot.slane %v7849_v38, 5  ;;  %v3938_v50 = vor.u32 %v3937_v47, %v8149_v42  ;;  %v8216_v58 = vld [vmem:[%s6939_s21 + $0xc4] sm:$0xf] }
 0x10a   : > { %v5649_v52 = vrot.slane %v5633_v19, 9  ;;  %v4412_v54 = vrot.slane %v7806_v24, 5  ;;  %v4415_v27 = vrot.slane %v7858_v15, 5  ;;  %v3955_v22 = vshll.u32 %v8164_v39, 16  ;;  %v5636_v19 = vld [vmem:[%s6939_s21 + $0x78] sm:$0xe] }
 0x10b   : > { %v3959_v33 = vshrl.u32 %v8164_v39, 16  ;;  %v8181_v0 = vsel %vm7191_vm7, %v5648_v1, %v4405_v29  ;;  %v4407_v38 = vrot.slane %v4405_v29, 4  ;;  %v8841_v59 = vcombine.low %v7920_v36, %v8840_v23  ;;  %v8845_v23 = vld [vmem:[#allocation16_spill] sm:$0xff] }
 0x10c   : > { %v8188_v24 = vcombine.low %v3910_v6, %v3920_v62  ;;  %v8192_v15 = vsel %vm7191_vm7, %v5649_v52, %v4412_v54  ;;  %v5650_v61 = vrot.slane %v5634_v4, 9  ;;  %v4419_v20 = vrot.slane %v8842_v18, 5  ;;  %v6677_v6 = vld [vmem:[%s6939_s21 + $0xc] sm:$0xff]  }
 0x10d   : > { %v8198_v36 = vsel %vm7191_vm7, %v4407_v38, %v4408_v26  ;;  %v4422_v51 = vrot.slane %v8843_v31, 5  ;;  %v5651_v37 = vrot.slane %v5635_v53, 9  ;;  %v4426_v11 = vrot.slane %v8844_v9, 5 }
 0x10e   : > { %6262 = vmatmul.mubr.msk.bf16.gmra.mrb[8].mxu0 %vm702_vm3, %v7966_v30  ;;  %v4414_v30 = vrot.slane %v4412_v54, 4  ;;  %v5665_v10 = vcombine.low %v8181_v0, %v8198_v36  ;;  %v4429_v46 = vrot.slane %v8016_v45, 5  ;;  %v8222_v14 = vsel %vm7191_vm7, %v5650_v61, %v4419_v20 }
 0x10f   : > { %6108 = vmatmul.mubr.msk.bf16.gmra.mrb[24].mxu1 %vm702_vm3, %v8841_v59  ;;  %6265 = vmatprep.mubr.msk.bf16.mxu0 %vm702_vm3, %v5602_v40  ;;  %v4421_v28 = vrot.slane %v4419_v20, 4  ;;  %v8224_v21 = vrot.slane %v3946_v55, 4  ;;  %v3970_v47 = vshrl.u32 %v5589_v63, 16  ;;  %v8228_v45 = vsel %vm7191_vm7, %v5651_v37, %v4426_v11  ;;  %v5363_v55 = vld [vmem:[%s6939_s21 + $0x78] sm:$0xf]  ;;  %v8846_v59 = vld [vmem:[#allocation19_spill] sm:$0xff] }
 0x110   : > { %6111 = vmatprep.mubr.msk.bf16.mxu1 %vm702_vm3, %v5253_v12  ;;  %v8206_v60 = vsel %vm7191_vm7, %v4414_v30, %v4415_v27  ;;  %v8210_v12 = vrot.slane %v3928_v8, 4  ;;  %v4428_v1 = vrot.slane %v4426_v11, 4  ;;  %v8232_v8 = vrot.slane %v3938_v50, 4 }
 0x111   : > { %v5666_v40 = vcombine.low %v8192_v15, %v8206_v60  ;;  %v8234_v62 = vrot.slane %v3949_v49, 5  ;;  %v3973_v29 = vshll.u32 %v5589_v63, 16  ;;  %v8238_v26 = vsel %vm7191_vm7, %v4421_v28, %v4422_v51  ;;  %v8849_v28 = vld [vmem:[#allocation17_spill] sm:$0xff]  ;;  %v6740_v60 = vld [vmem:[%s6939_s21 + $0xa0] sm:$0xf] }
 0x112   : > { %v8241_v4 = vrot.slane %v3955_v22, 5  ;;  %v8243_v52 = vrot.slane %v3959_v33, 4  ;;  %v5667_v54 = vcombine.low %v8222_v14, %v8238_v26  ;;  %v8249_v27 = vsel %vm7191_vm7, %v4428_v1, %v4429_v46  ;;  %v5637_v33 = vld [vmem:[%s6939_s21 + $0x84] sm:$0xe]  ;;  %v6678_v1 = vld [vmem:[%s6939_s21 + $0x18] sm:$0xff]  }
 0x113   : > { %v3965_v49 = vshll.u32 %v8213_v35, 16  ;;  %v3979_v50 = vshll.u32 %v8216_v58, 16  ;;  %v5668_v53 = vcombine.low %v8228_v45, %v8249_v27  ;;  %v5652_v22 = vrot.slane %v5636_v19, 9  ;;  %v6744_v27 = vld [vmem:[%s6939_s21 + $0xac] sm:$0xf] }
 0x114   : > { %v3972_v38 = vrot.slane %v3970_v47, 4  ;;  %v4436_v30 = vrot.slane %v8846_v59, 5  ;;  %v2292_v61 = vshrl.u32 %v5363_v55, 16  ;;  %v3975_v63 = vrot.slane %v3973_v29, 5  ;;  %v5592_v29 = vld [vmem:[%s6939_s21 + $0xcc] sm:$0xf] }
 0x115   : > { %v3983_v18 = vshrl.u32 %v8216_v58, 16  ;;  %v2295_v43 = vshll.u32 %v5363_v55, 16  ;;  %v5653_v37 = vrot.slane %v5637_v33, 9  ;;  %v3934_v9 = vsel %vm6965_vm4, %v8210_v12, %v8149_v42  ;;  %v8292_v55 = vld [vmem:[%s6939_s21 + $0xd0] sm:$0xf] }
 0x116   : > { %6266 = vmatmul.mubr.msk.bf16.gmra.mrb[12].mxu0 %vm702_vm3, %v8147_v44  ;;  %v4433_v44 = vrot.slane %v8845_v23, 5  ;;  %v2294_v51 = vrot.slane %v2292_v61, 4  ;;  %v3952_v11 = vor.u32 %v8234_v62, %v8224_v21  ;;  %v4440_v47 = vrot.slane %v8849_v28, 5  ;;  %v6679_v21 = vld [vmem:[%s6939_s21 + $0x24] sm:$0xff]  }
 0x117   : > { %6112 = vmatmul.mubr.msk.bf16.gmra.mrb[28].mxu1 %vm702_vm3, %v5254_v56  ;;  %6269 = vmatprep.mubr.msk.bf16.mxu0 %vm702_vm3, %v8151_v41  ;;  %v8848_v56 = vld [vmem:[#allocation8_spill] sm:$0xff]  ;;  %v2297_v46 = vrot.slane %v2295_v43, 5  ;;  %v3944_v19 = vsel %vm6965_vm4, %v8232_v8, %v8161_v17  ;;  %v4443_v12 = vrot.slane %v8044_v2, 5  ;;  %v8300_v62 = vrot.slane %v3979_v50, 5  ;;  %v5638_v8 = vld [vmem:[%s6939_s21 + $0x90] sm:$0xe] }
 0x118   : > { %6117 = vmatprep.mubr.msk.bf16.mxu1 %vm702_vm3, %v6677_v6  ;;  %v2314_v41 = vsel %vm6965_vm4, %v8848_v56, %v8847_v16  ;;  %v8274_v20 = vsel %vm7191_vm7, %v5652_v22, %v4433_v44  ;;  %v4435_v31 = vrot.slane %v4433_v44, 4  ;;  %v3962_v6 = vor.u32 %v8243_v52, %v8241_v4  ;;  %v8306_v52 = vld [vmem:[%s6939_s21 + $0xc8] sm:$0x1]  ;;  %v8851_v16 = vld [vmem:[#allocation5_spill] sm:$0xff] }
 0x119   : > { %v3985_v22 = vrot.slane %v3983_v18, 4  ;;  %v2298_v17 = vor.u32 %v2297_v46, %v2294_v51  ;;  %v3967_v23 = vrot.slane %v3965_v49, 5  ;;  %v3976_v44 = vor.u32 %v3975_v63, %v3972_v38  ;;  %v8852_v51 = vld [vmem:[#allocation6_spill] sm:$0xff] }
 0x11a   : > { %v8296_v42 = vsel %vm7191_vm7, %v4435_v31, %v4436_v30  ;;  %v8310_v59 = vsel %vm7191_vm7, %v5653_v37, %v4440_v47  ;;  %v4442_v30 = vrot.slane %v4440_v47, 4  ;;  %v3994_v2 = vshrl.u32 %v5592_v29, 16 }
 0x11b   : > { %v5669_v33 = vcombine.low %v8274_v20, %v8296_v42  ;;  %v3997_v50 = vshll.u32 %v5592_v29, 16  ;;  %v4003_v61 = vshll.u32 %v8292_v55, 16  ;;  %v2299_v18 = vrot.slane %v2298_v17, 4  ;;  %v6680_v29 = vld [vmem:[%s6939_s21 + $0x30] sm:$0xff]  }
 0x11c   : > { %v4007_v49 = vshrl.u32 %v8292_v55, 16  ;;  %v8321_v38 = vsel %vm7191_vm7, %v4442_v30, %v4443_v12  ;;  %v5654_v63 = vrot.slane %v5638_v8, 9  ;;  %v3986_v56 = vor.u32 %v3985_v22, %v8300_v62 }
 0x11d   : > { %v3989_v31 = vshll.u32 %v8306_v52, 16  ;;  %v5670_v37 = vcombine.low %v8310_v59, %v8321_v38  ;;  %v5608_v46 = vcombine.low %v3934_v9, %v3944_v19  ;;  %v3953_v28 = vrot.slane %v3952_v11, 4  ;;  %v5639_v11 = vld [vmem:[%s6939_s21 + $0x9c] sm:$0xe] }
 0x11e   : > { %6270 = vmatmul.mubr.msk.bf16.gmra.mrb[16].mxu0 %vm702_vm3, %v8153_v5  ;;  %v8850_v5 = vld [vmem:[#allocation18_spill] sm:$0xff]  ;;  %v3963_v47 = vrot.slane %v3962_v6, 4  ;;  %v3977_v12 = vrot.slane %v3976_v44, 4  ;;  %v4450_v8 = vrot.slane %v8053_v3, 5  ;;  %v3996_v30 = vrot.slane %v3994_v2, 4 }
 0x11f   : > { %6118 = vmatmul.mubr.msk.bf16.vlgmr.msra.gmra.mrb[0].mxu1 %vm702_vm3, %v6678_v1  ;;  %6273 = vmatprep.mubr.msk.bf16.mxu0 %vm702_vm3, %v8155_v7  ;;  %v4447_v43 = vrot.slane %v8850_v5, 5  ;;  %v2304_v7 = vsel %vm6965_vm4, %v2299_v18, %v8852_v51  ;;  %v3999_v18 = vrot.slane %v3997_v50, 5  ;;  %v8344_v5 = vrot.slane %v4003_v61, 5  ;;  %v6681_v19 = vld [vmem:[%s6939_s21 + $0x3c] sm:$0xff]  }
 0x120   : > { %6320 = vmatpush3.bf16.msra.mxu1 %v8851_v16  ;;  %6121 = vmatprep.mubr.msk.bf16.mxu1 %vm702_vm3, %v6679_v21  ;;  %v8333_v1 = vcombine.low %v2304_v7, %v2314_v41  ;;  %v8337_v21 = vld [vmem:[%s6939_s21 + $0xd4] sm:$0x1]  ;;  %v4009_v9 = vrot.slane %v4007_v49, 4  ;;  %v3987_v41 = vrot.slane %v3986_v56, 4  ;;  %v3991_v6 = vrot.slane %v3989_v31, 5 }
 0x121   : > { %v8341_v22 = vsel %vm7191_vm7, %v5654_v63, %v4447_v43  ;;  %v4449_v17 = vrot.slane %v4447_v43, 4  ;;  %v3958_v63 = vsel %vm6965_vm4, %v3953_v28, %v8241_v4  ;;  %v3968_v2 = vsel %vm6965_vm4, %v3963_v47, %v3967_v23  ;;  %v6731_v16 = vld [vmem:[%s6939_s21 + $0x1c] sm:$0xf]  ;;  %v5640_v28 = vld [vmem:[%s6939_s21 + $0xa8] sm:$0xe] }
 0x122   : > { %v4013_v50 = vshll.u32 %v8337_v21, 16  ;;  %v5655_v61 = vrot.slane %v5639_v11, 9  ;;  %v4454_v49 = vrot.slane %v8041_v25, 5  ;;  %v3982_v4 = vsel %vm6965_vm4, %v3977_v12, %v8300_v62  ;;  %v5628_v62 = vld [vmem:[%s6939_s21 + $0x18] sm:$0xe]  ;;  %v6682_v47 = vld [vmem:[%s6939_s21 + $0x48] sm:$0xff]  }
 0x123   : > { %v8350_v44 = vsel %vm7191_vm7, %v4449_v17, %v4450_v8  ;;  %v4010_v43 = vor.u32 %v4009_v9, %v8344_v5  ;;  %v4457_v23 = vrot.slane %v8086_v57, 5  ;;  %v3992_v25 = vsel %vm6965_vm4, %v3987_v41, %v3991_v6  ;;  %v6732_v11 = vld [vmem:[%s6939_s21 + $0x20] sm:$0x1] }
 0x124   : > { %v5671_v3 = vcombine.low %v8341_v22, %v8350_v44  ;;  %v4377_v56 = vrot.slane %v6731_v16, 5  ;;  %v8376_v31 = vsel %vm7191_vm7, %v5655_v61, %v4454_v49  ;;  %v4456_v51 = vrot.slane %v4454_v49, 4  ;;  %v5641_v49 = vld [vmem:[%s6939_s21 + $0xb4] sm:$0xe] }
 0x125   : > { %v5609_v7 = vcombine.low %v3958_v63, %v3968_v2  ;;  %v4011_v17 = vrot.slane %v4010_v43, 4  ;;  %v5656_v41 = vrot.slane %v5640_v28, 9  ;;  %v4461_v6 = vrot.slane %v8089_v34, 5  ;;  %v5629_v2 = vld [vmem:[%s6939_s21 + $0x24] sm:$0xe] }
 0x126   : > { %6274 = vmatmul.mubr.msk.bf16.gmra.mrb[20].mxu0 %vm702_vm3, %v8188_v24  ;;  %v4000_v24 = vor.u32 %v3999_v18, %v3996_v30  ;;  %v8381_v57 = vsel %vm7191_vm7, %v4456_v51, %v4457_v23  ;;  %v6683_v30 = vld [vmem:[%s6939_s21 + $0x54] sm:$0xff]   ;;  %v5644_v18 = vrot.slane %v5628_v62, 9  ;;  %v4379_v9 = vrot.slane %v4377_v56, 4  ;;  %v6735_v28 = vld [vmem:[%s6939_s21 + $0x2c] sm:$0x1] }
 0x127   : > { %6122 = vmatmul.mubr.msk.bf16.gmra.mrb[4].mxu1 %vm702_vm3, %v6680_v29  ;;  %6277 = vmatprep.mubr.msk.bf16.mxu0 %vm702_vm3, %v5608_v46  ;;  %v4015_v46 = vrot.slane %v4013_v50, 5  ;;  %v5610_v29 = vcombine.low %v3982_v4, %v3992_v25  ;;  %v5672_v8 = vcombine.low %v8376_v31, %v8381_v57  ;;  %v4464_v63 = vrot.slane %v8099_v48, 5  ;;  %v6733_v50 = vld [vmem:[%s6939_s21 + $0x28] sm:$0xf]  ;;  %v5630_v25 = vld [vmem:[%s6939_s21 + $0x30] sm:$0xe] }
 0x128   : > { %6125 = vmatprep.mubr.msk.bf16.mxu1 %vm702_vm3, %v6681_v19  ;;  %v4001_v12 = vrot.slane %v4000_v24, 4  ;;  %v4380_v19 = vrot.slane %v6732_v11, 5  ;;  %v4384_v61 = vrot.slane %v6733_v50, 5  ;;  %v8404_v48 = vsel %vm7191_vm7, %v5656_v41, %v4461_v6  ;;  %v6685_v11 = vld [vmem:[%s6939_s21 + $0x6c] sm:$0xff]   ;;  %v5642_v50 = vld [vmem:[%s6939_s21 + $0xc0] sm:$0xe] }
 0x129   : > { %v4016_v34 = vsel %vm6965_vm4, %v4011_v17, %v4015_v46  ;;  %v4463_v24 = vrot.slane %v4461_v6, 4  ;;  %v4378_v43 = vsel %vm7191_vm7, %v5644_v18, %v4377_v56  ;;  %v5645_v51 = vrot.slane %v5629_v2, 9  ;;  %v8853_v41 = vld [vmem:[#allocation9_spill] sm:$0xff]  ;;  %v6749_v31 = vld [vmem:[%s6939_s21 + $0xc8] sm:$0x1] }
 0x12a   : > { %v4006_v4 = vsel %vm6965_vm4, %v4001_v12, %v8344_v5  ;;  %v4381_v23 = vsel %vm7191_vm7, %v4379_v9, %v4380_v19  ;;  %v6734_v5 = vld [vmem:[%s6939_s21 + $0x34] sm:$0xf]  ;;  %v6684_v12 = vld [vmem:[%s6939_s21 + $0x60] sm:$0xff]   ;;  %v5646_v18 = vrot.slane %v5630_v25, 9  ;;  %v4471_v9 = vrot.slane %v8213_v35, 5 }
 0x12b   : > { %v4391_v16 = vrot.slane %v6734_v5, 5  ;;  %v8415_v62 = vsel %vm7191_vm7, %v4463_v24, %v4464_v63  ;;  %v5611_v46 = vcombine.low %v4006_v4, %v4016_v34  ;;  %v5661_v17 = vcombine.low %v4378_v43, %v4381_v23  ;;  %v5631_v24 = vld [vmem:[%s6939_s21 + $0x3c] sm:$0xe] }
 0x12c   : > { %v5673_v56 = vcombine.low %v8404_v48, %v8415_v62  ;;  %v4394_v6 = vrot.slane %v8853_v41, 5  ;;  %v4385_v35 = vsel %vm7191_vm7, %v5645_v51, %v4384_v61  ;;  %v5658_v5 = vrot.slane %v5642_v50, 9 }
 0x12d   : > { %v4393_v19 = vrot.slane %v4391_v16, 4  ;;  %v4392_v23 = vsel %vm7191_vm7, %v5646_v18, %v4391_v16  ;;  %v4478_v51 = vrot.slane %v8306_v52, 5  ;;  %v2455_v57 = vshll.u32 %v6749_v31, 16 }
 0x12e   : > { %6278 = vmatmul.mubr.msk.bf16.gmra.mrb[24].mxu0 %vm702_vm3, %v5609_v7  ;;  %v5657_v7 = vrot.slane %v5641_v49, 9 }
 0x12f   : > { %6126 = vmatmul.mubr.msk.bf16.gmra.mrb[8].mxu1 %vm702_vm3, %v6682_v47  ;;  %6281 = vmatprep.mubr.msk.bf16.mxu0 %vm702_vm3, %v5610_v29  ;;  %v4387_v47 = vrot.slane %v6735_v28, 5  ;;  %v4468_v29 = vrot.slane %v8164_v39, 5  ;;  %v8854_v39 = vld [vmem:[#allocation10_spill] sm:$0xff]  ;;  %v4395_v25 = vsel %vm7191_vm7, %v4393_v19, %v4394_v6  ;;  %v5647_v28 = vrot.slane %v5631_v24, 9 }
 0x130   : > { %6129 = vmatprep.mubr.msk.bf16.mxu1 %vm702_vm3, %v6683_v30  ;;  %v4386_v30 = vrot.slane %v4384_v61, 4  ;;  %v4398_v49 = vrot.slane %v8854_v39, 5  ;;  %v4475_v61 = vrot.slane %v8216_v58, 5  ;;  %v6736_v39 = vld [vmem:[%s6939_s21 + $0x70] sm:$0xf]  ;;  %v4482_v24 = vrot.slane %v8292_v55, 5 }
 0x131   : > { %v8427_v63 = vsel %vm7191_vm7, %v5657_v7, %v4468_v29  ;;  %v4470_v2 = vrot.slane %v4468_v29, 4  ;;  %v5360_v7 = vld [vmem:[%s6939_s21 + $0x6c] sm:$0xf]  ;;  %v8855_v29 = vld [vmem:[#allocation11_spill] sm:$0xff] }
 0x132   : > { %v4388_v34 = vsel %vm7191_vm7, %v4386_v30, %v4387_v47  ;;  %v4400_v47 = vrot.slane %v4398_v49, 4  ;;  %v6686_v30 = vld [vmem:[%s6939_s21 + $0x78] sm:$0xff]   ;;  %v8458_v16 = vsel %vm7191_vm7, %v5658_v5, %v4475_v61  ;;  %v4477_v18 = vrot.slane %v4475_v61, 4 }
 0x133   : > { %v8434_v4 = vsel %vm7191_vm7, %v4470_v2, %v4471_v9  ;;  %v5663_v9 = vcombine.low %v4392_v23, %v4395_v25  ;;  %v2268_v19 = vshrl.u32 %v5360_v7, 16  ;;  %v2271_v41 = vshll.u32 %v5360_v7, 16 }
 0x134   : > { %v5674_v43 = vcombine.low %v8427_v63, %v8434_v4  ;;  %v8463_v58 = vsel %vm7191_vm7, %v4477_v18, %v4478_v51  ;;  %v4399_v6 = vsel %vm7191_vm7, %v5647_v28, %v4398_v49  ;;  %v4485_v49 = vrot.slane %v8337_v21, 5  ;;  %v6688_v51 = vld [vmem:[%s6939_s21 + $0x90] sm:$0xff]   ;;  %v6689_v21 = vld [vmem:[%s6939_s21 + $0x9c] sm:$0xff]  }
 0x135   : > { %v5675_v50 = vcombine.low %v8458_v16, %v8463_v58  ;;  %v2270_v23 = vrot.slane %v2268_v19, 4  ;;  %v2273_v25 = vrot.slane %v2271_v41, 5  ;;  %v4484_v7 = vrot.slane %v4482_v24, 4 }
 0x136   : > { %6282 = vmatmul.mubr.msk.bf16.gmra.mrb[28].mxu0 %vm702_vm3, %v5611_v46  ;;  %v5662_v46 = vcombine.low %v4385_v35, %v4388_v34  ;;  %v2277_v35 = vshll.u32 %v6736_v39, 16  ;;  %v2281_v34 = vshrl.u32 %v6736_v39, 16 }
 0x137   : > { %6130 = vmatmul.mubr.msk.bf16.gmra.mrb[12].mxu1 %vm702_vm3, %v6684_v12  ;;  %6287 = vmatprep.mubr.msk.bf16.mxu0 %vm702_vm3, %v5661_v17  ;;  %v4401_v12 = vrot.slane %v8855_v29, 5  ;;  %v5643_v17 = vld [vmem:[%s6939_s21 + $0xcc] sm:$0xe]  ;;  %v8485_v55 = vsel %vm7191_vm7, %v4484_v7, %v4485_v49 }
 0x138   : > { %6133 = vmatprep.mubr.msk.bf16.mxu1 %vm702_vm3, %v6685_v11  ;;  %v6687_v11 = vld [vmem:[%s6939_s21 + $0x84] sm:$0xff]   ;;  %v5659_v52 = vrot.slane %v5643_v17, 9  ;;  %v2283_v28 = vrot.slane %v2281_v34, 4  ;;  %v6737_v17 = vld [vmem:[%s6939_s21 + $0x74] sm:$0x1] }
 0x139   : > { %v4402_v2 = vsel %vm7191_vm7, %v4400_v47, %v4401_v12  ;;  %v5366_v47 = vld [vmem:[%s6939_s21 + $0x84] sm:$0xf]  ;;  %v2274_v12 = vor.u32 %v2273_v25, %v2270_v23  ;;  %v6691_v34 = vld [vmem:[%s6939_s21 + $0xb4] sm:$0xff]  }
 0x13a   : > { %v8480_v5 = vsel %vm7191_vm7, %v5659_v52, %v4482_v24  ;;  %v5664_v61 = vcombine.low %v4399_v6, %v4402_v2  ;;  %v2319_v18 = vshll.u32 %v5366_v47, 16  ;;  %v5369_v6 = vld [vmem:[%s6939_s21 + $0x90] sm:$0xf]  ;;  %v6690_v2 = vld [vmem:[%s6939_s21 + $0xa8] sm:$0xff]  }
 0x13b   : > { %v5676_v29 = vcombine.low %v8480_v5, %v8485_v55  ;;  %v2275_v52 = vrot.slane %v2274_v12, 4  ;;  %v2340_v23 = vshrl.u32 %v5369_v6, 16  ;;  %v2343_v25 = vshll.u32 %v5369_v6, 16 }
 0x13c   : > { %v2373_v12 = vshll.u32 %v6740_v60, 16 }
 0x13d   : > { %v2345_v14 = vrot.slane %v2343_v25, 5  ;;  %v6743_v25 = vld [vmem:[%s6939_s21 + $0xa4] sm:$0x1] }
 0x13e   : > { %6288 = vmatmul.mubr.msk.bf16.vlgmr.msra.gmra.mrb[0].mxu0 %vm702_vm3, %v5662_v46  ;;  %v2279_v46 = vrot.slane %v2277_v35, 5  ;;  %v5372_v35 = vld [vmem:[%s6939_s21 + $0x9c] sm:$0xf]  ;;  %v8527_v6 = vrot.slane %v2373_v12, 5 }
 0x13f   : > { %6134 = vmatmul.mubr.msk.bf16.gmra.mrb[16].mxu1 %vm702_vm3, %v6686_v30  ;;  %6291 = vmatprep.mubr.msk.bf16.mxu0 %vm702_vm3, %v5663_v9  ;;  %v2287_v30 = vshll.u32 %v6737_v17, 16  ;;  %v2316_v9 = vshrl.u32 %v5366_v47, 16  ;;  %v2367_v47 = vshll.u32 %v5372_v35, 16  ;;  %v6741_v17 = vld [vmem:[%s6939_s21 + $0x8c] sm:$0x1] }
 0x140   : > { %6137 = vmatprep.mubr.msk.bf16.mxu1 %vm702_vm3, %v6687_v11  ;;  %v2284_v13 = vor.u32 %v2283_v28, %v2279_v46  ;;  %v6738_v11 = vld [vmem:[%s6939_s21 + $0x88] sm:$0xf]  ;;  %v2280_v7 = vsel %vm6965_vm4, %v2275_v52, %v2279_v46 }
 0x141   : > { %v2325_v19 = vshll.u32 %v6738_v11, 16  ;;  %v2329_v41 = vshrl.u32 %v6738_v11, 16  ;;  %v2289_v0 = vrot.slane %v2287_v30, 5  ;;  %v2318_v36 = vrot.slane %v2316_v9, 4 }
 0x142   : > { %v2285_v39 = vrot.slane %v2284_v13, 4  ;;  %v2335_v30 = vshll.u32 %v6741_v17, 16  ;;  %v2342_v9 = vrot.slane %v2340_v23, 4  ;;  %v2369_v11 = vrot.slane %v2367_v47, 5 }
 0x143   : > { %v8504_v24 = vrot.slane %v2325_v19, 5  ;;  %v2331_v49 = vrot.slane %v2329_v41, 4  ;;  %v6692_v19 = vld [vmem:[%s6939_s21 + $0xc0] sm:$0xff]  }
 0x144   : > { %v2290_v46 = vsel %vm6965_vm4, %v2285_v39, %v2289_v0  ;;  %v5375_v39 = vld [vmem:[%s6939_s21 + $0xa8] sm:$0xf] }
 0x145   : > { %v2332_v13 = vor.u32 %v2331_v49, %v8504_v24  ;;  %v5393_v41 = vcombine.low %v2280_v7, %v2290_v46  ;;  %v2383_v7 = vshll.u32 %v6743_v25, 16  ;;  %v2391_v45 = vshll.u32 %v5375_v39, 16 }
 0x146   : > { %6292 = vmatmul.mubr.msk.bf16.gmra.mrb[4].mxu0 %vm702_vm3, %v5664_v61  ;;  %v6739_v61 = vld [vmem:[%s6939_s21 + $0x94] sm:$0xf] }
 0x147   : > { %6138 = vmatmul.mubr.msk.bf16.gmra.mrb[20].mxu1 %vm702_vm3, %v6688_v51  ;;  %6295 = vmatprep.mubr.msk.bf16.mxu0 %vm702_vm3, %v5665_v10  ;;  %v2321_v10 = vrot.slane %v2319_v18, 5  ;;  %v2349_v51 = vshll.u32 %v6739_v61, 16  ;;  %v2353_v28 = vshrl.u32 %v6739_v61, 16  ;;  %v2333_v0 = vrot.slane %v2332_v13, 4 }
 0x148   : > { %6141 = vmatprep.mubr.msk.bf16.mxu1 %vm702_vm3, %v6689_v21  ;;  %v2364_v21 = vshrl.u32 %v5372_v35, 16  ;;  %v6742_v35 = vld [vmem:[%s6939_s21 + $0x98] sm:$0x1]  ;;  %v2388_v61 = vshrl.u32 %v5375_v39, 16  ;;  %v5381_v39 = vld [vmem:[%s6939_s21 + $0xc0] sm:$0xf] }
 0x149   : > { %v2322_v15 = vor.u32 %v2321_v10, %v2318_v36  ;;  %v8524_v26 = vrot.slane %v2349_v51, 5  ;;  %v2337_v36 = vrot.slane %v2335_v30, 5  ;;  %v2346_v10 = vor.u32 %v2345_v14, %v2342_v9  ;;  %v5378_v51 = vld [vmem:[%s6939_s21 + $0xb4] sm:$0xf] }
 0x14a   : > { %v2366_v18 = vrot.slane %v2364_v21, 4  ;;  %v2401_v21 = vshrl.u32 %v6744_v27, 16  ;;  %v2412_v20 = vshrl.u32 %v5378_v51, 16  ;;  %v2415_v42 = vshll.u32 %v5378_v51, 16 }
 0x14b   : > { %v2323_v52 = vrot.slane %v2322_v15, 4  ;;  %v2338_v46 = vsel %vm6965_vm4, %v2333_v0, %v2337_v36  ;;  %v2347_v15 = vrot.slane %v2346_v10, 4  ;;  %v2385_v30 = vrot.slane %v2383_v7, 5 }
 0x14c   : > { %v2370_v23 = vor.u32 %v2369_v11, %v2366_v18  ;;  %v2390_v9 = vrot.slane %v2388_v61, 4  ;;  %v2403_v11 = vrot.slane %v2401_v21, 4  ;;  %v6748_v61 = vld [vmem:[%s6939_s21 + $0xbc] sm:$0x1] }
 0x14d   : > { %v2328_v47 = vsel %vm6965_vm4, %v2323_v52, %v8504_v24  ;;  %v2352_v0 = vsel %vm6965_vm4, %v2347_v15, %v8524_v26  ;;  %v2431_v22 = vshll.u32 %v6748_v61, 16 }
 0x14e   : > { %6296 = vmatmul.mubr.msk.bf16.gmra.mrb[8].mxu0 %vm702_vm3, %v5666_v40  ;;  %v2377_v40 = vshrl.u32 %v6740_v60, 16  ;;  %v2371_v17 = vrot.slane %v2370_v23, 4  ;;  %v5395_v24 = vcombine.low %v2328_v47, %v2338_v46 }
 0x14f   : > { %6142 = vmatmul.mubr.msk.bf16.gmra.mrb[24].mxu1 %vm702_vm3, %v6690_v2  ;;  %6299 = vmatprep.mubr.msk.bf16.mxu0 %vm702_vm3, %v5667_v54  ;;  %v2355_v54 = vrot.slane %v2353_v28, 4 }
 0x150   : > { %6145 = vmatprep.mubr.msk.bf16.mxu1 %vm702_vm3, %v6691_v34  ;;  %v2379_v2 = vrot.slane %v2377_v40, 4  ;;  %v2359_v34 = vshll.u32 %v6742_v35, 16  ;;  %v2376_v10 = vsel %vm6965_vm4, %v2371_v17, %v8527_v6  ;;  %v2457_v17 = vrot.slane %v2455_v57, 5 }
 0x151   : > { %v2356_v49 = vor.u32 %v2355_v54, %v8524_v26  ;;  %v2393_v54 = vrot.slane %v2391_v45, 5  ;;  %v6746_v26 = vld [vmem:[%s6939_s21 + $0xb0] sm:$0x1] }
 0x152   : > { %v2380_v28 = vor.u32 %v2379_v2, %v8527_v6  ;;  %v2361_v60 = vrot.slane %v2359_v34, 5  ;;  %v2407_v35 = vshll.u32 %v6746_v26, 16  ;;  %v2436_v34 = vshrl.u32 %v5381_v39, 16 }
 0x153   : > { %v2357_v13 = vrot.slane %v2356_v49, 4  ;;  %v2394_v38 = vor.u32 %v2393_v54, %v2390_v9  ;;  %v2439_v6 = vshll.u32 %v5381_v39, 16  ;;  %v6747_v49 = vld [vmem:[%s6939_s21 + $0xc4] sm:$0xf] }
 0x154   : > { %v2381_v14 = vrot.slane %v2380_v28, 4  ;;  %v2445_v23 = vshll.u32 %v6747_v49, 16  ;;  %v2449_v25 = vshrl.u32 %v6747_v49, 16  ;;  %v2409_v45 = vrot.slane %v2407_v35, 5 }
 0x155   : > { %v2362_v36 = vsel %vm6965_vm4, %v2357_v13, %v2361_v60  ;;  %v2395_v51 = vrot.slane %v2394_v38, 4  ;;  %v2433_v60 = vrot.slane %v2431_v22, 5 }
 0x156   : > { %6300 = vmatmul.mubr.msk.bf16.gmra.mrb[12].mxu0 %vm702_vm3, %v5668_v53  ;;  %v2397_v53 = vshll.u32 %v6744_v27, 16  ;;  %v2386_v59 = vsel %vm6965_vm4, %v2381_v14, %v2385_v30  ;;  %v5396_v44 = vcombine.low %v2352_v0, %v2362_v36  ;;  %v2438_v27 = vrot.slane %v2436_v34, 4  ;;  %v8633_v36 = vld [vmem:[%s8785_s3] ss:$0 sm:$0xff] }
 0x157   : > { %6146 = vmatmul.mubr.msk.bf16.gmra.mrb[28].mxu1 %vm702_vm3, %v6692_v19  ;;  %6303 = vmatprep.mubr.msk.bf16.mxu0 %vm702_vm3, %v5669_v33  ;;  %v6745_v33 = vld [vmem:[%s6939_s21 + $0xb8] sm:$0xf]  ;;  %v2414_v19 = vrot.slane %v2412_v20, 4  ;;  %v2447_v21 = vrot.slane %v2445_v23, 5  ;;  %v2451_v47 = vrot.slane %v2449_v25, 4 }
 0x158   : > { %6167 = vmatprep.mubr.msk.bf16.mxu1 %vm702_vm3, %v5393_v41  ;;  %v2421_v12 = vshll.u32 %v6745_v33, 16  ;;  %v2425_v40 = vshrl.u32 %v6745_v33, 16  ;;  %v2399_v18 = vrot.slane %v2397_v53, 5  ;;  %v2417_v41 = vrot.slane %v2415_v42, 5 }
 0x159   : > { %v2441_v53 = vrot.slane %v2439_v6, 5 }
 0x15a   : > { %v2423_v52 = vrot.slane %v2421_v12, 5  ;;  %v2427_v2 = vrot.slane %v2425_v40, 4  ;;  %v2400_v20 = vsel %vm6965_vm4, %v2395_v51, %v2399_v18  ;;  %v2452_v12 = vor.u32 %v2451_v47, %v2447_v21 }
 0x15b   : > { %v2442_v33 = vor.u32 %v2441_v53, %v2438_v27 }
 0x15c   : > { %v2428_v7 = vor.u32 %v2427_v2, %v2423_v52  ;;  %v2453_v13 = vrot.slane %v2452_v12, 4  ;;  %v8628_v2 = vld [vmem:[%s8784_s2] ss:$0 sm:$0xff] }
 0x15d   : > { %v2443_v40 = vrot.slane %v2442_v33, 4 }
 0x15e   : > { %6304 = vmatmul.mubr.msk.bf16.gmra.mrb[16].mxu0 %vm702_vm3, %v5670_v37  ;;  %v2404_v37 = vor.u32 %v2403_v11, %v2399_v18  ;;  %v2429_v15 = vrot.slane %v2428_v7, 4  ;;  %v2458_v9 = vsel %vm6965_vm4, %v2453_v13, %v2457_v17 }
 0x15f   : > { %6168 = vmatmul.mubr.msk.bf16.vlgmr.msra.gmra.mrb[16].mxu1 %vm702_vm3, %v8333_v1  ;;  %6307 = vmatprep.mubr.msk.bf16.mxu0 %vm702_vm3, %v5671_v3  ;;  %v2418_v1 = vor.u32 %v2417_v41, %v2414_v19  ;;  %v5397_v3 = vcombine.low %v2376_v10, %v2386_v59  ;;  %v2448_v30 = vsel %vm6965_vm4, %v2443_v40, %v2447_v21 }
 0x160   : > { %6171 = vmatprep.mubr.msk.bf16.mxu1 %vm702_vm3, %v5395_v24  ;;  %v2405_v28 = vrot.slane %v2404_v37, 4  ;;  %v2434_v48 = vsel %vm6965_vm4, %v2429_v15, %v2433_v60  ;;  %v5400_v14 = vcombine.low %v2448_v30, %v2458_v9 }
 0x161   : > { %v2419_v46 = vrot.slane %v2418_v1, 4 }
 0x162   : > { %v2410_v42 = vsel %vm6965_vm4, %v2405_v28, %v2409_v45 }
 0x163   : > { %v5398_v62 = vcombine.low %v2400_v20, %v2410_v42 }
 0x166   : > { %6308 = vmatmul.mubr.msk.bf16.gmra.mrb[20].mxu0 %vm702_vm3, %v5672_v8  ;;  %v2424_v8 = vsel %vm6965_vm4, %v2419_v46, %v2423_v52 }
 0x167   : > { %6172 = vmatmul.mubr.msk.bf16.gmra.mrb[20].mxu1 %vm702_vm3, %v5396_v44  ;;  %6311 = vmatprep.mubr.msk.bf16.mxu0 %vm702_vm3, %v5673_v56  ;;  %v5399_v56 = vcombine.low %v2424_v8, %v2434_v48 }
 0x168   : > { %6175 = vmatprep.mubr.msk.bf16.mxu1 %vm702_vm3, %v5397_v3 }
 0x16e   : > { %6312 = vmatmul.mubr.msk.bf16.gmra.mrb[24].mxu0 %vm702_vm3, %v5674_v43 }
 0x16f   : > { %6176 = vmatmul.mubr.msk.bf16.gmra.mrb[24].mxu1 %vm702_vm3, %v5398_v62  ;;  %6315 = vmatprep.mubr.msk.bf16.mxu0 %vm702_vm3, %v5675_v50 }
 0x170   : > { %6179 = vmatprep.mubr.msk.bf16.mxu1 %vm702_vm3, %v5399_v56 }
 0x176   : > { %6316 = vmatmul.mubr.msk.bf16.gmra.mrb[28].mxu0 %vm702_vm3, %v5676_v29 }
 0x177   : > { %6180 = vmatmul.mubr.msk.bf16.gmra.mrb[28].mxu1 %vm702_vm3, %v5400_v14 }
 0x1f2   : > { %v6119_v63 = vpop.f32.mrb[0].mxu1 }
 0x1f3   : > { %v1868_v4 = vpop.f32.mrb[1].mxu1 }
 0x1f4   : > { %v6120_v43 = vpop.f32.mrb[2].mxu1 }
 0x1f5   : > { %v1871_v16 = vpop.f32.mrb[3].mxu1 }
 0x1fa   : > { %v6123_v58 = vpop.f32.mrb[4].mxu1 }
 0x1fb   : > { %v1884_v50 = vpop.f32.mrb[5].mxu1 }
 0x1fc   : > { %v6124_v54 = vpop.f32.mrb[6].mxu1 }
 0x1fd   : > { %v1887_v18 = vpop.f32.mrb[7].mxu1 }
 0x202   : > { %v6127_v11 = vpop.f32.mrb[8].mxu1 }
 0x203   : > { %v1900_v24 = vpop.f32.mrb[9].mxu1 }
 0x204   : > { %v6128_v32 = vpop.f32.mrb[10].mxu1 }
 0x205   : > { %v8615_v19 = vpop.f32.mrb[11].mxu1 }
 0x20a   : > { %v8617_v41 = vpop.f32.mrb[12].mxu1 }
 0x20b   : > { %v8619_v5 = vpop.f32.mrb[13].mxu1 }
 0x20c   : > { %v8621_v55 = vpop.f32.mrb[14].mxu1 }
 0x20d   : > { %v8623_v29 = vpop.f32.mrb[15].mxu1 }
 0x211   : > { %v6289_v52 = vpop.f32.mrb[0].mxu0 }
 0x212   : > { %v6321_v39 = vadd.f32 %v6289_v52, %v6119_v63  ;;  %v4622_v0 = vpop.f32.mrb[1].mxu0 }
 0x213   : > { %v6322_v10 = vadd.f32 %v4622_v0, %v1868_v4  ;;  %v6290_v59 = vpop.f32.mrb[2].mxu0 }
 0x214   : > { %v4790_v38 = vmul.f32 %v6321_v39, %v8628_v2  ;;  %v6323_v37 = vadd.f32 %v6290_v59, %v6120_v43  ;;  %v4625_v26 = vpop.f32.mrb[3].mxu0 }
 0x215   : > { %v4788_v35 = vmul.f32 %v6322_v10, %v8628_v2  ;;  %v6324_v34 = vadd.f32 %v4625_v26, %v1871_v16 }
 0x216   : > { %v4829_v6 = vadd.f32 %v8633_v36, %v4790_v38  ;;  %v4791_v49 = vmul.f32 %v6323_v37, %v8628_v2 }
 0x217   : > { %v4827_v23 = vadd.f32 %v8633_v36, %v4788_v35  ;;  %v4789_v25 = vmul.f32 %v6324_v34, %v8628_v2 }
 0x218   : > { %v4830_v1 = vadd.f32 %v8633_v36, %v4791_v49  ;;  %v4861_v22 = vmax.f32 %v4829_v6, 0.0 }
 0x219   : > { %v4828_v7 = vadd.f32 %v8633_v36, %v4789_v25  ;;  %v6293_v61 = vpop.f32.mrb[4].mxu0  ;;  %v4859_v28 = vmax.f32 %v4827_v23, 0.0 }
 0x21a   : > { %v4862_v44 = vmax.f32 %v4830_v1, 0.0  ;;  %v6325_v3 = vadd.f32 %v6293_v61, %v6123_v58  ;;  %v4638_v51 = vpop.f32.mrb[5].mxu0 }
 0x21b   : > { %v4860_v45 = vmax.f32 %v4828_v7, 0.0  ;;  %v6326_v27 = vadd.f32 %v4638_v51, %v1884_v50  ;;  %v6294_v53 = vpop.f32.mrb[6].mxu0 }
 0x21c   : > { %v5773_v21 = vpack.c.bf16 %v4862_v44, %v4861_v22  ;;  %v4794_v47 = vmul.f32 %v6325_v3, %v8628_v2  ;;  %v6327_v46 = vadd.f32 %v6294_v53, %v6124_v54  ;;  %v4641_v15 = vpop.f32.mrb[7].mxu0 }
 0x21d   : > { %v5768_v60 = vpack.c.bf16 %v4860_v45, %v4859_v28  ;;  %v4792_v20 = vmul.f32 %v6326_v27, %v8628_v2  ;;  %v6328_v42 = vadd.f32 %v4641_v15, %v1887_v18 }
 0x21e   : > { %5845 = vst [vmem:[%s8648_s30 + $0x8] sm:$0xff] %v5773_v21   ;;  %v4833_v33 = vadd.f32 %v8633_v36, %v4794_v47  ;;  %v4795_v12 = vmul.f32 %v6327_v46, %v8628_v2 }
 0x21f   : > { %5769 = vst [vmem:[%s8648_s30] sm:$0xff] %v5768_v60   ;;  %v4831_v31 = vadd.f32 %v8633_v36, %v4792_v20  ;;  %v4793_v57 = vmul.f32 %v6328_v42, %v8628_v2 }
 0x220   : > { %v4834_v8 = vadd.f32 %v8633_v36, %v4795_v12  ;;  %v4865_v56 = vmax.f32 %v4833_v33, 0.0 }
 0x221   : > { %v4832_v48 = vadd.f32 %v8633_v36, %v4793_v57  ;;  %v6297_v62 = vpop.f32.mrb[8].mxu0  ;;  %v4863_v30 = vmax.f32 %v4831_v31, 0.0 }
 0x222   : > { %v4866_v40 = vmax.f32 %v4834_v8, 0.0  ;;  %v6329_v13 = vadd.f32 %v6297_v62, %v6127_v11  ;;  %v4654_v17 = vpop.f32.mrb[9].mxu0 }
 0x223   : > { %v4864_v9 = vmax.f32 %v4832_v48, 0.0  ;;  %v6330_v14 = vadd.f32 %v4654_v17, %v1900_v24  ;;  %v6298_v63 = vpop.f32.mrb[10].mxu0 }
 0x224   : > { %v5783_v4 = vpack.c.bf16 %v4866_v40, %v4865_v56  ;;  %v4798_v43 = vmul.f32 %v6329_v13, %v8628_v2  ;;  %v6331_v16 = vadd.f32 %v6298_v63, %v6128_v32  ;;  %v4657_v58 = vpop.f32.mrb[11].mxu0 }
 0x225   : > { %v5778_v50 = vpack.c.bf16 %v4864_v9, %v4863_v30  ;;  %v4796_v54 = vmul.f32 %v6330_v14, %v8628_v2  ;;  %v6332_v18 = vadd.f32 %v4657_v58, %v8615_v19 }
 0x226   : > { %5847 = vst [vmem:[%s8648_s30 + $0x18] sm:$0xff] %v5783_v4   ;;  %v4837_v52 = vadd.f32 %v8633_v36, %v4798_v43  ;;  %v4799_v11 = vmul.f32 %v6331_v16, %v8628_v2 }
 0x227   : > { %5846 = vst [vmem:[%s8648_s30 + $0x10] sm:$0xff] %v5778_v50   ;;  %v4835_v39 = vadd.f32 %v8633_v36, %v4796_v54  ;;  %v4797_v24 = vmul.f32 %v6332_v18, %v8628_v2 }
 0x228   : > { %v4838_v0 = vadd.f32 %v8633_v36, %v4799_v11  ;;  %v4869_v59 = vmax.f32 %v4837_v52, 0.0 }
 0x229   : > { %v4836_v32 = vadd.f32 %v8633_v36, %v4797_v24  ;;  %v6301_v10 = vpop.f32.mrb[12].mxu0  ;;  %v4867_v26 = vmax.f32 %v4835_v39, 0.0 }
 0x22a   : > { %v4870_v38 = vmax.f32 %v4838_v0, 0.0  ;;  %v6333_v19 = vadd.f32 %v6301_v10, %v8617_v41  ;;  %v4670_v37 = vpop.f32.mrb[13].mxu0 }
 0x22b   : > { %v4868_v35 = vmax.f32 %v4836_v32, 0.0  ;;  %v6334_v34 = vadd.f32 %v4670_v37, %v8619_v5  ;;  %v6302_v6 = vpop.f32.mrb[14].mxu0 }
 0x22c   : > { %v5793_v49 = vpack.c.bf16 %v4870_v38, %v4869_v59  ;;  %v4802_v23 = vmul.f32 %v6333_v19, %v8628_v2  ;;  %v6335_v25 = vadd.f32 %v6302_v6, %v8621_v55  ;;  %v4673_v1 = vpop.f32.mrb[15].mxu0 }
 0x22d   : > { %v5788_v7 = vpack.c.bf16 %v4868_v35, %v4867_v26  ;;  %v4800_v61 = vmul.f32 %v6334_v34, %v8628_v2  ;;  %v6336_v22 = vadd.f32 %v4673_v1, %v8623_v29 }
 0x22e   : > { %5849 = vst [vmem:[%s8648_s30 + $0x28] sm:$0xff] %v5793_v49   ;;  %v4841_v41 = vadd.f32 %v8633_v36, %v4802_v23  ;;  %v4803_v44 = vmul.f32 %v6335_v25, %v8628_v2 }
 0x22f   : > { %5848 = vst [vmem:[%s8648_s30 + $0x20] sm:$0xff] %v5788_v7   ;;  %v4839_v5 = vadd.f32 %v8633_v36, %v4800_v61  ;;  %v4801_v3 = vmul.f32 %v6336_v22, %v8628_v2 }
 0x230   : > { %v4842_v51 = vadd.f32 %v8633_v36, %v4803_v44  ;;  %v4873_v45 = vmax.f32 %v4841_v41, 0.0 }
 0x231   : > { %v4840_v55 = vadd.f32 %v8633_v36, %v4801_v3  ;;  %v6305_v28 = vpop.f32.mrb[16].mxu0  ;;  %v4871_v21 = vmax.f32 %v4839_v5, 0.0 }
 0x232   : > { %v4874_v27 = vmax.f32 %v4842_v51, 0.0  ;;  %v6169_v53 = vpop.f32.mrb[16].mxu1  ;;  %v4686_v29 = vpop.f32.mrb[17].mxu0 }
 0x233   : > { %v4872_v47 = vmax.f32 %v4840_v55, 0.0  ;;  %v6337_v46 = vadd.f32 %v6305_v28, %v6169_v53  ;;  %v2658_v15 = vpop.f32.mrb[17].mxu1  ;;  %v6306_v60 = vpop.f32.mrb[18].mxu0 }
 0x234   : > { %v5803_v20 = vpack.c.bf16 %v4874_v27, %v4873_v45  ;;  %v6338_v42 = vadd.f32 %v4686_v29, %v2658_v15  ;;  %v6170_v33 = vpop.f32.mrb[18].mxu1  ;;  %v4689_v12 = vpop.f32.mrb[19].mxu0 }
 0x235   : > { %v5798_v31 = vpack.c.bf16 %v4872_v47, %v4871_v21  ;;  %v4806_v57 = vmul.f32 %v6337_v46, %v8628_v2  ;;  %v6339_v8 = vadd.f32 %v6306_v60, %v6170_v33  ;;  %v2661_v48 = vpop.f32.mrb[19].mxu1 }
 0x236   : > { %5851 = vst [vmem:[%s8648_s30 + $0x38] sm:$0xff] %v5803_v20   ;;  %v4804_v62 = vmul.f32 %v6338_v42, %v8628_v2  ;;  %v6340_v56 = vadd.f32 %v4689_v12, %v2661_v48 }
 0x237   : > { %5850 = vst [vmem:[%s8648_s30 + $0x30] sm:$0xff] %v5798_v31   ;;  %v4845_v40 = vadd.f32 %v8633_v36, %v4806_v57  ;;  %v4807_v13 = vmul.f32 %v6339_v8, %v8628_v2 }
 0x238   : > { %v4843_v17 = vadd.f32 %v8633_v36, %v4804_v62  ;;  %v4805_v30 = vmul.f32 %v6340_v56, %v8628_v2 }
 0x239   : > { %v4846_v9 = vadd.f32 %v8633_v36, %v4807_v13  ;;  %v6309_v14 = vpop.f32.mrb[20].mxu0  ;;  %v4877_v16 = vmax.f32 %v4845_v40, 0.0 }
 0x23a   : > { %v4844_v63 = vadd.f32 %v8633_v36, %v4805_v30  ;;  %v6173_v4 = vpop.f32.mrb[20].mxu1  ;;  %v4702_v43 = vpop.f32.mrb[21].mxu0  ;;  %v4875_v52 = vmax.f32 %v4843_v17, 0.0 }
 0x23b   : > { %v4878_v58 = vmax.f32 %v4846_v9, 0.0  ;;  %v6341_v50 = vadd.f32 %v6309_v14, %v6173_v4  ;;  %v2674_v54 = vpop.f32.mrb[21].mxu1  ;;  %v6310_v18 = vpop.f32.mrb[22].mxu0 }
 0x23c   : > { %v4876_v11 = vmax.f32 %v4844_v63, 0.0  ;;  %v6342_v39 = vadd.f32 %v4702_v43, %v2674_v54  ;;  %v6174_v24 = vpop.f32.mrb[22].mxu1  ;;  %v4705_v0 = vpop.f32.mrb[23].mxu0 }
 0x23d   : > { %v5813_v32 = vpack.c.bf16 %v4878_v58, %v4877_v16  ;;  %v4810_v10 = vmul.f32 %v6341_v50, %v8628_v2  ;;  %v6343_v59 = vadd.f32 %v6310_v18, %v6174_v24  ;;  %v2677_v38 = vpop.f32.mrb[23].mxu1 }
 0x23e   : > { %v5808_v19 = vpack.c.bf16 %v4876_v11, %v4875_v52  ;;  %v4808_v37 = vmul.f32 %v6342_v39, %v8628_v2  ;;  %v6344_v26 = vadd.f32 %v4705_v0, %v2677_v38 }
 0x23f   : > { %5853 = vst [vmem:[%s8648_s30 + $0x48] sm:$0xff] %v5813_v32   ;;  %v4849_v35 = vadd.f32 %v8633_v36, %v4810_v10  ;;  %v4811_v34 = vmul.f32 %v6343_v59, %v8628_v2 }
 0x240   : > { %5852 = vst [vmem:[%s8648_s30 + $0x40] sm:$0xff] %v5808_v19   ;;  %v4847_v6 = vadd.f32 %v8633_v36, %v4808_v37  ;;  %v4809_v49 = vmul.f32 %v6344_v26, %v8628_v2 }
 0x241   : > { %v4850_v23 = vadd.f32 %v8633_v36, %v4811_v34  ;;  %v6313_v25 = vpop.f32.mrb[24].mxu0  ;;  %v4881_v22 = vmax.f32 %v4849_v35, 0.0 }
 0x242   : > { %v4848_v1 = vadd.f32 %v8633_v36, %v4809_v49  ;;  %v6177_v7 = vpop.f32.mrb[24].mxu1  ;;  %v4718_v61 = vpop.f32.mrb[25].mxu0  ;;  %v4879_v51 = vmax.f32 %v4847_v6, 0.0 }
 0x243   : > { %v4882_v41 = vmax.f32 %v4850_v23, 0.0  ;;  %v6345_v44 = vadd.f32 %v6313_v25, %v6177_v7  ;;  %v2690_v5 = vpop.f32.mrb[25].mxu1  ;;  %v6314_v3 = vpop.f32.mrb[26].mxu0 }
 0x244   : > { %v4880_v55 = vmax.f32 %v4848_v1, 0.0  ;;  %v6346_v28 = vadd.f32 %v4718_v61, %v2690_v5  ;;  %v6178_v45 = vpop.f32.mrb[26].mxu1  ;;  %v4721_v27 = vpop.f32.mrb[27].mxu0 }
 0x245   : > { %v5823_v53 = vpack.c.bf16 %v4882_v41, %v4881_v22  ;;  %v4814_v29 = vmul.f32 %v6345_v44, %v8628_v2  ;;  %v6347_v21 = vadd.f32 %v6314_v3, %v6178_v45  ;;  %v2693_v47 = vpop.f32.mrb[27].mxu1 }
 0x246   : > { %v5818_v46 = vpack.c.bf16 %v4880_v55, %v4879_v51  ;;  %v4812_v15 = vmul.f32 %v6346_v28, %v8628_v2  ;;  %v6348_v60 = vadd.f32 %v4721_v27, %v2693_v47 }
 0x247   : > { %5855 = vst [vmem:[%s8648_s30 + $0x58] sm:$0xff] %v5823_v53   ;;  %v4853_v20 = vadd.f32 %v8633_v36, %v4814_v29  ;;  %v4815_v42 = vmul.f32 %v6347_v21, %v8628_v2 }
 0x248   : > { %5854 = vst [vmem:[%s8648_s30 + $0x50] sm:$0xff] %v5818_v46   ;;  %v4851_v33 = vadd.f32 %v8633_v36, %v4812_v15  ;;  %v4813_v12 = vmul.f32 %v6348_v60, %v8628_v2 }
 0x249   : > { %v4854_v31 = vadd.f32 %v8633_v36, %v4815_v42  ;;  %v6317_v57 = vpop.f32.mrb[28].mxu0  ;;  %v4885_v56 = vmax.f32 %v4853_v20, 0.0 }
 0x24a   : > { %v4852_v8 = vadd.f32 %v8633_v36, %v4813_v12  ;;  %v6181_v48 = vpop.f32.mrb[28].mxu1  ;;  %v4734_v62 = vpop.f32.mrb[29].mxu0  ;;  %v4883_v9 = vmax.f32 %v4851_v33, 0.0 }
 0x24b   : > { %v4886_v40 = vmax.f32 %v4854_v31, 0.0  ;;  %v6349_v13 = vadd.f32 %v6317_v57, %v6181_v48  ;;  %v2706_v17 = vpop.f32.mrb[29].mxu1  ;;  %v6318_v30 = vpop.f32.mrb[30].mxu0 }
 0x24c   : > { %v4884_v14 = vmax.f32 %v4852_v8, 0.0  ;;  %v6350_v63 = vadd.f32 %v4734_v62, %v2706_v17  ;;  %v6182_v4 = vpop.f32.mrb[30].mxu1  ;;  %v4737_v43 = vpop.f32.mrb[31].mxu0 }
 0x24d   : > { %v5833_v16 = vpack.c.bf16 %v4886_v40, %v4885_v56  ;;  %v4818_v58 = vmul.f32 %v6349_v13, %v8628_v2  ;;  %v6351_v50 = vadd.f32 %v6318_v30, %v6182_v4  ;;  %v2709_v54 = vpop.f32.mrb[31].mxu1 }
 0x24e   : > { %v5828_v18 = vpack.c.bf16 %v4884_v14, %v4883_v9  ;;  %v4816_v52 = vmul.f32 %v6350_v63, %v8628_v2  ;;  %v6352_v11 = vadd.f32 %v4737_v43, %v2709_v54 }
 0x24f   : > { %5857 = vst [vmem:[%s8648_s30 + $0x68] sm:$0xff] %v5833_v16   ;;  %v4857_v39 = vadd.f32 %v8633_v36, %v4818_v58  ;;  %v4819_v24 = vmul.f32 %v6351_v50, %v8628_v2 }
 0x250   : > { %5856 = vst [vmem:[%s8648_s30 + $0x60] sm:$0xff] %v5828_v18   ;;  %v4855_v0 = vadd.f32 %v8633_v36, %v4816_v52  ;;  %v4817_v32 = vmul.f32 %v6352_v11, %v8628_v2 }
 0x251   : > { %v4858_v10 = vadd.f32 %v8633_v36, %v4819_v24  ;;  %v4889_v38 = vmax.f32 %v4857_v39, 0.0 }
 0x252   : > { %v4856_v59 = vadd.f32 %v8633_v36, %v4817_v32  ;;  %v4887_v37 = vmax.f32 %v4855_v0, 0.0 }
 0x253   : > { %v4890_v19 = vmax.f32 %v4858_v10, 0.0 }
 0x254   : > { %v4888_v26 = vmax.f32 %v4856_v59, 0.0 }
 0x255   : > { %v5843_v35 = vpack.c.bf16 %v4890_v19, %v4889_v38 }
 0x256   : > { %v5838_v2 = vpack.c.bf16 %v4888_v26, %v4887_v37 }
 0x257   : > { %5859 = vst [vmem:[%s8648_s30 + $0x78] sm:$0xff] %v5843_v35  }
 0x258   : > { %5858 = vst [vmem:[%s8648_s30 + $0x70] sm:$0xff] %v5838_v2  }
 0x259   : > { %6763 = shalt.err (!%p6760_p5)
}
 0x25a   : > { %s6764_s14 = scalar_lea.hbm %s8728_s9, 2048  ;;  %s6768_s24 = scalar_lea.hbm %s8786_s4, 4096 }
 0x25b   : > { %p6765_p6 = scmp.ne.s32.totalorder %s8728_s9, %s6764_s14  ;;  %p6769_p10 = scmp.lt.u32.totalorder %s8728_s9, %s8786_s4 }
 0x25c   : > { %p6770_p11 = scmp.lt.u32.totalorder %s6768_s24, %s6764_s14  ;;  %p6772_p13 = scmp.lt.u32.totalorder %s6764_s14, %s8728_s9 }
 0x25d   : > { %p6766_p7 = pnand %p6765_p6, %p6898_p4 }
 0x25e   : > { %p6771_p12 = por %p6770_p11, %p6769_p10 }
 0x25f   : > { %p6767_p9 = pneg %p6766_p7 }
 0x260   : > { %p6773_p0 = por %p6772_p13, %p6771_p12 }
 0x262   : > { %p6774_p1 = pnand %p6773_p0, %p6767_p9 }
 0x264   : > { %6777 = shalt.err (!%p6774_p1)
}
 0x265   : > { %s6831_s30 = smov 64   ;;  %s6832_s5 = smov 4  }
 0x266   : > { %6588 = dma.vmem_to_hbm [thread:$0]  (%p6898_p4), %s8730_s6, 2048, %s8728_s9, %s8736_s18, %s6831_s30, %s6831_s30, %s6832_s5  }
 0x267 PF: > { %p6594_p2 = scmp.ge.s32.totalorder %s6828_s20, 2  ;;  %s5082_s7 = sand.u32 1, %s6808_s15  }
 0x268   : > { %s5083_s8 = scalar_lea.sflag [#allocation3], %s5082_s7 }
 0x269   : > { %p6591_p3 = pnand %p6594_p2, %p6905_p8 }
 0x26b   : > { %6803 = dma.done.wait (!%p6591_p3), %s5083_s8, 2048  }
 0x26c   : > { %6805 = vsyncadd (!%p6591_p3), %s5083_s8, 4294965248  ;;  %s17_s20 = sadd.s32 1, %s6828_s20   ;;  %s8856_s15 = smov %s6812_s16 }
 0x26d   : > { %p14_p5 = scmp.ge.s32.totalorder %s17_s20, 4   ;;  %s8857_s16 = smov %s6816_s17 }
 0x26e   : > { %s8858_s17 = smov %s6911_s28  ;;  %s8859_s18 = smov %s6824_s19 }
 0x26f   : > { %s8860_s19 = smov %s8862_s23  ;;  %16 = sbr.rel (!%p14_p5) target bundleno = 4 (0x4), region = 82 }
 0x276   :  { %5088 = vsyncpa [#allocation3], 1 }
 0x277   :  { %5090 = vsyncpa [#allocation3 + $0x1], 1 }

</bundles_post_ra>
